<compile_context>
chip_gen: v6e
topology: v6e:2x2x1
jax: 0.10.0
libtpu: 0.0.40
codegen_flags: <defaults>
</compile_context>

<pallas_src>
import math
from functools import partial

import jax
import jax.numpy as jnp
from jax.experimental import pallas as pl
from jax.experimental.pallas import tpu as pltpu


# ----------------------------- fused forward kernel -----------------------------

def _model_kernel(*refs, num_heads, n_enc, n_dec, eps):
    (src_ref, tgt_ref,
     e_wqkv, e_bqkv, e_wo, e_bo, e_w1, e_b1, e_w2, e_b2,
     e_ln1g, e_ln1b, e_ln2g, e_ln2b,
     d_wqkv, d_bqkv, d_wos, d_bos, d_wvc, d_bvc, d_woc, d_boc,
     d_w1, d_b1, d_w2, d_b2,
     d_ln1g, d_ln1b, d_ln2g, d_ln2b, d_ln3g, d_ln3b,
     enc_ng, enc_nb, dec_ng, dec_nb,
     head_w, head_b,
     out_ref) = refs

    Ss, D = src_ref.shape[1], src_ref.shape[2]
    St = tgt_ref.shape[1]
    dh = D // num_heads
    sm_scale = 1.0 / math.sqrt(dh)

    def layer_norm(x, g, b):
        mu = jnp.mean(x, axis=-1, keepdims=True)
        xc = x - mu
        var = jnp.mean(xc * xc, axis=-1, keepdims=True)
        return xc * jax.lax.rsqrt(var + eps) * g + b

    def softmax_lastdim(s):
        s = s - jnp.max(s, axis=-1, keepdims=True)
        p = jnp.exp(s)
        return p / jnp.sum(p, axis=-1, keepdims=True)

    def self_attention(x, wqkv, bqkv, wo, bo, mask):
        # x: (S, D);  fused QKV projection -> (S, 3D)
        qkv = jnp.dot(x, wqkv, preferred_element_type=jnp.float32) + bqkv
        q, k, v = qkv[:, :D], qkv[:, D:2 * D], qkv[:, 2 * D:]
        heads = []
        for h in range(num_heads):                      # static unroll (tiny)
            lo, hi = h * dh, (h + 1) * dh
            qh, kh, vh = q[:, lo:hi], k[:, lo:hi], v[:, lo:hi]
            s = jnp.einsum("qd,kd->qk", qh, kh,
                           preferred_element_type=jnp.float32) * sm_scale
            if mask is not None:
                s = s + mask
            p = softmax_lastdim(s)
            heads.append(jnp.dot(p, vh, preferred_element_type=jnp.float32))
        o = jnp.concatenate(heads, axis=-1)             # (S, D)
        return jnp.dot(o, wo, preferred_element_type=jnp.float32) + bo

    def ffn(x, w1, b1, w2, b2):
        h = jnp.maximum(jnp.dot(x, w1, preferred_element_type=jnp.float32) + b1, 0.0)
        return jnp.dot(h, w2, preferred_element_type=jnp.float32) + b2

    # ------------------------------ encoder ------------------------------
    x = src_ref[0]                                       # (Ss, D)
    for l in range(n_enc):                               # post-norm (PyTorch default)
        a = self_attention(x, e_wqkv[l], e_bqkv[l], e_wo[l], e_bo[l], None)
        x = layer_norm(x + a, e_ln1g[l], e_ln1b[l])
        f = ffn(x, e_w1[l], e_b1[l], e_w2[l], e_b2[l])
        x = layer_norm(x + f, e_ln2g[l], e_ln2b[l])
    mem = layer_norm(x, enc_ng[...], enc_nb[...])        # final encoder norm
    mem_pooled = jnp.mean(mem, axis=0, keepdims=True)    # (1, D) pooled memory

    # ------------------------------ decoder ------------------------------
    row = jax.lax.broadcasted_iota(jnp.int32, (St, St), 0)
    col = jax.lax.broadcasted_iota(jnp.int32, (St, St), 1)
    causal = jnp.where(row >= col, 0.0, -1e30).astype(jnp.float32)

    y = tgt_ref[0]                                       # (St, D)
    for l in range(n_dec):
        a = self_attention(y, d_wqkv[l], d_bqkv[l], d_wos[l], d_bos[l], causal)
        y = layer_norm(y + a, d_ln1g[l], d_ln1b[l])
        # Cross-attention over the single pooled key: softmax == 1, so the output
        # is just the projected value, broadcast over the St queries.
        v_c = jnp.dot(mem_pooled, d_wvc[l], preferred_element_type=jnp.float32) + d_bvc[l]
        z = jnp.dot(v_c, d_woc[l], preferred_element_type=jnp.float32) + d_boc[l]  # (1, D)
        y = layer_norm(y + z, d_ln2g[l], d_ln2b[l])
        f = ffn(y, d_w1[l], d_b1[l], d_w2[l], d_b2[l])
        y = layer_norm(y + f, d_ln3g[l], d_ln3b[l])
    y = layer_norm(y, dec_ng[...], dec_nb[...])          # final decoder norm

    # lane-dense (vocab padded to a multiple of 128) output head
    logits = jnp.dot(y, head_w[...], preferred_element_type=jnp.float32) + head_b[...]
    out_ref[0] = logits


# ----------------------------- model pieces -----------------------------

def positional_encoding_1d(d_model, length):
    position = jnp.arange(length, dtype=jnp.float32)[:, None]
    div_term = jnp.exp(jnp.arange(0, d_model, 2, dtype=jnp.float32)
                       * -(math.log(10000.0) / d_model))
    pe = jnp.zeros((length, d_model), jnp.float32)
    pe = pe.at[:, 0::2].set(jnp.sin(position * div_term))
    pe = pe.at[:, 1::2].set(jnp.cos(position * div_term))
    return pe


_WEIGHT_ORDER = [
    "e_wqkv", "e_bqkv", "e_wo", "e_bo", "e_w1", "e_b1", "e_w2", "e_b2",
    "e_ln1g", "e_ln1b", "e_ln2g", "e_ln2b",
    "d_wqkv", "d_bqkv", "d_wos", "d_bos", "d_wvc", "d_bvc", "d_woc", "d_boc",
    "d_w1", "d_b1", "d_w2", "d_b2",
    "d_ln1g", "d_ln1b", "d_ln2g", "d_ln2b", "d_ln3g", "d_ln3b",
    "enc_ng", "enc_nb", "dec_ng", "dec_nb",
    "head_w_p", "head_b_p",
]


def encoder_decoder_forward(params, src_ids, tgt_ids, cfg):
    D = cfg["embed_dim"]
    H = cfg["num_heads"]
    V = cfg["vocab_size"]
    B, Ss = src_ids.shape
    St = tgt_ids.shape[1]

    emb = params["embedding"]
    pe = params["pos_encoding"]
    scale = math.sqrt(D)

    # token embedding (gather) + positional encoding, done in XLA.
    src = jnp.take(emb, src_ids, axis=0) * scale + pe[:Ss][None]
    tgt = jnp.take(emb, tgt_ids, axis=0) * scale + pe[:St][None]

    weights = [params[n] for n in _WEIGHT_ORDER]
    Vp = params["head_w_p"].shape[1]

    def resident_spec(a):
        return pl.BlockSpec(a.shape, lambda b, _n=a.ndim: (0,) * _n)

    in_specs = ([pl.BlockSpec((1, Ss, D), lambda b: (b, 0, 0)),
                 pl.BlockSpec((1, St, D), lambda b: (b, 0, 0))]
                + [resident_spec(a) for a in weights])

    out = pl.pallas_call(
        partial(_model_kernel, num_heads=H, n_enc=cfg["encoder_depth"],
                n_dec=cfg["decoder_depth"], eps=1e-5),
        grid=(B,),
        in_specs=in_specs,
        out_specs=pl.BlockSpec((1, St, Vp), lambda b: (b, 0, 0)),
        out_shape=jax.ShapeDtypeStruct((B, St, Vp), jnp.float32),
        compiler_params=pltpu.CompilerParams(dimension_semantics=("parallel",)),
    )(src, tgt, *weights)

    return out[:, :, :V]


# ----------------------------- parameter init -----------------------------

def init_params(key, cfg):
    D = cfg["embed_dim"]
    F = int(D * cfg["mlp_ratio"])
    V = cfg["vocab_size"]
    Le = cfg["encoder_depth"]
    Ld = cfg["decoder_depth"]
    Vp = ((V + 127) // 128) * 128          # lane-dense padded vocab

    keys = iter(jax.random.split(key, 64))

    def nrm(shape):
        return 0.02 * jax.random.normal(next(keys), shape, jnp.float32)

    def zeros(shape):
        return jnp.zeros(shape, jnp.float32)

    def ones(shape):
        return jnp.ones(shape, jnp.float32)

    head_w_p = jnp.zeros((D, Vp), jnp.float32).at[:, :V].set(nrm((D, V)))

    return dict(
        embedding=nrm((V, D)),
        pos_encoding=positional_encoding_1d(D, cfg["input_tokens"]),
        # encoder layers (stacked over the layer dim)
        e_wqkv=nrm((Le, D, 3 * D)), e_bqkv=zeros((Le, 1, 3 * D)),
        e_wo=nrm((Le, D, D)), e_bo=zeros((Le, 1, D)),
        e_w1=nrm((Le, D, F)), e_b1=zeros((Le, 1, F)),
        e_w2=nrm((Le, F, D)), e_b2=zeros((Le, 1, D)),
        e_ln1g=ones((Le, 1, D)), e_ln1b=zeros((Le, 1, D)),
        e_ln2g=ones((Le, 1, D)), e_ln2b=zeros((Le, 1, D)),
        # decoder layers (stacked);  cross-attn q/k projections are mathematically
        # irrelevant with a single pooled memory token, so only v/out are kept.
        d_wqkv=nrm((Ld, D, 3 * D)), d_bqkv=zeros((Ld, 1, 3 * D)),
        d_wos=nrm((Ld, D, D)), d_bos=zeros((Ld, 1, D)),
        d_wvc=nrm((Ld, D, D)), d_bvc=zeros((Ld, 1, D)),
        d_woc=nrm((Ld, D, D)), d_boc=zeros((Ld, 1, D)),
        d_w1=nrm((Ld, D, F)), d_b1=zeros((Ld, 1, F)),
        d_w2=nrm((Ld, F, D)), d_b2=zeros((Ld, 1, D)),
        d_ln1g=ones((Ld, 1, D)), d_ln1b=zeros((Ld, 1, D)),
        d_ln2g=ones((Ld, 1, D)), d_ln2b=zeros((Ld, 1, D)),
        d_ln3g=ones((Ld, 1, D)), d_ln3b=zeros((Ld, 1, D)),
        # final encoder / decoder norms
        enc_ng=ones((1, D)), enc_nb=zeros((1, D)),
        dec_ng=ones((1, D)), dec_nb=zeros((1, D)),
        # output head, padded to lane-dense width
        head_w_p=head_w_p, head_b_p=zeros((1, Vp)),
    )


# ----------------------------- main -----------------------------

if __name__ == "__main__":
    cfg = dict(embed_dim=32, num_heads=4, mlp_ratio=2,
               encoder_depth=2, decoder_depth=2,
               vocab_size=64, input_tokens=16, dropout=0.0)
    # TODO(synk): dropout is treated as identity (inference semantics).

    key = jax.random.PRNGKey(0)
    kp, ks, kt = jax.random.split(key, 3)
    params = init_params(kp, cfg)

    B, S_src, S_tgt = 2, 16, 8
    src = jax.random.randint(ks, (B, S_src), 0, cfg["vocab_size"], dtype=jnp.int32)
    tgt = jax.random.randint(kt, (B, S_tgt), 0, cfg["vocab_size"], dtype=jnp.int32)

    fwd = jax.jit(partial(encoder_decoder_forward, cfg=cfg))
    out = fwd(params, src, tgt)
    jax.block_until_ready(out)

    assert out.shape == (B, S_tgt, cfg["vocab_size"]), out.shape
    assert out.dtype == jnp.float32
    assert bool(jnp.all(jnp.isfinite(out)))
    print("KERNEL_OK")
</pallas_src>

<mosaic_0001>
module attributes {stable_mosaic.version = 11 : i64} {
  func.func @_model_kernel(%arg0: i32, %arg1: memref<1x16x32xf32, #tpu.memory_space<vmem>>, %arg2: memref<1x8x32xf32, #tpu.memory_space<vmem>>, %arg3: memref<2x32x96xf32, #tpu.memory_space<vmem>>, %arg4: memref<2x1x96xf32, #tpu.memory_space<vmem>>, %arg5: memref<2x32x32xf32, #tpu.memory_space<vmem>>, %arg6: memref<2x1x32xf32, #tpu.memory_space<vmem>>, %arg7: memref<2x32x64xf32, #tpu.memory_space<vmem>>, %arg8: memref<2x1x64xf32, #tpu.memory_space<vmem>>, %arg9: memref<2x64x32xf32, #tpu.memory_space<vmem>>, %arg10: memref<2x1x32xf32, #tpu.memory_space<vmem>>, %arg11: memref<2x1x32xf32, #tpu.memory_space<vmem>>, %arg12: memref<2x1x32xf32, #tpu.memory_space<vmem>>, %arg13: memref<2x1x32xf32, #tpu.memory_space<vmem>>, %arg14: memref<2x1x32xf32, #tpu.memory_space<vmem>>, %arg15: memref<2x32x96xf32, #tpu.memory_space<vmem>>, %arg16: memref<2x1x96xf32, #tpu.memory_space<vmem>>, %arg17: memref<2x32x32xf32, #tpu.memory_space<vmem>>, %arg18: memref<2x1x32xf32, #tpu.memory_space<vmem>>, %arg19: memref<2x32x32xf32, #tpu.memory_space<vmem>>, %arg20: memref<2x1x32xf32, #tpu.memory_space<vmem>>, %arg21: memref<2x32x32xf32, #tpu.memory_space<vmem>>, %arg22: memref<2x1x32xf32, #tpu.memory_space<vmem>>, %arg23: memref<2x32x64xf32, #tpu.memory_space<vmem>>, %arg24: memref<2x1x64xf32, #tpu.memory_space<vmem>>, %arg25: memref<2x64x32xf32, #tpu.memory_space<vmem>>, %arg26: memref<2x1x32xf32, #tpu.memory_space<vmem>>, %arg27: memref<2x1x32xf32, #tpu.memory_space<vmem>>, %arg28: memref<2x1x32xf32, #tpu.memory_space<vmem>>, %arg29: memref<2x1x32xf32, #tpu.memory_space<vmem>>, %arg30: memref<2x1x32xf32, #tpu.memory_space<vmem>>, %arg31: memref<2x1x32xf32, #tpu.memory_space<vmem>>, %arg32: memref<2x1x32xf32, #tpu.memory_space<vmem>>, %arg33: memref<1x32xf32, #tpu.memory_space<vmem>>, %arg34: memref<1x32xf32, #tpu.memory_space<vmem>>, %arg35: memref<1x32xf32, #tpu.memory_space<vmem>>, %arg36: memref<1x32xf32, #tpu.memory_space<vmem>>, %arg37: memref<32x128xf32, #tpu.memory_space<vmem>>, %arg38: memref<1x128xf32, #tpu.memory_space<vmem>>, %arg39: memref<1x8x128xf32, #tpu.memory_space<vmem>>) attributes {dimension_semantics = [#tpu.dimension_semantics<parallel>], iteration_bounds = array<i64: 2>, scalar_prefetch = 0 : i64, scratch_operands = 0 : i64, tpu.core_type = #tpu.core_type<tc>, window_params = [{transform_indices = @transform_0, window_bounds = array<i64: 1, 16, 32>}, {transform_indices = @transform_1, window_bounds = array<i64: 1, 8, 32>}, {pipeline_mode = #tpu.pipeline_mode<synchronous>, transform_indices = @transform_2, window_bounds = array<i64: 2, 32, 96>}, {pipeline_mode = #tpu.pipeline_mode<synchronous>, transform_indices = @transform_3, window_bounds = array<i64: 2, 1, 96>}, {pipeline_mode = #tpu.pipeline_mode<synchronous>, transform_indices = @transform_4, window_bounds = array<i64: 2, 32, 32>}, {pipeline_mode = #tpu.pipeline_mode<synchronous>, transform_indices = @transform_5, window_bounds = array<i64: 2, 1, 32>}, {pipeline_mode = #tpu.pipeline_mode<synchronous>, transform_indices = @transform_6, window_bounds = array<i64: 2, 32, 64>}, {pipeline_mode = #tpu.pipeline_mode<synchronous>, transform_indices = @transform_7, window_bounds = array<i64: 2, 1, 64>}, {pipeline_mode = #tpu.pipeline_mode<synchronous>, transform_indices = @transform_8, window_bounds = array<i64: 2, 64, 32>}, {pipeline_mode = #tpu.pipeline_mode<synchronous>, transform_indices = @transform_9, window_bounds = array<i64: 2, 1, 32>}, {pipeline_mode = #tpu.pipeline_mode<synchronous>, transform_indices = @transform_10, window_bounds = array<i64: 2, 1, 32>}, {pipeline_mode = #tpu.pipeline_mode<synchronous>, transform_indices = @transform_11, window_bounds = array<i64: 2, 1, 32>}, {pipeline_mode = #tpu.pipeline_mode<synchronous>, transform_indices = @transform_12, window_bounds = array<i64: 2, 1, 32>}, {pipeline_mode = #tpu.pipeline_mode<synchronous>, transform_indices = @transform_13, window_bounds = array<i64: 2, 1, 32>}, {pipeline_mode = #tpu.pipeline_mode<synchronous>, transform_indices = @transform_14, window_bounds = array<i64: 2, 32, 96>}, {pipeline_mode = #tpu.pipeline_mode<synchronous>, transform_indices = @transform_15, window_bounds = array<i64: 2, 1, 96>}, {pipeline_mode = #tpu.pipeline_mode<synchronous>, transform_indices = @transform_16, window_bounds = array<i64: 2, 32, 32>}, {pipeline_mode = #tpu.pipeline_mode<synchronous>, transform_indices = @transform_17, window_bounds = array<i64: 2, 1, 32>}, {pipeline_mode = #tpu.pipeline_mode<synchronous>, transform_indices = @transform_18, window_bounds = array<i64: 2, 32, 32>}, {pipeline_mode = #tpu.pipeline_mode<synchronous>, transform_indices = @transform_19, window_bounds = array<i64: 2, 1, 32>}, {pipeline_mode = #tpu.pipeline_mode<synchronous>, transform_indices = @transform_20, window_bounds = array<i64: 2, 32, 32>}, {pipeline_mode = #tpu.pipeline_mode<synchronous>, transform_indices = @transform_21, window_bounds = array<i64: 2, 1, 32>}, {pipeline_mode = #tpu.pipeline_mode<synchronous>, transform_indices = @transform_22, window_bounds = array<i64: 2, 32, 64>}, {pipeline_mode = #tpu.pipeline_mode<synchronous>, transform_indices = @transform_23, window_bounds = array<i64: 2, 1, 64>}, {pipeline_mode = #tpu.pipeline_mode<synchronous>, transform_indices = @transform_24, window_bounds = array<i64: 2, 64, 32>}, {pipeline_mode = #tpu.pipeline_mode<synchronous>, transform_indices = @transform_25, window_bounds = array<i64: 2, 1, 32>}, {pipeline_mode = #tpu.pipeline_mode<synchronous>, transform_indices = @transform_26, window_bounds = array<i64: 2, 1, 32>}, {pipeline_mode = #tpu.pipeline_mode<synchronous>, transform_indices = @transform_27, window_bounds = array<i64: 2, 1, 32>}, {pipeline_mode = #tpu.pipeline_mode<synchronous>, transform_indices = @transform_28, window_bounds = array<i64: 2, 1, 32>}, {pipeline_mode = #tpu.pipeline_mode<synchronous>, transform_indices = @transform_29, window_bounds = array<i64: 2, 1, 32>}, {pipeline_mode = #tpu.pipeline_mode<synchronous>, transform_indices = @transform_30, window_bounds = array<i64: 2, 1, 32>}, {pipeline_mode = #tpu.pipeline_mode<synchronous>, transform_indices = @transform_31, window_bounds = array<i64: 2, 1, 32>}, {pipeline_mode = #tpu.pipeline_mode<synchronous>, transform_indices = @transform_32, window_bounds = array<i64: 1, 32>}, {pipeline_mode = #tpu.pipeline_mode<synchronous>, transform_indices = @transform_33, window_bounds = array<i64: 1, 32>}, {pipeline_mode = #tpu.pipeline_mode<synchronous>, transform_indices = @transform_34, window_bounds = array<i64: 1, 32>}, {pipeline_mode = #tpu.pipeline_mode<synchronous>, transform_indices = @transform_35, window_bounds = array<i64: 1, 32>}, {pipeline_mode = #tpu.pipeline_mode<synchronous>, transform_indices = @transform_36, window_bounds = array<i64: 32, 128>}, {pipeline_mode = #tpu.pipeline_mode<synchronous>, transform_indices = @transform_37, window_bounds = array<i64: 1, 128>}, {transform_indices = @transform_38, window_bounds = array<i64: 1, 8, 128>}]} {
    %c0 = arith.constant 0 : index
    %c0_0 = arith.constant 0 : index
    %c0_1 = arith.constant 0 : index
    %0 = vector.load %arg1[%c0, %c0_0, %c0_1] : memref<1x16x32xf32, #tpu.memory_space<vmem>>, vector<1x16x32xf32>
    %1 = vector.shape_cast %0 : vector<1x16x32xf32> to vector<16x32xf32>
    %c0_2 = arith.constant 0 : index
    %c0_3 = arith.constant 0 : index
    %c0_4 = arith.constant 0 : index
    %2 = vector.load %arg3[%c0_2, %c0_3, %c0_4] : memref<2x32x96xf32, #tpu.memory_space<vmem>>, vector<1x32x96xf32>
    %3 = vector.shape_cast %2 : vector<1x32x96xf32> to vector<32x96xf32>
    %c0_5 = arith.constant 0 : index
    %c0_6 = arith.constant 0 : index
    %c0_7 = arith.constant 0 : index
    %4 = vector.load %arg4[%c0_5, %c0_6, %c0_7] : memref<2x1x96xf32, #tpu.memory_space<vmem>>, vector<1x1x96xf32>
    %5 = vector.shape_cast %4 : vector<1x1x96xf32> to vector<1x96xf32>
    %c0_8 = arith.constant 0 : index
    %c0_9 = arith.constant 0 : index
    %c0_10 = arith.constant 0 : index
    %6 = vector.load %arg5[%c0_8, %c0_9, %c0_10] : memref<2x32x32xf32, #tpu.memory_space<vmem>>, vector<1x32x32xf32>
    %7 = vector.shape_cast %6 : vector<1x32x32xf32> to vector<32x32xf32>
    %c0_11 = arith.constant 0 : index
    %c0_12 = arith.constant 0 : index
    %c0_13 = arith.constant 0 : index
    %8 = vector.load %arg6[%c0_11, %c0_12, %c0_13] : memref<2x1x32xf32, #tpu.memory_space<vmem>>, vector<1x1x32xf32>
    %9 = vector.shape_cast %8 : vector<1x1x32xf32> to vector<1x32xf32>
    %cst = arith.constant dense<0.000000e+00> : vector<16x96xf32>
    %10 = tpu.matmul %1, %3, %cst {dimension_numbers = #tpu.dot_dimension_numbers<[1], [0], [0], [1], [0, 0, 1, 1], [], []>} : vector<16x32xf32>, vector<32x96xf32>, vector<16x96xf32> -> vector<16x96xf32>
    %11 = vector.broadcast %5 : vector<1x96xf32> to vector<16x96xf32>
    %12 = arith.addf %10, %11 : vector<16x96xf32>
    %13 = vector.extract_strided_slice %12 {offsets = [0, 0], sizes = [16, 32], strides = [1, 1]} : vector<16x96xf32> to vector<16x32xf32>
    %14 = vector.extract_strided_slice %12 {offsets = [0, 32], sizes = [16, 32], strides = [1, 1]} : vector<16x96xf32> to vector<16x32xf32>
    %15 = vector.extract_strided_slice %12 {offsets = [0, 64], sizes = [16, 32], strides = [1, 1]} : vector<16x96xf32> to vector<16x32xf32>
    %16 = vector.extract_strided_slice %13 {offsets = [0, 0], sizes = [16, 8], strides = [1, 1]} : vector<16x32xf32> to vector<16x8xf32>
    %17 = vector.extract_strided_slice %14 {offsets = [0, 0], sizes = [16, 8], strides = [1, 1]} : vector<16x32xf32> to vector<16x8xf32>
    %18 = vector.extract_strided_slice %15 {offsets = [0, 0], sizes = [16, 8], strides = [1, 1]} : vector<16x32xf32> to vector<16x8xf32>
    "tpu.trace_start"() <{level = 10 : i32, message = "qd,kd->qk"}> : () -> ()
    %cst_14 = arith.constant dense<0.000000e+00> : vector<16x16xf32>
    %19 = tpu.matmul %16, %17, %cst_14 {dimension_numbers = #tpu.dot_dimension_numbers<[1], [1], [0], [0], [0, 0, 1, 0], [], []>} : vector<16x8xf32>, vector<16x8xf32>, vector<16x16xf32> -> vector<16x16xf32>
    "tpu.trace_stop"() : () -> ()
    %cst_15 = arith.constant 0.353553385 : f32
    %20 = vector.broadcast %cst_15 : f32 to vector<16x16xf32>
    %21 = arith.mulf %19, %20 : vector<16x16xf32>
    %cst_16 = arith.constant dense<0xFF800000> : vector<16xf32>
    %22 = vector.multi_reduction <maximumf>, %21, %cst_16 [1] : vector<16x16xf32> to vector<16xf32>
    %23 = vector.shape_cast %22 : vector<16xf32> to vector<16x1xf32>
    %24 = vector.broadcast %23 : vector<16x1xf32> to vector<16x16xf32>
    %25 = arith.subf %21, %24 : vector<16x16xf32>
    %26 = math.exp %25 : vector<16x16xf32>
    %cst_17 = arith.constant dense<0.000000e+00> : vector<16xf32>
    %27 = vector.multi_reduction <add>, %26, %cst_17 [1] : vector<16x16xf32> to vector<16xf32>
    %28 = vector.shape_cast %27 : vector<16xf32> to vector<16x1xf32>
    %29 = vector.broadcast %28 : vector<16x1xf32> to vector<16x16xf32>
    %30 = arith.divf %26, %29 : vector<16x16xf32>
    %cst_18 = arith.constant dense<0.000000e+00> : vector<16x8xf32>
    %31 = tpu.matmul %30, %18, %cst_18 {dimension_numbers = #tpu.dot_dimension_numbers<[1], [0], [0], [1], [0, 0, 1, 1], [], []>} : vector<16x16xf32>, vector<16x8xf32>, vector<16x8xf32> -> vector<16x8xf32>
    %32 = vector.extract_strided_slice %13 {offsets = [0, 8], sizes = [16, 8], strides = [1, 1]} : vector<16x32xf32> to vector<16x8xf32>
    %33 = vector.extract_strided_slice %14 {offsets = [0, 8], sizes = [16, 8], strides = [1, 1]} : vector<16x32xf32> to vector<16x8xf32>
    %34 = vector.extract_strided_slice %15 {offsets = [0, 8], sizes = [16, 8], strides = [1, 1]} : vector<16x32xf32> to vector<16x8xf32>
    "tpu.trace_start"() <{level = 10 : i32, message = "qd,kd->qk"}> : () -> ()
    %cst_19 = arith.constant dense<0.000000e+00> : vector<16x16xf32>
    %35 = tpu.matmul %32, %33, %cst_19 {dimension_numbers = #tpu.dot_dimension_numbers<[1], [1], [0], [0], [0, 0, 1, 0], [], []>} : vector<16x8xf32>, vector<16x8xf32>, vector<16x16xf32> -> vector<16x16xf32>
    "tpu.trace_stop"() : () -> ()
    %cst_20 = arith.constant 0.353553385 : f32
    %36 = vector.broadcast %cst_20 : f32 to vector<16x16xf32>
    %37 = arith.mulf %35, %36 : vector<16x16xf32>
    %cst_21 = arith.constant dense<0xFF800000> : vector<16xf32>
    %38 = vector.multi_reduction <maximumf>, %37, %cst_21 [1] : vector<16x16xf32> to vector<16xf32>
    %39 = vector.shape_cast %38 : vector<16xf32> to vector<16x1xf32>
    %40 = vector.broadcast %39 : vector<16x1xf32> to vector<16x16xf32>
    %41 = arith.subf %37, %40 : vector<16x16xf32>
    %42 = math.exp %41 : vector<16x16xf32>
    %cst_22 = arith.constant dense<0.000000e+00> : vector<16xf32>
    %43 = vector.multi_reduction <add>, %42, %cst_22 [1] : vector<16x16xf32> to vector<16xf32>
    %44 = vector.shape_cast %43 : vector<16xf32> to vector<16x1xf32>
    %45 = vector.broadcast %44 : vector<16x1xf32> to vector<16x16xf32>
    %46 = arith.divf %42, %45 : vector<16x16xf32>
    %cst_23 = arith.constant dense<0.000000e+00> : vector<16x8xf32>
    %47 = tpu.matmul %46, %34, %cst_23 {dimension_numbers = #tpu.dot_dimension_numbers<[1], [0], [0], [1], [0, 0, 1, 1], [], []>} : vector<16x16xf32>, vector<16x8xf32>, vector<16x8xf32> -> vector<16x8xf32>
    %48 = vector.extract_strided_slice %13 {offsets = [0, 16], sizes = [16, 8], strides = [1, 1]} : vector<16x32xf32> to vector<16x8xf32>
    %49 = vector.extract_strided_slice %14 {offsets = [0, 16], sizes = [16, 8], strides = [1, 1]} : vector<16x32xf32> to vector<16x8xf32>
    %50 = vector.extract_strided_slice %15 {offsets = [0, 16], sizes = [16, 8], strides = [1, 1]} : vector<16x32xf32> to vector<16x8xf32>
    "tpu.trace_start"() <{level = 10 : i32, message = "qd,kd->qk"}> : () -> ()
    %cst_24 = arith.constant dense<0.000000e+00> : vector<16x16xf32>
    %51 = tpu.matmul %48, %49, %cst_24 {dimension_numbers = #tpu.dot_dimension_numbers<[1], [1], [0], [0], [0, 0, 1, 0], [], []>} : vector<16x8xf32>, vector<16x8xf32>, vector<16x16xf32> -> vector<16x16xf32>
    "tpu.trace_stop"() : () -> ()
    %cst_25 = arith.constant 0.353553385 : f32
    %52 = vector.broadcast %cst_25 : f32 to vector<16x16xf32>
    %53 = arith.mulf %51, %52 : vector<16x16xf32>
    %cst_26 = arith.constant dense<0xFF800000> : vector<16xf32>
    %54 = vector.multi_reduction <maximumf>, %53, %cst_26 [1] : vector<16x16xf32> to vector<16xf32>
    %55 = vector.shape_cast %54 : vector<16xf32> to vector<16x1xf32>
    %56 = vector.broadcast %55 : vector<16x1xf32> to vector<16x16xf32>
    %57 = arith.subf %53, %56 : vector<16x16xf32>
    %58 = math.exp %57 : vector<16x16xf32>
    %cst_27 = arith.constant dense<0.000000e+00> : vector<16xf32>
    %59 = vector.multi_reduction <add>, %58, %cst_27 [1] : vector<16x16xf32> to vector<16xf32>
    %60 = vector.shape_cast %59 : vector<16xf32> to vector<16x1xf32>
    %61 = vector.broadcast %60 : vector<16x1xf32> to vector<16x16xf32>
    %62 = arith.divf %58, %61 : vector<16x16xf32>
    %cst_28 = arith.constant dense<0.000000e+00> : vector<16x8xf32>
    %63 = tpu.matmul %62, %50, %cst_28 {dimension_numbers = #tpu.dot_dimension_numbers<[1], [0], [0], [1], [0, 0, 1, 1], [], []>} : vector<16x16xf32>, vector<16x8xf32>, vector<16x8xf32> -> vector<16x8xf32>
    %64 = vector.extract_strided_slice %13 {offsets = [0, 24], sizes = [16, 8], strides = [1, 1]} : vector<16x32xf32> to vector<16x8xf32>
    %65 = vector.extract_strided_slice %14 {offsets = [0, 24], sizes = [16, 8], strides = [1, 1]} : vector<16x32xf32> to vector<16x8xf32>
    %66 = vector.extract_strided_slice %15 {offsets = [0, 24], sizes = [16, 8], strides = [1, 1]} : vector<16x32xf32> to vector<16x8xf32>
    "tpu.trace_start"() <{level = 10 : i32, message = "qd,kd->qk"}> : () -> ()
    %cst_29 = arith.constant dense<0.000000e+00> : vector<16x16xf32>
    %67 = tpu.matmul %64, %65, %cst_29 {dimension_numbers = #tpu.dot_dimension_numbers<[1], [1], [0], [0], [0, 0, 1, 0], [], []>} : vector<16x8xf32>, vector<16x8xf32>, vector<16x16xf32> -> vector<16x16xf32>
    "tpu.trace_stop"() : () -> ()
    %cst_30 = arith.constant 0.353553385 : f32
    %68 = vector.broadcast %cst_30 : f32 to vector<16x16xf32>
    %69 = arith.mulf %67, %68 : vector<16x16xf32>
    %cst_31 = arith.constant dense<0xFF800000> : vector<16xf32>
    %70 = vector.multi_reduction <maximumf>, %69, %cst_31 [1] : vector<16x16xf32> to vector<16xf32>
    %71 = vector.shape_cast %70 : vector<16xf32> to vector<16x1xf32>
    %72 = vector.broadcast %71 : vector<16x1xf32> to vector<16x16xf32>
    %73 = arith.subf %69, %72 : vector<16x16xf32>
    %74 = math.exp %73 : vector<16x16xf32>
    %cst_32 = arith.constant dense<0.000000e+00> : vector<16xf32>
    %75 = vector.multi_reduction <add>, %74, %cst_32 [1] : vector<16x16xf32> to vector<16xf32>
    %76 = vector.shape_cast %75 : vector<16xf32> to vector<16x1xf32>
    %77 = vector.broadcast %76 : vector<16x1xf32> to vector<16x16xf32>
    %78 = arith.divf %74, %77 : vector<16x16xf32>
    %cst_33 = arith.constant dense<0.000000e+00> : vector<16x8xf32>
    %79 = tpu.matmul %78, %66, %cst_33 {dimension_numbers = #tpu.dot_dimension_numbers<[1], [0], [0], [1], [0, 0, 1, 1], [], []>} : vector<16x16xf32>, vector<16x8xf32>, vector<16x8xf32> -> vector<16x8xf32>
    %80 = tpu.concatenate %31, %47, %63, %79 in 1 : vector<16x8xf32>, vector<16x8xf32>, vector<16x8xf32>, vector<16x8xf32> -> vector<16x32xf32>
    %cst_34 = arith.constant dense<0.000000e+00> : vector<16x32xf32>
    %81 = tpu.matmul %80, %7, %cst_34 {dimension_numbers = #tpu.dot_dimension_numbers<[1], [0], [0], [1], [0, 0, 1, 1], [], []>} : vector<16x32xf32>, vector<32x32xf32>, vector<16x32xf32> -> vector<16x32xf32>
    %82 = vector.broadcast %9 : vector<1x32xf32> to vector<16x32xf32>
    %83 = arith.addf %81, %82 : vector<16x32xf32>
    %84 = arith.addf %1, %83 : vector<16x32xf32>
    %c0_35 = arith.constant 0 : index
    %c0_36 = arith.constant 0 : index
    %c0_37 = arith.constant 0 : index
    %85 = vector.load %arg11[%c0_35, %c0_36, %c0_37] : memref<2x1x32xf32, #tpu.memory_space<vmem>>, vector<1x1x32xf32>
    %86 = vector.shape_cast %85 : vector<1x1x32xf32> to vector<1x32xf32>
    %c0_38 = arith.constant 0 : index
    %c0_39 = arith.constant 0 : index
    %c0_40 = arith.constant 0 : index
    %87 = vector.load %arg12[%c0_38, %c0_39, %c0_40] : memref<2x1x32xf32, #tpu.memory_space<vmem>>, vector<1x1x32xf32>
    %88 = vector.shape_cast %87 : vector<1x1x32xf32> to vector<1x32xf32>
    %cst_41 = arith.constant dense<0.000000e+00> : vector<16xf32>
    %89 = vector.multi_reduction <add>, %84, %cst_41 [1] : vector<16x32xf32> to vector<16xf32>
    %90 = vector.shape_cast %89 : vector<16xf32> to vector<16x1xf32>
    %cst_42 = arith.constant 3.200000e+01 : f32
    %91 = vector.broadcast %cst_42 : f32 to vector<16x1xf32>
    %92 = arith.divf %90, %91 : vector<16x1xf32>
    %93 = vector.broadcast %92 : vector<16x1xf32> to vector<16x32xf32>
    %94 = arith.subf %84, %93 : vector<16x32xf32>
    %95 = arith.mulf %94, %94 : vector<16x32xf32>
    %cst_43 = arith.constant dense<0.000000e+00> : vector<16xf32>
    %96 = vector.multi_reduction <add>, %95, %cst_43 [1] : vector<16x32xf32> to vector<16xf32>
    %97 = vector.shape_cast %96 : vector<16xf32> to vector<16x1xf32>
    %cst_44 = arith.constant 3.200000e+01 : f32
    %98 = vector.broadcast %cst_44 : f32 to vector<16x1xf32>
    %99 = arith.divf %97, %98 : vector<16x1xf32>
    %cst_45 = arith.constant 9.99999974E-6 : f32
    %100 = vector.broadcast %cst_45 : f32 to vector<16x1xf32>
    %101 = arith.addf %99, %100 : vector<16x1xf32>
    %102 = math.rsqrt %101 : vector<16x1xf32>
    %103 = vector.broadcast %102 : vector<16x1xf32> to vector<16x32xf32>
    %104 = arith.mulf %94, %103 : vector<16x32xf32>
    %105 = vector.broadcast %86 : vector<1x32xf32> to vector<16x32xf32>
    %106 = arith.mulf %104, %105 : vector<16x32xf32>
    %107 = vector.broadcast %88 : vector<1x32xf32> to vector<16x32xf32>
    %108 = arith.addf %106, %107 : vector<16x32xf32>
    %c0_46 = arith.constant 0 : index
    %c0_47 = arith.constant 0 : index
    %c0_48 = arith.constant 0 : index
    %109 = vector.load %arg7[%c0_46, %c0_47, %c0_48] : memref<2x32x64xf32, #tpu.memory_space<vmem>>, vector<1x32x64xf32>
    %110 = vector.shape_cast %109 : vector<1x32x64xf32> to vector<32x64xf32>
    %c0_49 = arith.constant 0 : index
    %c0_50 = arith.constant 0 : index
    %c0_51 = arith.constant 0 : index
    %111 = vector.load %arg8[%c0_49, %c0_50, %c0_51] : memref<2x1x64xf32, #tpu.memory_space<vmem>>, vector<1x1x64xf32>
    %112 = vector.shape_cast %111 : vector<1x1x64xf32> to vector<1x64xf32>
    %c0_52 = arith.constant 0 : index
    %c0_53 = arith.constant 0 : index
    %c0_54 = arith.constant 0 : index
    %113 = vector.load %arg9[%c0_52, %c0_53, %c0_54] : memref<2x64x32xf32, #tpu.memory_space<vmem>>, vector<1x64x32xf32>
    %114 = vector.shape_cast %113 : vector<1x64x32xf32> to vector<64x32xf32>
    %c0_55 = arith.constant 0 : index
    %c0_56 = arith.constant 0 : index
    %c0_57 = arith.constant 0 : index
    %115 = vector.load %arg10[%c0_55, %c0_56, %c0_57] : memref<2x1x32xf32, #tpu.memory_space<vmem>>, vector<1x1x32xf32>
    %116 = vector.shape_cast %115 : vector<1x1x32xf32> to vector<1x32xf32>
    %cst_58 = arith.constant dense<0.000000e+00> : vector<16x64xf32>
    %117 = tpu.matmul %108, %110, %cst_58 {dimension_numbers = #tpu.dot_dimension_numbers<[1], [0], [0], [1], [0, 0, 1, 1], [], []>} : vector<16x32xf32>, vector<32x64xf32>, vector<16x64xf32> -> vector<16x64xf32>
    %118 = vector.broadcast %112 : vector<1x64xf32> to vector<16x64xf32>
    %119 = arith.addf %117, %118 : vector<16x64xf32>
    %cst_59 = arith.constant 0.000000e+00 : f32
    %120 = vector.broadcast %cst_59 : f32 to vector<16x64xf32>
    %121 = arith.maximumf %119, %120 : vector<16x64xf32>
    %cst_60 = arith.constant dense<0.000000e+00> : vector<16x32xf32>
    %122 = tpu.matmul %121, %114, %cst_60 {dimension_numbers = #tpu.dot_dimension_numbers<[1], [0], [0], [1], [0, 0, 1, 1], [], []>} : vector<16x64xf32>, vector<64x32xf32>, vector<16x32xf32> -> vector<16x32xf32>
    %123 = vector.broadcast %116 : vector<1x32xf32> to vector<16x32xf32>
    %124 = arith.addf %122, %123 : vector<16x32xf32>
    %125 = arith.addf %108, %124 : vector<16x32xf32>
    %c0_61 = arith.constant 0 : index
    %c0_62 = arith.constant 0 : index
    %c0_63 = arith.constant 0 : index
    %126 = vector.load %arg13[%c0_61, %c0_62, %c0_63] : memref<2x1x32xf32, #tpu.memory_space<vmem>>, vector<1x1x32xf32>
    %127 = vector.shape_cast %126 : vector<1x1x32xf32> to vector<1x32xf32>
    %c0_64 = arith.constant 0 : index
    %c0_65 = arith.constant 0 : index
    %c0_66 = arith.constant 0 : index
    %128 = vector.load %arg14[%c0_64, %c0_65, %c0_66] : memref<2x1x32xf32, #tpu.memory_space<vmem>>, vector<1x1x32xf32>
    %129 = vector.shape_cast %128 : vector<1x1x32xf32> to vector<1x32xf32>
    %cst_67 = arith.constant dense<0.000000e+00> : vector<16xf32>
    %130 = vector.multi_reduction <add>, %125, %cst_67 [1] : vector<16x32xf32> to vector<16xf32>
    %131 = vector.shape_cast %130 : vector<16xf32> to vector<16x1xf32>
    %cst_68 = arith.constant 3.200000e+01 : f32
    %132 = vector.broadcast %cst_68 : f32 to vector<16x1xf32>
    %133 = arith.divf %131, %132 : vector<16x1xf32>
    %134 = vector.broadcast %133 : vector<16x1xf32> to vector<16x32xf32>
    %135 = arith.subf %125, %134 : vector<16x32xf32>
    %136 = arith.mulf %135, %135 : vector<16x32xf32>
    %cst_69 = arith.constant dense<0.000000e+00> : vector<16xf32>
    %137 = vector.multi_reduction <add>, %136, %cst_69 [1] : vector<16x32xf32> to vector<16xf32>
    %138 = vector.shape_cast %137 : vector<16xf32> to vector<16x1xf32>
    %cst_70 = arith.constant 3.200000e+01 : f32
    %139 = vector.broadcast %cst_70 : f32 to vector<16x1xf32>
    %140 = arith.divf %138, %139 : vector<16x1xf32>
    %cst_71 = arith.constant 9.99999974E-6 : f32
    %141 = vector.broadcast %cst_71 : f32 to vector<16x1xf32>
    %142 = arith.addf %140, %141 : vector<16x1xf32>
    %143 = math.rsqrt %142 : vector<16x1xf32>
    %144 = vector.broadcast %143 : vector<16x1xf32> to vector<16x32xf32>
    %145 = arith.mulf %135, %144 : vector<16x32xf32>
    %146 = vector.broadcast %127 : vector<1x32xf32> to vector<16x32xf32>
    %147 = arith.mulf %145, %146 : vector<16x32xf32>
    %148 = vector.broadcast %129 : vector<1x32xf32> to vector<16x32xf32>
    %149 = arith.addf %147, %148 : vector<16x32xf32>
    %c1 = arith.constant 1 : index
    %c0_72 = arith.constant 0 : index
    %c0_73 = arith.constant 0 : index
    %150 = vector.load %arg3[%c1, %c0_72, %c0_73] : memref<2x32x96xf32, #tpu.memory_space<vmem>>, vector<1x32x96xf32>
    %151 = vector.shape_cast %150 : vector<1x32x96xf32> to vector<32x96xf32>
    %c1_74 = arith.constant 1 : index
    %c0_75 = arith.constant 0 : index
    %c0_76 = arith.constant 0 : index
    %152 = vector.load %arg4[%c1_74, %c0_75, %c0_76] : memref<2x1x96xf32, #tpu.memory_space<vmem>>, vector<1x1x96xf32>
    %153 = vector.shape_cast %152 : vector<1x1x96xf32> to vector<1x96xf32>
    %c1_77 = arith.constant 1 : index
    %c0_78 = arith.constant 0 : index
    %c0_79 = arith.constant 0 : index
    %154 = vector.load %arg5[%c1_77, %c0_78, %c0_79] : memref<2x32x32xf32, #tpu.memory_space<vmem>>, vector<1x32x32xf32>
    %155 = vector.shape_cast %154 : vector<1x32x32xf32> to vector<32x32xf32>
    %c1_80 = arith.constant 1 : index
    %c0_81 = arith.constant 0 : index
    %c0_82 = arith.constant 0 : index
    %156 = vector.load %arg6[%c1_80, %c0_81, %c0_82] : memref<2x1x32xf32, #tpu.memory_space<vmem>>, vector<1x1x32xf32>
    %157 = vector.shape_cast %156 : vector<1x1x32xf32> to vector<1x32xf32>
    %cst_83 = arith.constant dense<0.000000e+00> : vector<16x96xf32>
    %158 = tpu.matmul %149, %151, %cst_83 {dimension_numbers = #tpu.dot_dimension_numbers<[1], [0], [0], [1], [0, 0, 1, 1], [], []>} : vector<16x32xf32>, vector<32x96xf32>, vector<16x96xf32> -> vector<16x96xf32>
    %159 = vector.broadcast %153 : vector<1x96xf32> to vector<16x96xf32>
    %160 = arith.addf %158, %159 : vector<16x96xf32>
    %161 = vector.extract_strided_slice %160 {offsets = [0, 0], sizes = [16, 32], strides = [1, 1]} : vector<16x96xf32> to vector<16x32xf32>
    %162 = vector.extract_strided_slice %160 {offsets = [0, 32], sizes = [16, 32], strides = [1, 1]} : vector<16x96xf32> to vector<16x32xf32>
    %163 = vector.extract_strided_slice %160 {offsets = [0, 64], sizes = [16, 32], strides = [1, 1]} : vector<16x96xf32> to vector<16x32xf32>
    %164 = vector.extract_strided_slice %161 {offsets = [0, 0], sizes = [16, 8], strides = [1, 1]} : vector<16x32xf32> to vector<16x8xf32>
    %165 = vector.extract_strided_slice %162 {offsets = [0, 0], sizes = [16, 8], strides = [1, 1]} : vector<16x32xf32> to vector<16x8xf32>
    %166 = vector.extract_strided_slice %163 {offsets = [0, 0], sizes = [16, 8], strides = [1, 1]} : vector<16x32xf32> to vector<16x8xf32>
    "tpu.trace_start"() <{level = 10 : i32, message = "qd,kd->qk"}> : () -> ()
    %cst_84 = arith.constant dense<0.000000e+00> : vector<16x16xf32>
    %167 = tpu.matmul %164, %165, %cst_84 {dimension_numbers = #tpu.dot_dimension_numbers<[1], [1], [0], [0], [0, 0, 1, 0], [], []>} : vector<16x8xf32>, vector<16x8xf32>, vector<16x16xf32> -> vector<16x16xf32>
    "tpu.trace_stop"() : () -> ()
    %cst_85 = arith.constant 0.353553385 : f32
    %168 = vector.broadcast %cst_85 : f32 to vector<16x16xf32>
    %169 = arith.mulf %167, %168 : vector<16x16xf32>
    %cst_86 = arith.constant dense<0xFF800000> : vector<16xf32>
    %170 = vector.multi_reduction <maximumf>, %169, %cst_86 [1] : vector<16x16xf32> to vector<16xf32>
    %171 = vector.shape_cast %170 : vector<16xf32> to vector<16x1xf32>
    %172 = vector.broadcast %171 : vector<16x1xf32> to vector<16x16xf32>
    %173 = arith.subf %169, %172 : vector<16x16xf32>
    %174 = math.exp %173 : vector<16x16xf32>
    %cst_87 = arith.constant dense<0.000000e+00> : vector<16xf32>
    %175 = vector.multi_reduction <add>, %174, %cst_87 [1] : vector<16x16xf32> to vector<16xf32>
    %176 = vector.shape_cast %175 : vector<16xf32> to vector<16x1xf32>
    %177 = vector.broadcast %176 : vector<16x1xf32> to vector<16x16xf32>
    %178 = arith.divf %174, %177 : vector<16x16xf32>
    %cst_88 = arith.constant dense<0.000000e+00> : vector<16x8xf32>
    %179 = tpu.matmul %178, %166, %cst_88 {dimension_numbers = #tpu.dot_dimension_numbers<[1], [0], [0], [1], [0, 0, 1, 1], [], []>} : vector<16x16xf32>, vector<16x8xf32>, vector<16x8xf32> -> vector<16x8xf32>
    %180 = vector.extract_strided_slice %161 {offsets = [0, 8], sizes = [16, 8], strides = [1, 1]} : vector<16x32xf32> to vector<16x8xf32>
    %181 = vector.extract_strided_slice %162 {offsets = [0, 8], sizes = [16, 8], strides = [1, 1]} : vector<16x32xf32> to vector<16x8xf32>
    %182 = vector.extract_strided_slice %163 {offsets = [0, 8], sizes = [16, 8], strides = [1, 1]} : vector<16x32xf32> to vector<16x8xf32>
    "tpu.trace_start"() <{level = 10 : i32, message = "qd,kd->qk"}> : () -> ()
    %cst_89 = arith.constant dense<0.000000e+00> : vector<16x16xf32>
    %183 = tpu.matmul %180, %181, %cst_89 {dimension_numbers = #tpu.dot_dimension_numbers<[1], [1], [0], [0], [0, 0, 1, 0], [], []>} : vector<16x8xf32>, vector<16x8xf32>, vector<16x16xf32> -> vector<16x16xf32>
    "tpu.trace_stop"() : () -> ()
    %cst_90 = arith.constant 0.353553385 : f32
    %184 = vector.broadcast %cst_90 : f32 to vector<16x16xf32>
    %185 = arith.mulf %183, %184 : vector<16x16xf32>
    %cst_91 = arith.constant dense<0xFF800000> : vector<16xf32>
    %186 = vector.multi_reduction <maximumf>, %185, %cst_91 [1] : vector<16x16xf32> to vector<16xf32>
    %187 = vector.shape_cast %186 : vector<16xf32> to vector<16x1xf32>
    %188 = vector.broadcast %187 : vector<16x1xf32> to vector<16x16xf32>
    %189 = arith.subf %185, %188 : vector<16x16xf32>
    %190 = math.exp %189 : vector<16x16xf32>
    %cst_92 = arith.constant dense<0.000000e+00> : vector<16xf32>
    %191 = vector.multi_reduction <add>, %190, %cst_92 [1] : vector<16x16xf32> to vector<16xf32>
    %192 = vector.shape_cast %191 : vector<16xf32> to vector<16x1xf32>
    %193 = vector.broadcast %192 : vector<16x1xf32> to vector<16x16xf32>
    %194 = arith.divf %190, %193 : vector<16x16xf32>
    %cst_93 = arith.constant dense<0.000000e+00> : vector<16x8xf32>
    %195 = tpu.matmul %194, %182, %cst_93 {dimension_numbers = #tpu.dot_dimension_numbers<[1], [0], [0], [1], [0, 0, 1, 1], [], []>} : vector<16x16xf32>, vector<16x8xf32>, vector<16x8xf32> -> vector<16x8xf32>
    %196 = vector.extract_strided_slice %161 {offsets = [0, 16], sizes = [16, 8], strides = [1, 1]} : vector<16x32xf32> to vector<16x8xf32>
    %197 = vector.extract_strided_slice %162 {offsets = [0, 16], sizes = [16, 8], strides = [1, 1]} : vector<16x32xf32> to vector<16x8xf32>
    %198 = vector.extract_strided_slice %163 {offsets = [0, 16], sizes = [16, 8], strides = [1, 1]} : vector<16x32xf32> to vector<16x8xf32>
    "tpu.trace_start"() <{level = 10 : i32, message = "qd,kd->qk"}> : () -> ()
    %cst_94 = arith.constant dense<0.000000e+00> : vector<16x16xf32>
    %199 = tpu.matmul %196, %197, %cst_94 {dimension_numbers = #tpu.dot_dimension_numbers<[1], [1], [0], [0], [0, 0, 1, 0], [], []>} : vector<16x8xf32>, vector<16x8xf32>, vector<16x16xf32> -> vector<16x16xf32>
    "tpu.trace_stop"() : () -> ()
    %cst_95 = arith.constant 0.353553385 : f32
    %200 = vector.broadcast %cst_95 : f32 to vector<16x16xf32>
    %201 = arith.mulf %199, %200 : vector<16x16xf32>
    %cst_96 = arith.constant dense<0xFF800000> : vector<16xf32>
    %202 = vector.multi_reduction <maximumf>, %201, %cst_96 [1] : vector<16x16xf32> to vector<16xf32>
    %203 = vector.shape_cast %202 : vector<16xf32> to vector<16x1xf32>
    %204 = vector.broadcast %203 : vector<16x1xf32> to vector<16x16xf32>
    %205 = arith.subf %201, %204 : vector<16x16xf32>
    %206 = math.exp %205 : vector<16x16xf32>
    %cst_97 = arith.constant dense<0.000000e+00> : vector<16xf32>
    %207 = vector.multi_reduction <add>, %206, %cst_97 [1] : vector<16x16xf32> to vector<16xf32>
    %208 = vector.shape_cast %207 : vector<16xf32> to vector<16x1xf32>
    %209 = vector.broadcast %208 : vector<16x1xf32> to vector<16x16xf32>
    %210 = arith.divf %206, %209 : vector<16x16xf32>
    %cst_98 = arith.constant dense<0.000000e+00> : vector<16x8xf32>
    %211 = tpu.matmul %210, %198, %cst_98 {dimension_numbers = #tpu.dot_dimension_numbers<[1], [0], [0], [1], [0, 0, 1, 1], [], []>} : vector<16x16xf32>, vector<16x8xf32>, vector<16x8xf32> -> vector<16x8xf32>
    %212 = vector.extract_strided_slice %161 {offsets = [0, 24], sizes = [16, 8], strides = [1, 1]} : vector<16x32xf32> to vector<16x8xf32>
    %213 = vector.extract_strided_slice %162 {offsets = [0, 24], sizes = [16, 8], strides = [1, 1]} : vector<16x32xf32> to vector<16x8xf32>
    %214 = vector.extract_strided_slice %163 {offsets = [0, 24], sizes = [16, 8], strides = [1, 1]} : vector<16x32xf32> to vector<16x8xf32>
    "tpu.trace_start"() <{level = 10 : i32, message = "qd,kd->qk"}> : () -> ()
    %cst_99 = arith.constant dense<0.000000e+00> : vector<16x16xf32>
    %215 = tpu.matmul %212, %213, %cst_99 {dimension_numbers = #tpu.dot_dimension_numbers<[1], [1], [0], [0], [0, 0, 1, 0], [], []>} : vector<16x8xf32>, vector<16x8xf32>, vector<16x16xf32> -> vector<16x16xf32>
    "tpu.trace_stop"() : () -> ()
    %cst_100 = arith.constant 0.353553385 : f32
    %216 = vector.broadcast %cst_100 : f32 to vector<16x16xf32>
    %217 = arith.mulf %215, %216 : vector<16x16xf32>
    %cst_101 = arith.constant dense<0xFF800000> : vector<16xf32>
    %218 = vector.multi_reduction <maximumf>, %217, %cst_101 [1] : vector<16x16xf32> to vector<16xf32>
    %219 = vector.shape_cast %218 : vector<16xf32> to vector<16x1xf32>
    %220 = vector.broadcast %219 : vector<16x1xf32> to vector<16x16xf32>
    %221 = arith.subf %217, %220 : vector<16x16xf32>
    %222 = math.exp %221 : vector<16x16xf32>
    %cst_102 = arith.constant dense<0.000000e+00> : vector<16xf32>
    %223 = vector.multi_reduction <add>, %222, %cst_102 [1] : vector<16x16xf32> to vector<16xf32>
    %224 = vector.shape_cast %223 : vector<16xf32> to vector<16x1xf32>
    %225 = vector.broadcast %224 : vector<16x1xf32> to vector<16x16xf32>
    %226 = arith.divf %222, %225 : vector<16x16xf32>
    %cst_103 = arith.constant dense<0.000000e+00> : vector<16x8xf32>
    %227 = tpu.matmul %226, %214, %cst_103 {dimension_numbers = #tpu.dot_dimension_numbers<[1], [0], [0], [1], [0, 0, 1, 1], [], []>} : vector<16x16xf32>, vector<16x8xf32>, vector<16x8xf32> -> vector<16x8xf32>
    %228 = tpu.concatenate %179, %195, %211, %227 in 1 : vector<16x8xf32>, vector<16x8xf32>, vector<16x8xf32>, vector<16x8xf32> -> vector<16x32xf32>
    %cst_104 = arith.constant dense<0.000000e+00> : vector<16x32xf32>
    %229 = tpu.matmul %228, %155, %cst_104 {dimension_numbers = #tpu.dot_dimension_numbers<[1], [0], [0], [1], [0, 0, 1, 1], [], []>} : vector<16x32xf32>, vector<32x32xf32>, vector<16x32xf32> -> vector<16x32xf32>
    %230 = vector.broadcast %157 : vector<1x32xf32> to vector<16x32xf32>
    %231 = arith.addf %229, %230 : vector<16x32xf32>
    %232 = arith.addf %149, %231 : vector<16x32xf32>
    %c1_105 = arith.constant 1 : index
    %c0_106 = arith.constant 0 : index
    %c0_107 = arith.constant 0 : index
    %233 = vector.load %arg11[%c1_105, %c0_106, %c0_107] : memref<2x1x32xf32, #tpu.memory_space<vmem>>, vector<1x1x32xf32>
    %234 = vector.shape_cast %233 : vector<1x1x32xf32> to vector<1x32xf32>
    %c1_108 = arith.constant 1 : index
    %c0_109 = arith.constant 0 : index
    %c0_110 = arith.constant 0 : index
    %235 = vector.load %arg12[%c1_108, %c0_109, %c0_110] : memref<2x1x32xf32, #tpu.memory_space<vmem>>, vector<1x1x32xf32>
    %236 = vector.shape_cast %235 : vector<1x1x32xf32> to vector<1x32xf32>
    %cst_111 = arith.constant dense<0.000000e+00> : vector<16xf32>
    %237 = vector.multi_reduction <add>, %232, %cst_111 [1] : vector<16x32xf32> to vector<16xf32>
    %238 = vector.shape_cast %237 : vector<16xf32> to vector<16x1xf32>
    %cst_112 = arith.constant 3.200000e+01 : f32
    %239 = vector.broadcast %cst_112 : f32 to vector<16x1xf32>
    %240 = arith.divf %238, %239 : vector<16x1xf32>
    %241 = vector.broadcast %240 : vector<16x1xf32> to vector<16x32xf32>
    %242 = arith.subf %232, %241 : vector<16x32xf32>
    %243 = arith.mulf %242, %242 : vector<16x32xf32>
    %cst_113 = arith.constant dense<0.000000e+00> : vector<16xf32>
    %244 = vector.multi_reduction <add>, %243, %cst_113 [1] : vector<16x32xf32> to vector<16xf32>
    %245 = vector.shape_cast %244 : vector<16xf32> to vector<16x1xf32>
    %cst_114 = arith.constant 3.200000e+01 : f32
    %246 = vector.broadcast %cst_114 : f32 to vector<16x1xf32>
    %247 = arith.divf %245, %246 : vector<16x1xf32>
    %cst_115 = arith.constant 9.99999974E-6 : f32
    %248 = vector.broadcast %cst_115 : f32 to vector<16x1xf32>
    %249 = arith.addf %247, %248 : vector<16x1xf32>
    %250 = math.rsqrt %249 : vector<16x1xf32>
    %251 = vector.broadcast %250 : vector<16x1xf32> to vector<16x32xf32>
    %252 = arith.mulf %242, %251 : vector<16x32xf32>
    %253 = vector.broadcast %234 : vector<1x32xf32> to vector<16x32xf32>
    %254 = arith.mulf %252, %253 : vector<16x32xf32>
    %255 = vector.broadcast %236 : vector<1x32xf32> to vector<16x32xf32>
    %256 = arith.addf %254, %255 : vector<16x32xf32>
    %c1_116 = arith.constant 1 : index
    %c0_117 = arith.constant 0 : index
    %c0_118 = arith.constant 0 : index
    %257 = vector.load %arg7[%c1_116, %c0_117, %c0_118] : memref<2x32x64xf32, #tpu.memory_space<vmem>>, vector<1x32x64xf32>
    %258 = vector.shape_cast %257 : vector<1x32x64xf32> to vector<32x64xf32>
    %c1_119 = arith.constant 1 : index
    %c0_120 = arith.constant 0 : index
    %c0_121 = arith.constant 0 : index
    %259 = vector.load %arg8[%c1_119, %c0_120, %c0_121] : memref<2x1x64xf32, #tpu.memory_space<vmem>>, vector<1x1x64xf32>
    %260 = vector.shape_cast %259 : vector<1x1x64xf32> to vector<1x64xf32>
    %c1_122 = arith.constant 1 : index
    %c0_123 = arith.constant 0 : index
    %c0_124 = arith.constant 0 : index
    %261 = vector.load %arg9[%c1_122, %c0_123, %c0_124] : memref<2x64x32xf32, #tpu.memory_space<vmem>>, vector<1x64x32xf32>
    %262 = vector.shape_cast %261 : vector<1x64x32xf32> to vector<64x32xf32>
    %c1_125 = arith.constant 1 : index
    %c0_126 = arith.constant 0 : index
    %c0_127 = arith.constant 0 : index
    %263 = vector.load %arg10[%c1_125, %c0_126, %c0_127] : memref<2x1x32xf32, #tpu.memory_space<vmem>>, vector<1x1x32xf32>
    %264 = vector.shape_cast %263 : vector<1x1x32xf32> to vector<1x32xf32>
    %cst_128 = arith.constant dense<0.000000e+00> : vector<16x64xf32>
    %265 = tpu.matmul %256, %258, %cst_128 {dimension_numbers = #tpu.dot_dimension_numbers<[1], [0], [0], [1], [0, 0, 1, 1], [], []>} : vector<16x32xf32>, vector<32x64xf32>, vector<16x64xf32> -> vector<16x64xf32>
    %266 = vector.broadcast %260 : vector<1x64xf32> to vector<16x64xf32>
    %267 = arith.addf %265, %266 : vector<16x64xf32>
    %cst_129 = arith.constant 0.000000e+00 : f32
    %268 = vector.broadcast %cst_129 : f32 to vector<16x64xf32>
    %269 = arith.maximumf %267, %268 : vector<16x64xf32>
    %cst_130 = arith.constant dense<0.000000e+00> : vector<16x32xf32>
    %270 = tpu.matmul %269, %262, %cst_130 {dimension_numbers = #tpu.dot_dimension_numbers<[1], [0], [0], [1], [0, 0, 1, 1], [], []>} : vector<16x64xf32>, vector<64x32xf32>, vector<16x32xf32> -> vector<16x32xf32>
    %271 = vector.broadcast %264 : vector<1x32xf32> to vector<16x32xf32>
    %272 = arith.addf %270, %271 : vector<16x32xf32>
    %273 = arith.addf %256, %272 : vector<16x32xf32>
    %c1_131 = arith.constant 1 : index
    %c0_132 = arith.constant 0 : index
    %c0_133 = arith.constant 0 : index
    %274 = vector.load %arg13[%c1_131, %c0_132, %c0_133] : memref<2x1x32xf32, #tpu.memory_space<vmem>>, vector<1x1x32xf32>
    %275 = vector.shape_cast %274 : vector<1x1x32xf32> to vector<1x32xf32>
    %c1_134 = arith.constant 1 : index
    %c0_135 = arith.constant 0 : index
    %c0_136 = arith.constant 0 : index
    %276 = vector.load %arg14[%c1_134, %c0_135, %c0_136] : memref<2x1x32xf32, #tpu.memory_space<vmem>>, vector<1x1x32xf32>
    %277 = vector.shape_cast %276 : vector<1x1x32xf32> to vector<1x32xf32>
    %cst_137 = arith.constant dense<0.000000e+00> : vector<16xf32>
    %278 = vector.multi_reduction <add>, %273, %cst_137 [1] : vector<16x32xf32> to vector<16xf32>
    %279 = vector.shape_cast %278 : vector<16xf32> to vector<16x1xf32>
    %cst_138 = arith.constant 3.200000e+01 : f32
    %280 = vector.broadcast %cst_138 : f32 to vector<16x1xf32>
    %281 = arith.divf %279, %280 : vector<16x1xf32>
    %282 = vector.broadcast %281 : vector<16x1xf32> to vector<16x32xf32>
    %283 = arith.subf %273, %282 : vector<16x32xf32>
    %284 = arith.mulf %283, %283 : vector<16x32xf32>
    %cst_139 = arith.constant dense<0.000000e+00> : vector<16xf32>
    %285 = vector.multi_reduction <add>, %284, %cst_139 [1] : vector<16x32xf32> to vector<16xf32>
    %286 = vector.shape_cast %285 : vector<16xf32> to vector<16x1xf32>
    %cst_140 = arith.constant 3.200000e+01 : f32
    %287 = vector.broadcast %cst_140 : f32 to vector<16x1xf32>
    %288 = arith.divf %286, %287 : vector<16x1xf32>
    %cst_141 = arith.constant 9.99999974E-6 : f32
    %289 = vector.broadcast %cst_141 : f32 to vector<16x1xf32>
    %290 = arith.addf %288, %289 : vector<16x1xf32>
    %291 = math.rsqrt %290 : vector<16x1xf32>
    %292 = vector.broadcast %291 : vector<16x1xf32> to vector<16x32xf32>
    %293 = arith.mulf %283, %292 : vector<16x32xf32>
    %294 = vector.broadcast %275 : vector<1x32xf32> to vector<16x32xf32>
    %295 = arith.mulf %293, %294 : vector<16x32xf32>
    %296 = vector.broadcast %277 : vector<1x32xf32> to vector<16x32xf32>
    %297 = arith.addf %295, %296 : vector<16x32xf32>
    %c0_142 = arith.constant 0 : index
    %c0_143 = arith.constant 0 : index
    %298 = vector.load %arg33[%c0_142, %c0_143] : memref<1x32xf32, #tpu.memory_space<vmem>>, vector<1x32xf32>
    %c0_144 = arith.constant 0 : index
    %c0_145 = arith.constant 0 : index
    %299 = vector.load %arg34[%c0_144, %c0_145] : memref<1x32xf32, #tpu.memory_space<vmem>>, vector<1x32xf32>
    %cst_146 = arith.constant dense<0.000000e+00> : vector<16xf32>
    %300 = vector.multi_reduction <add>, %297, %cst_146 [1] : vector<16x32xf32> to vector<16xf32>
    %301 = vector.shape_cast %300 : vector<16xf32> to vector<16x1xf32>
    %cst_147 = arith.constant 3.200000e+01 : f32
    %302 = vector.broadcast %cst_147 : f32 to vector<16x1xf32>
    %303 = arith.divf %301, %302 : vector<16x1xf32>
    %304 = vector.broadcast %303 : vector<16x1xf32> to vector<16x32xf32>
    %305 = arith.subf %297, %304 : vector<16x32xf32>
    %306 = arith.mulf %305, %305 : vector<16x32xf32>
    %cst_148 = arith.constant dense<0.000000e+00> : vector<16xf32>
    %307 = vector.multi_reduction <add>, %306, %cst_148 [1] : vector<16x32xf32> to vector<16xf32>
    %308 = vector.shape_cast %307 : vector<16xf32> to vector<16x1xf32>
    %cst_149 = arith.constant 3.200000e+01 : f32
    %309 = vector.broadcast %cst_149 : f32 to vector<16x1xf32>
    %310 = arith.divf %308, %309 : vector<16x1xf32>
    %cst_150 = arith.constant 9.99999974E-6 : f32
    %311 = vector.broadcast %cst_150 : f32 to vector<16x1xf32>
    %312 = arith.addf %310, %311 : vector<16x1xf32>
    %313 = math.rsqrt %312 : vector<16x1xf32>
    %314 = vector.broadcast %313 : vector<16x1xf32> to vector<16x32xf32>
    %315 = arith.mulf %305, %314 : vector<16x32xf32>
    %316 = vector.broadcast %298 : vector<1x32xf32> to vector<16x32xf32>
    %317 = arith.mulf %315, %316 : vector<16x32xf32>
    %318 = vector.broadcast %299 : vector<1x32xf32> to vector<16x32xf32>
    %319 = arith.addf %317, %318 : vector<16x32xf32>
    %cst_151 = arith.constant dense<0.000000e+00> : vector<32xf32>
    %320 = vector.multi_reduction <add>, %319, %cst_151 [0] : vector<16x32xf32> to vector<32xf32>
    %321 = vector.shape_cast %320 : vector<32xf32> to vector<1x32xf32>
    %cst_152 = arith.constant 1.600000e+01 : f32
    %322 = vector.broadcast %cst_152 : f32 to vector<1x32xf32>
    %323 = arith.divf %321, %322 : vector<1x32xf32>
    %324 = tpu.iota {dimensions = array<i32: 0>} : vector<8x8xi32>
    %325 = tpu.iota {dimensions = array<i32: 1>} : vector<8x8xi32>
    %326 = arith.cmpi sge, %324, %325 : vector<8x8xi32>
    %cst_153 = arith.constant 0.000000e+00 : f32
    %cst_154 = arith.constant -1.000000e+30 : f32
    %327 = vector.broadcast %cst_153 : f32 to vector<8x8xf32>
    %328 = vector.broadcast %cst_154 : f32 to vector<8x8xf32>
    %329 = arith.select %326, %327, %328 : vector<8x8xi1>, vector<8x8xf32>
    %c0_155 = arith.constant 0 : index
    %c0_156 = arith.constant 0 : index
    %c0_157 = arith.constant 0 : index
    %330 = vector.load %arg2[%c0_155, %c0_156, %c0_157] : memref<1x8x32xf32, #tpu.memory_space<vmem>>, vector<1x8x32xf32>
    %331 = vector.shape_cast %330 : vector<1x8x32xf32> to vector<8x32xf32>
    %c0_158 = arith.constant 0 : index
    %c0_159 = arith.constant 0 : index
    %c0_160 = arith.constant 0 : index
    %332 = vector.load %arg15[%c0_158, %c0_159, %c0_160] : memref<2x32x96xf32, #tpu.memory_space<vmem>>, vector<1x32x96xf32>
    %333 = vector.shape_cast %332 : vector<1x32x96xf32> to vector<32x96xf32>
    %c0_161 = arith.constant 0 : index
    %c0_162 = arith.constant 0 : index
    %c0_163 = arith.constant 0 : index
    %334 = vector.load %arg16[%c0_161, %c0_162, %c0_163] : memref<2x1x96xf32, #tpu.memory_space<vmem>>, vector<1x1x96xf32>
    %335 = vector.shape_cast %334 : vector<1x1x96xf32> to vector<1x96xf32>
    %c0_164 = arith.constant 0 : index
    %c0_165 = arith.constant 0 : index
    %c0_166 = arith.constant 0 : index
    %336 = vector.load %arg17[%c0_164, %c0_165, %c0_166] : memref<2x32x32xf32, #tpu.memory_space<vmem>>, vector<1x32x32xf32>
    %337 = vector.shape_cast %336 : vector<1x32x32xf32> to vector<32x32xf32>
    %c0_167 = arith.constant 0 : index
    %c0_168 = arith.constant 0 : index
    %c0_169 = arith.constant 0 : index
    %338 = vector.load %arg18[%c0_167, %c0_168, %c0_169] : memref<2x1x32xf32, #tpu.memory_space<vmem>>, vector<1x1x32xf32>
    %339 = vector.shape_cast %338 : vector<1x1x32xf32> to vector<1x32xf32>
    %cst_170 = arith.constant dense<0.000000e+00> : vector<8x96xf32>
    %340 = tpu.matmul %331, %333, %cst_170 {dimension_numbers = #tpu.dot_dimension_numbers<[1], [0], [0], [1], [0, 0, 1, 1], [], []>} : vector<8x32xf32>, vector<32x96xf32>, vector<8x96xf32> -> vector<8x96xf32>
    %341 = vector.broadcast %335 : vector<1x96xf32> to vector<8x96xf32>
    %342 = arith.addf %340, %341 : vector<8x96xf32>
    %343 = vector.extract_strided_slice %342 {offsets = [0, 0], sizes = [8, 32], strides = [1, 1]} : vector<8x96xf32> to vector<8x32xf32>
    %344 = vector.extract_strided_slice %342 {offsets = [0, 32], sizes = [8, 32], strides = [1, 1]} : vector<8x96xf32> to vector<8x32xf32>
    %345 = vector.extract_strided_slice %342 {offsets = [0, 64], sizes = [8, 32], strides = [1, 1]} : vector<8x96xf32> to vector<8x32xf32>
    %346 = vector.extract_strided_slice %343 {offsets = [0, 0], sizes = [8, 8], strides = [1, 1]} : vector<8x32xf32> to vector<8x8xf32>
    %347 = vector.extract_strided_slice %344 {offsets = [0, 0], sizes = [8, 8], strides = [1, 1]} : vector<8x32xf32> to vector<8x8xf32>
    %348 = vector.extract_strided_slice %345 {offsets = [0, 0], sizes = [8, 8], strides = [1, 1]} : vector<8x32xf32> to vector<8x8xf32>
    "tpu.trace_start"() <{level = 10 : i32, message = "qd,kd->qk"}> : () -> ()
    %cst_171 = arith.constant dense<0.000000e+00> : vector<8x8xf32>
    %349 = tpu.matmul %346, %347, %cst_171 {dimension_numbers = #tpu.dot_dimension_numbers<[1], [1], [0], [0], [0, 0, 1, 0], [], []>} : vector<8x8xf32>, vector<8x8xf32>, vector<8x8xf32> -> vector<8x8xf32>
    "tpu.trace_stop"() : () -> ()
    %cst_172 = arith.constant 0.353553385 : f32
    %350 = vector.broadcast %cst_172 : f32 to vector<8x8xf32>
    %351 = arith.mulf %349, %350 : vector<8x8xf32>
    %352 = arith.addf %351, %329 : vector<8x8xf32>
    %cst_173 = arith.constant dense<0xFF800000> : vector<8xf32>
    %353 = vector.multi_reduction <maximumf>, %352, %cst_173 [1] : vector<8x8xf32> to vector<8xf32>
    %354 = vector.shape_cast %353 : vector<8xf32> to vector<8x1xf32>
    %355 = vector.broadcast %354 : vector<8x1xf32> to vector<8x8xf32>
    %356 = arith.subf %352, %355 : vector<8x8xf32>
    %357 = math.exp %356 : vector<8x8xf32>
    %cst_174 = arith.constant dense<0.000000e+00> : vector<8xf32>
    %358 = vector.multi_reduction <add>, %357, %cst_174 [1] : vector<8x8xf32> to vector<8xf32>
    %359 = vector.shape_cast %358 : vector<8xf32> to vector<8x1xf32>
    %360 = vector.broadcast %359 : vector<8x1xf32> to vector<8x8xf32>
    %361 = arith.divf %357, %360 : vector<8x8xf32>
    %cst_175 = arith.constant dense<0.000000e+00> : vector<8x8xf32>
    %362 = tpu.matmul %361, %348, %cst_175 {dimension_numbers = #tpu.dot_dimension_numbers<[1], [0], [0], [1], [0, 0, 1, 1], [], []>} : vector<8x8xf32>, vector<8x8xf32>, vector<8x8xf32> -> vector<8x8xf32>
    %363 = vector.extract_strided_slice %343 {offsets = [0, 8], sizes = [8, 8], strides = [1, 1]} : vector<8x32xf32> to vector<8x8xf32>
    %364 = vector.extract_strided_slice %344 {offsets = [0, 8], sizes = [8, 8], strides = [1, 1]} : vector<8x32xf32> to vector<8x8xf32>
    %365 = vector.extract_strided_slice %345 {offsets = [0, 8], sizes = [8, 8], strides = [1, 1]} : vector<8x32xf32> to vector<8x8xf32>
    "tpu.trace_start"() <{level = 10 : i32, message = "qd,kd->qk"}> : () -> ()
    %cst_176 = arith.constant dense<0.000000e+00> : vector<8x8xf32>
    %366 = tpu.matmul %363, %364, %cst_176 {dimension_numbers = #tpu.dot_dimension_numbers<[1], [1], [0], [0], [0, 0, 1, 0], [], []>} : vector<8x8xf32>, vector<8x8xf32>, vector<8x8xf32> -> vector<8x8xf32>
    "tpu.trace_stop"() : () -> ()
    %cst_177 = arith.constant 0.353553385 : f32
    %367 = vector.broadcast %cst_177 : f32 to vector<8x8xf32>
    %368 = arith.mulf %366, %367 : vector<8x8xf32>
    %369 = arith.addf %368, %329 : vector<8x8xf32>
    %cst_178 = arith.constant dense<0xFF800000> : vector<8xf32>
    %370 = vector.multi_reduction <maximumf>, %369, %cst_178 [1] : vector<8x8xf32> to vector<8xf32>
    %371 = vector.shape_cast %370 : vector<8xf32> to vector<8x1xf32>
    %372 = vector.broadcast %371 : vector<8x1xf32> to vector<8x8xf32>
    %373 = arith.subf %369, %372 : vector<8x8xf32>
    %374 = math.exp %373 : vector<8x8xf32>
    %cst_179 = arith.constant dense<0.000000e+00> : vector<8xf32>
    %375 = vector.multi_reduction <add>, %374, %cst_179 [1] : vector<8x8xf32> to vector<8xf32>
    %376 = vector.shape_cast %375 : vector<8xf32> to vector<8x1xf32>
    %377 = vector.broadcast %376 : vector<8x1xf32> to vector<8x8xf32>
    %378 = arith.divf %374, %377 : vector<8x8xf32>
    %cst_180 = arith.constant dense<0.000000e+00> : vector<8x8xf32>
    %379 = tpu.matmul %378, %365, %cst_180 {dimension_numbers = #tpu.dot_dimension_numbers<[1], [0], [0], [1], [0, 0, 1, 1], [], []>} : vector<8x8xf32>, vector<8x8xf32>, vector<8x8xf32> -> vector<8x8xf32>
    %380 = vector.extract_strided_slice %343 {offsets = [0, 16], sizes = [8, 8], strides = [1, 1]} : vector<8x32xf32> to vector<8x8xf32>
    %381 = vector.extract_strided_slice %344 {offsets = [0, 16], sizes = [8, 8], strides = [1, 1]} : vector<8x32xf32> to vector<8x8xf32>
    %382 = vector.extract_strided_slice %345 {offsets = [0, 16], sizes = [8, 8], strides = [1, 1]} : vector<8x32xf32> to vector<8x8xf32>
    "tpu.trace_start"() <{level = 10 : i32, message = "qd,kd->qk"}> : () -> ()
    %cst_181 = arith.constant dense<0.000000e+00> : vector<8x8xf32>
    %383 = tpu.matmul %380, %381, %cst_181 {dimension_numbers = #tpu.dot_dimension_numbers<[1], [1], [0], [0], [0, 0, 1, 0], [], []>} : vector<8x8xf32>, vector<8x8xf32>, vector<8x8xf32> -> vector<8x8xf32>
    "tpu.trace_stop"() : () -> ()
    %cst_182 = arith.constant 0.353553385 : f32
    %384 = vector.broadcast %cst_182 : f32 to vector<8x8xf32>
    %385 = arith.mulf %383, %384 : vector<8x8xf32>
    %386 = arith.addf %385, %329 : vector<8x8xf32>
    %cst_183 = arith.constant dense<0xFF800000> : vector<8xf32>
    %387 = vector.multi_reduction <maximumf>, %386, %cst_183 [1] : vector<8x8xf32> to vector<8xf32>
    %388 = vector.shape_cast %387 : vector<8xf32> to vector<8x1xf32>
    %389 = vector.broadcast %388 : vector<8x1xf32> to vector<8x8xf32>
    %390 = arith.subf %386, %389 : vector<8x8xf32>
    %391 = math.exp %390 : vector<8x8xf32>
    %cst_184 = arith.constant dense<0.000000e+00> : vector<8xf32>
    %392 = vector.multi_reduction <add>, %391, %cst_184 [1] : vector<8x8xf32> to vector<8xf32>
    %393 = vector.shape_cast %392 : vector<8xf32> to vector<8x1xf32>
    %394 = vector.broadcast %393 : vector<8x1xf32> to vector<8x8xf32>
    %395 = arith.divf %391, %394 : vector<8x8xf32>
    %cst_185 = arith.constant dense<0.000000e+00> : vector<8x8xf32>
    %396 = tpu.matmul %395, %382, %cst_185 {dimension_numbers = #tpu.dot_dimension_numbers<[1], [0], [0], [1], [0, 0, 1, 1], [], []>} : vector<8x8xf32>, vector<8x8xf32>, vector<8x8xf32> -> vector<8x8xf32>
    %397 = vector.extract_strided_slice %343 {offsets = [0, 24], sizes = [8, 8], strides = [1, 1]} : vector<8x32xf32> to vector<8x8xf32>
    %398 = vector.extract_strided_slice %344 {offsets = [0, 24], sizes = [8, 8], strides = [1, 1]} : vector<8x32xf32> to vector<8x8xf32>
    %399 = vector.extract_strided_slice %345 {offsets = [0, 24], sizes = [8, 8], strides = [1, 1]} : vector<8x32xf32> to vector<8x8xf32>
    "tpu.trace_start"() <{level = 10 : i32, message = "qd,kd->qk"}> : () -> ()
    %cst_186 = arith.constant dense<0.000000e+00> : vector<8x8xf32>
    %400 = tpu.matmul %397, %398, %cst_186 {dimension_numbers = #tpu.dot_dimension_numbers<[1], [1], [0], [0], [0, 0, 1, 0], [], []>} : vector<8x8xf32>, vector<8x8xf32>, vector<8x8xf32> -> vector<8x8xf32>
    "tpu.trace_stop"() : () -> ()
    %cst_187 = arith.constant 0.353553385 : f32
    %401 = vector.broadcast %cst_187 : f32 to vector<8x8xf32>
    %402 = arith.mulf %400, %401 : vector<8x8xf32>
    %403 = arith.addf %402, %329 : vector<8x8xf32>
    %cst_188 = arith.constant dense<0xFF800000> : vector<8xf32>
    %404 = vector.multi_reduction <maximumf>, %403, %cst_188 [1] : vector<8x8xf32> to vector<8xf32>
    %405 = vector.shape_cast %404 : vector<8xf32> to vector<8x1xf32>
    %406 = vector.broadcast %405 : vector<8x1xf32> to vector<8x8xf32>
    %407 = arith.subf %403, %406 : vector<8x8xf32>
    %408 = math.exp %407 : vector<8x8xf32>
    %cst_189 = arith.constant dense<0.000000e+00> : vector<8xf32>
    %409 = vector.multi_reduction <add>, %408, %cst_189 [1] : vector<8x8xf32> to vector<8xf32>
    %410 = vector.shape_cast %409 : vector<8xf32> to vector<8x1xf32>
    %411 = vector.broadcast %410 : vector<8x1xf32> to vector<8x8xf32>
    %412 = arith.divf %408, %411 : vector<8x8xf32>
    %cst_190 = arith.constant dense<0.000000e+00> : vector<8x8xf32>
    %413 = tpu.matmul %412, %399, %cst_190 {dimension_numbers = #tpu.dot_dimension_numbers<[1], [0], [0], [1], [0, 0, 1, 1], [], []>} : vector<8x8xf32>, vector<8x8xf32>, vector<8x8xf32> -> vector<8x8xf32>
    %414 = tpu.concatenate %362, %379, %396, %413 in 1 : vector<8x8xf32>, vector<8x8xf32>, vector<8x8xf32>, vector<8x8xf32> -> vector<8x32xf32>
    %cst_191 = arith.constant dense<0.000000e+00> : vector<8x32xf32>
    %415 = tpu.matmul %414, %337, %cst_191 {dimension_numbers = #tpu.dot_dimension_numbers<[1], [0], [0], [1], [0, 0, 1, 1], [], []>} : vector<8x32xf32>, vector<32x32xf32>, vector<8x32xf32> -> vector<8x32xf32>
    %416 = vector.broadcast %339 : vector<1x32xf32> to vector<8x32xf32>
    %417 = arith.addf %415, %416 : vector<8x32xf32>
    %418 = arith.addf %331, %417 : vector<8x32xf32>
    %c0_192 = arith.constant 0 : index
    %c0_193 = arith.constant 0 : index
    %c0_194 = arith.constant 0 : index
    %419 = vector.load %arg27[%c0_192, %c0_193, %c0_194] : memref<2x1x32xf32, #tpu.memory_space<vmem>>, vector<1x1x32xf32>
    %420 = vector.shape_cast %419 : vector<1x1x32xf32> to vector<1x32xf32>
    %c0_195 = arith.constant 0 : index
    %c0_196 = arith.constant 0 : index
    %c0_197 = arith.constant 0 : index
    %421 = vector.load %arg28[%c0_195, %c0_196, %c0_197] : memref<2x1x32xf32, #tpu.memory_space<vmem>>, vector<1x1x32xf32>
    %422 = vector.shape_cast %421 : vector<1x1x32xf32> to vector<1x32xf32>
    %cst_198 = arith.constant dense<0.000000e+00> : vector<8xf32>
    %423 = vector.multi_reduction <add>, %418, %cst_198 [1] : vector<8x32xf32> to vector<8xf32>
    %424 = vector.shape_cast %423 : vector<8xf32> to vector<8x1xf32>
    %cst_199 = arith.constant 3.200000e+01 : f32
    %425 = vector.broadcast %cst_199 : f32 to vector<8x1xf32>
    %426 = arith.divf %424, %425 : vector<8x1xf32>
    %427 = vector.broadcast %426 : vector<8x1xf32> to vector<8x32xf32>
    %428 = arith.subf %418, %427 : vector<8x32xf32>
    %429 = arith.mulf %428, %428 : vector<8x32xf32>
    %cst_200 = arith.constant dense<0.000000e+00> : vector<8xf32>
    %430 = vector.multi_reduction <add>, %429, %cst_200 [1] : vector<8x32xf32> to vector<8xf32>
    %431 = vector.shape_cast %430 : vector<8xf32> to vector<8x1xf32>
    %cst_201 = arith.constant 3.200000e+01 : f32
    %432 = vector.broadcast %cst_201 : f32 to vector<8x1xf32>
    %433 = arith.divf %431, %432 : vector<8x1xf32>
    %cst_202 = arith.constant 9.99999974E-6 : f32
    %434 = vector.broadcast %cst_202 : f32 to vector<8x1xf32>
    %435 = arith.addf %433, %434 : vector<8x1xf32>
    %436 = math.rsqrt %435 : vector<8x1xf32>
    %437 = vector.broadcast %436 : vector<8x1xf32> to vector<8x32xf32>
    %438 = arith.mulf %428, %437 : vector<8x32xf32>
    %439 = vector.broadcast %420 : vector<1x32xf32> to vector<8x32xf32>
    %440 = arith.mulf %438, %439 : vector<8x32xf32>
    %441 = vector.broadcast %422 : vector<1x32xf32> to vector<8x32xf32>
    %442 = arith.addf %440, %441 : vector<8x32xf32>
    %c0_203 = arith.constant 0 : index
    %c0_204 = arith.constant 0 : index
    %c0_205 = arith.constant 0 : index
    %443 = vector.load %arg19[%c0_203, %c0_204, %c0_205] : memref<2x32x32xf32, #tpu.memory_space<vmem>>, vector<1x32x32xf32>
    %444 = vector.shape_cast %443 : vector<1x32x32xf32> to vector<32x32xf32>
    %cst_206 = arith.constant dense<0.000000e+00> : vector<1x32xf32>
    %445 = tpu.matmul %323, %444, %cst_206 {dimension_numbers = #tpu.dot_dimension_numbers<[1], [0], [0], [1], [0, 0, 1, 1], [], []>} : vector<1x32xf32>, vector<32x32xf32>, vector<1x32xf32> -> vector<1x32xf32>
    %c0_207 = arith.constant 0 : index
    %c0_208 = arith.constant 0 : index
    %c0_209 = arith.constant 0 : index
    %446 = vector.load %arg20[%c0_207, %c0_208, %c0_209] : memref<2x1x32xf32, #tpu.memory_space<vmem>>, vector<1x1x32xf32>
    %447 = vector.shape_cast %446 : vector<1x1x32xf32> to vector<1x32xf32>
    %448 = arith.addf %445, %447 : vector<1x32xf32>
    %c0_210 = arith.constant 0 : index
    %c0_211 = arith.constant 0 : index
    %c0_212 = arith.constant 0 : index
    %449 = vector.load %arg21[%c0_210, %c0_211, %c0_212] : memref<2x32x32xf32, #tpu.memory_space<vmem>>, vector<1x32x32xf32>
    %450 = vector.shape_cast %449 : vector<1x32x32xf32> to vector<32x32xf32>
    %cst_213 = arith.constant dense<0.000000e+00> : vector<1x32xf32>
    %451 = tpu.matmul %448, %450, %cst_213 {dimension_numbers = #tpu.dot_dimension_numbers<[1], [0], [0], [1], [0, 0, 1, 1], [], []>} : vector<1x32xf32>, vector<32x32xf32>, vector<1x32xf32> -> vector<1x32xf32>
    %c0_214 = arith.constant 0 : index
    %c0_215 = arith.constant 0 : index
    %c0_216 = arith.constant 0 : index
    %452 = vector.load %arg22[%c0_214, %c0_215, %c0_216] : memref<2x1x32xf32, #tpu.memory_space<vmem>>, vector<1x1x32xf32>
    %453 = vector.shape_cast %452 : vector<1x1x32xf32> to vector<1x32xf32>
    %454 = arith.addf %451, %453 : vector<1x32xf32>
    %455 = vector.broadcast %454 : vector<1x32xf32> to vector<8x32xf32>
    %456 = arith.addf %442, %455 : vector<8x32xf32>
    %c0_217 = arith.constant 0 : index
    %c0_218 = arith.constant 0 : index
    %c0_219 = arith.constant 0 : index
    %457 = vector.load %arg29[%c0_217, %c0_218, %c0_219] : memref<2x1x32xf32, #tpu.memory_space<vmem>>, vector<1x1x32xf32>
    %458 = vector.shape_cast %457 : vector<1x1x32xf32> to vector<1x32xf32>
    %c0_220 = arith.constant 0 : index
    %c0_221 = arith.constant 0 : index
    %c0_222 = arith.constant 0 : index
    %459 = vector.load %arg30[%c0_220, %c0_221, %c0_222] : memref<2x1x32xf32, #tpu.memory_space<vmem>>, vector<1x1x32xf32>
    %460 = vector.shape_cast %459 : vector<1x1x32xf32> to vector<1x32xf32>
    %cst_223 = arith.constant dense<0.000000e+00> : vector<8xf32>
    %461 = vector.multi_reduction <add>, %456, %cst_223 [1] : vector<8x32xf32> to vector<8xf32>
    %462 = vector.shape_cast %461 : vector<8xf32> to vector<8x1xf32>
    %cst_224 = arith.constant 3.200000e+01 : f32
    %463 = vector.broadcast %cst_224 : f32 to vector<8x1xf32>
    %464 = arith.divf %462, %463 : vector<8x1xf32>
    %465 = vector.broadcast %464 : vector<8x1xf32> to vector<8x32xf32>
    %466 = arith.subf %456, %465 : vector<8x32xf32>
    %467 = arith.mulf %466, %466 : vector<8x32xf32>
    %cst_225 = arith.constant dense<0.000000e+00> : vector<8xf32>
    %468 = vector.multi_reduction <add>, %467, %cst_225 [1] : vector<8x32xf32> to vector<8xf32>
    %469 = vector.shape_cast %468 : vector<8xf32> to vector<8x1xf32>
    %cst_226 = arith.constant 3.200000e+01 : f32
    %470 = vector.broadcast %cst_226 : f32 to vector<8x1xf32>
    %471 = arith.divf %469, %470 : vector<8x1xf32>
    %cst_227 = arith.constant 9.99999974E-6 : f32
    %472 = vector.broadcast %cst_227 : f32 to vector<8x1xf32>
    %473 = arith.addf %471, %472 : vector<8x1xf32>
    %474 = math.rsqrt %473 : vector<8x1xf32>
    %475 = vector.broadcast %474 : vector<8x1xf32> to vector<8x32xf32>
    %476 = arith.mulf %466, %475 : vector<8x32xf32>
    %477 = vector.broadcast %458 : vector<1x32xf32> to vector<8x32xf32>
    %478 = arith.mulf %476, %477 : vector<8x32xf32>
    %479 = vector.broadcast %460 : vector<1x32xf32> to vector<8x32xf32>
    %480 = arith.addf %478, %479 : vector<8x32xf32>
    %c0_228 = arith.constant 0 : index
    %c0_229 = arith.constant 0 : index
    %c0_230 = arith.constant 0 : index
    %481 = vector.load %arg23[%c0_228, %c0_229, %c0_230] : memref<2x32x64xf32, #tpu.memory_space<vmem>>, vector<1x32x64xf32>
    %482 = vector.shape_cast %481 : vector<1x32x64xf32> to vector<32x64xf32>
    %c0_231 = arith.constant 0 : index
    %c0_232 = arith.constant 0 : index
    %c0_233 = arith.constant 0 : index
    %483 = vector.load %arg24[%c0_231, %c0_232, %c0_233] : memref<2x1x64xf32, #tpu.memory_space<vmem>>, vector<1x1x64xf32>
    %484 = vector.shape_cast %483 : vector<1x1x64xf32> to vector<1x64xf32>
    %c0_234 = arith.constant 0 : index
    %c0_235 = arith.constant 0 : index
    %c0_236 = arith.constant 0 : index
    %485 = vector.load %arg25[%c0_234, %c0_235, %c0_236] : memref<2x64x32xf32, #tpu.memory_space<vmem>>, vector<1x64x32xf32>
    %486 = vector.shape_cast %485 : vector<1x64x32xf32> to vector<64x32xf32>
    %c0_237 = arith.constant 0 : index
    %c0_238 = arith.constant 0 : index
    %c0_239 = arith.constant 0 : index
    %487 = vector.load %arg26[%c0_237, %c0_238, %c0_239] : memref<2x1x32xf32, #tpu.memory_space<vmem>>, vector<1x1x32xf32>
    %488 = vector.shape_cast %487 : vector<1x1x32xf32> to vector<1x32xf32>
    %cst_240 = arith.constant dense<0.000000e+00> : vector<8x64xf32>
    %489 = tpu.matmul %480, %482, %cst_240 {dimension_numbers = #tpu.dot_dimension_numbers<[1], [0], [0], [1], [0, 0, 1, 1], [], []>} : vector<8x32xf32>, vector<32x64xf32>, vector<8x64xf32> -> vector<8x64xf32>
    %490 = vector.broadcast %484 : vector<1x64xf32> to vector<8x64xf32>
    %491 = arith.addf %489, %490 : vector<8x64xf32>
    %cst_241 = arith.constant 0.000000e+00 : f32
    %492 = vector.broadcast %cst_241 : f32 to vector<8x64xf32>
    %493 = arith.maximumf %491, %492 : vector<8x64xf32>
    %cst_242 = arith.constant dense<0.000000e+00> : vector<8x32xf32>
    %494 = tpu.matmul %493, %486, %cst_242 {dimension_numbers = #tpu.dot_dimension_numbers<[1], [0], [0], [1], [0, 0, 1, 1], [], []>} : vector<8x64xf32>, vector<64x32xf32>, vector<8x32xf32> -> vector<8x32xf32>
    %495 = vector.broadcast %488 : vector<1x32xf32> to vector<8x32xf32>
    %496 = arith.addf %494, %495 : vector<8x32xf32>
    %497 = arith.addf %480, %496 : vector<8x32xf32>
    %c0_243 = arith.constant 0 : index
    %c0_244 = arith.constant 0 : index
    %c0_245 = arith.constant 0 : index
    %498 = vector.load %arg31[%c0_243, %c0_244, %c0_245] : memref<2x1x32xf32, #tpu.memory_space<vmem>>, vector<1x1x32xf32>
    %499 = vector.shape_cast %498 : vector<1x1x32xf32> to vector<1x32xf32>
    %c0_246 = arith.constant 0 : index
    %c0_247 = arith.constant 0 : index
    %c0_248 = arith.constant 0 : index
    %500 = vector.load %arg32[%c0_246, %c0_247, %c0_248] : memref<2x1x32xf32, #tpu.memory_space<vmem>>, vector<1x1x32xf32>
    %501 = vector.shape_cast %500 : vector<1x1x32xf32> to vector<1x32xf32>
    %cst_249 = arith.constant dense<0.000000e+00> : vector<8xf32>
    %502 = vector.multi_reduction <add>, %497, %cst_249 [1] : vector<8x32xf32> to vector<8xf32>
    %503 = vector.shape_cast %502 : vector<8xf32> to vector<8x1xf32>
    %cst_250 = arith.constant 3.200000e+01 : f32
    %504 = vector.broadcast %cst_250 : f32 to vector<8x1xf32>
    %505 = arith.divf %503, %504 : vector<8x1xf32>
    %506 = vector.broadcast %505 : vector<8x1xf32> to vector<8x32xf32>
    %507 = arith.subf %497, %506 : vector<8x32xf32>
    %508 = arith.mulf %507, %507 : vector<8x32xf32>
    %cst_251 = arith.constant dense<0.000000e+00> : vector<8xf32>
    %509 = vector.multi_reduction <add>, %508, %cst_251 [1] : vector<8x32xf32> to vector<8xf32>
    %510 = vector.shape_cast %509 : vector<8xf32> to vector<8x1xf32>
    %cst_252 = arith.constant 3.200000e+01 : f32
    %511 = vector.broadcast %cst_252 : f32 to vector<8x1xf32>
    %512 = arith.divf %510, %511 : vector<8x1xf32>
    %cst_253 = arith.constant 9.99999974E-6 : f32
    %513 = vector.broadcast %cst_253 : f32 to vector<8x1xf32>
    %514 = arith.addf %512, %513 : vector<8x1xf32>
    %515 = math.rsqrt %514 : vector<8x1xf32>
    %516 = vector.broadcast %515 : vector<8x1xf32> to vector<8x32xf32>
    %517 = arith.mulf %507, %516 : vector<8x32xf32>
    %518 = vector.broadcast %499 : vector<1x32xf32> to vector<8x32xf32>
    %519 = arith.mulf %517, %518 : vector<8x32xf32>
    %520 = vector.broadcast %501 : vector<1x32xf32> to vector<8x32xf32>
    %521 = arith.addf %519, %520 : vector<8x32xf32>
    %c1_254 = arith.constant 1 : index
    %c0_255 = arith.constant 0 : index
    %c0_256 = arith.constant 0 : index
    %522 = vector.load %arg15[%c1_254, %c0_255, %c0_256] : memref<2x32x96xf32, #tpu.memory_space<vmem>>, vector<1x32x96xf32>
    %523 = vector.shape_cast %522 : vector<1x32x96xf32> to vector<32x96xf32>
    %c1_257 = arith.constant 1 : index
    %c0_258 = arith.constant 0 : index
    %c0_259 = arith.constant 0 : index
    %524 = vector.load %arg16[%c1_257, %c0_258, %c0_259] : memref<2x1x96xf32, #tpu.memory_space<vmem>>, vector<1x1x96xf32>
    %525 = vector.shape_cast %524 : vector<1x1x96xf32> to vector<1x96xf32>
    %c1_260 = arith.constant 1 : index
    %c0_261 = arith.constant 0 : index
    %c0_262 = arith.constant 0 : index
    %526 = vector.load %arg17[%c1_260, %c0_261, %c0_262] : memref<2x32x32xf32, #tpu.memory_space<vmem>>, vector<1x32x32xf32>
    %527 = vector.shape_cast %526 : vector<1x32x32xf32> to vector<32x32xf32>
    %c1_263 = arith.constant 1 : index
    %c0_264 = arith.constant 0 : index
    %c0_265 = arith.constant 0 : index
    %528 = vector.load %arg18[%c1_263, %c0_264, %c0_265] : memref<2x1x32xf32, #tpu.memory_space<vmem>>, vector<1x1x32xf32>
    %529 = vector.shape_cast %528 : vector<1x1x32xf32> to vector<1x32xf32>
    %cst_266 = arith.constant dense<0.000000e+00> : vector<8x96xf32>
    %530 = tpu.matmul %521, %523, %cst_266 {dimension_numbers = #tpu.dot_dimension_numbers<[1], [0], [0], [1], [0, 0, 1, 1], [], []>} : vector<8x32xf32>, vector<32x96xf32>, vector<8x96xf32> -> vector<8x96xf32>
    %531 = vector.broadcast %525 : vector<1x96xf32> to vector<8x96xf32>
    %532 = arith.addf %530, %531 : vector<8x96xf32>
    %533 = vector.extract_strided_slice %532 {offsets = [0, 0], sizes = [8, 32], strides = [1, 1]} : vector<8x96xf32> to vector<8x32xf32>
    %534 = vector.extract_strided_slice %532 {offsets = [0, 32], sizes = [8, 32], strides = [1, 1]} : vector<8x96xf32> to vector<8x32xf32>
    %535 = vector.extract_strided_slice %532 {offsets = [0, 64], sizes = [8, 32], strides = [1, 1]} : vector<8x96xf32> to vector<8x32xf32>
    %536 = vector.extract_strided_slice %533 {offsets = [0, 0], sizes = [8, 8], strides = [1, 1]} : vector<8x32xf32> to vector<8x8xf32>
    %537 = vector.extract_strided_slice %534 {offsets = [0, 0], sizes = [8, 8], strides = [1, 1]} : vector<8x32xf32> to vector<8x8xf32>
    %538 = vector.extract_strided_slice %535 {offsets = [0, 0], sizes = [8, 8], strides = [1, 1]} : vector<8x32xf32> to vector<8x8xf32>
    "tpu.trace_start"() <{level = 10 : i32, message = "qd,kd->qk"}> : () -> ()
    %cst_267 = arith.constant dense<0.000000e+00> : vector<8x8xf32>
    %539 = tpu.matmul %536, %537, %cst_267 {dimension_numbers = #tpu.dot_dimension_numbers<[1], [1], [0], [0], [0, 0, 1, 0], [], []>} : vector<8x8xf32>, vector<8x8xf32>, vector<8x8xf32> -> vector<8x8xf32>
    "tpu.trace_stop"() : () -> ()
    %cst_268 = arith.constant 0.353553385 : f32
    %540 = vector.broadcast %cst_268 : f32 to vector<8x8xf32>
    %541 = arith.mulf %539, %540 : vector<8x8xf32>
    %542 = arith.addf %541, %329 : vector<8x8xf32>
    %cst_269 = arith.constant dense<0xFF800000> : vector<8xf32>
    %543 = vector.multi_reduction <maximumf>, %542, %cst_269 [1] : vector<8x8xf32> to vector<8xf32>
    %544 = vector.shape_cast %543 : vector<8xf32> to vector<8x1xf32>
    %545 = vector.broadcast %544 : vector<8x1xf32> to vector<8x8xf32>
    %546 = arith.subf %542, %545 : vector<8x8xf32>
    %547 = math.exp %546 : vector<8x8xf32>
    %cst_270 = arith.constant dense<0.000000e+00> : vector<8xf32>
    %548 = vector.multi_reduction <add>, %547, %cst_270 [1] : vector<8x8xf32> to vector<8xf32>
    %549 = vector.shape_cast %548 : vector<8xf32> to vector<8x1xf32>
    %550 = vector.broadcast %549 : vector<8x1xf32> to vector<8x8xf32>
    %551 = arith.divf %547, %550 : vector<8x8xf32>
    %cst_271 = arith.constant dense<0.000000e+00> : vector<8x8xf32>
    %552 = tpu.matmul %551, %538, %cst_271 {dimension_numbers = #tpu.dot_dimension_numbers<[1], [0], [0], [1], [0, 0, 1, 1], [], []>} : vector<8x8xf32>, vector<8x8xf32>, vector<8x8xf32> -> vector<8x8xf32>
    %553 = vector.extract_strided_slice %533 {offsets = [0, 8], sizes = [8, 8], strides = [1, 1]} : vector<8x32xf32> to vector<8x8xf32>
    %554 = vector.extract_strided_slice %534 {offsets = [0, 8], sizes = [8, 8], strides = [1, 1]} : vector<8x32xf32> to vector<8x8xf32>
    %555 = vector.extract_strided_slice %535 {offsets = [0, 8], sizes = [8, 8], strides = [1, 1]} : vector<8x32xf32> to vector<8x8xf32>
    "tpu.trace_start"() <{level = 10 : i32, message = "qd,kd->qk"}> : () -> ()
    %cst_272 = arith.constant dense<0.000000e+00> : vector<8x8xf32>
    %556 = tpu.matmul %553, %554, %cst_272 {dimension_numbers = #tpu.dot_dimension_numbers<[1], [1], [0], [0], [0, 0, 1, 0], [], []>} : vector<8x8xf32>, vector<8x8xf32>, vector<8x8xf32> -> vector<8x8xf32>
    "tpu.trace_stop"() : () -> ()
    %cst_273 = arith.constant 0.353553385 : f32
    %557 = vector.broadcast %cst_273 : f32 to vector<8x8xf32>
    %558 = arith.mulf %556, %557 : vector<8x8xf32>
    %559 = arith.addf %558, %329 : vector<8x8xf32>
    %cst_274 = arith.constant dense<0xFF800000> : vector<8xf32>
    %560 = vector.multi_reduction <maximumf>, %559, %cst_274 [1] : vector<8x8xf32> to vector<8xf32>
    %561 = vector.shape_cast %560 : vector<8xf32> to vector<8x1xf32>
    %562 = vector.broadcast %561 : vector<8x1xf32> to vector<8x8xf32>
    %563 = arith.subf %559, %562 : vector<8x8xf32>
    %564 = math.exp %563 : vector<8x8xf32>
    %cst_275 = arith.constant dense<0.000000e+00> : vector<8xf32>
    %565 = vector.multi_reduction <add>, %564, %cst_275 [1] : vector<8x8xf32> to vector<8xf32>
    %566 = vector.shape_cast %565 : vector<8xf32> to vector<8x1xf32>
    %567 = vector.broadcast %566 : vector<8x1xf32> to vector<8x8xf32>
    %568 = arith.divf %564, %567 : vector<8x8xf32>
    %cst_276 = arith.constant dense<0.000000e+00> : vector<8x8xf32>
    %569 = tpu.matmul %568, %555, %cst_276 {dimension_numbers = #tpu.dot_dimension_numbers<[1], [0], [0], [1], [0, 0, 1, 1], [], []>} : vector<8x8xf32>, vector<8x8xf32>, vector<8x8xf32> -> vector<8x8xf32>
    %570 = vector.extract_strided_slice %533 {offsets = [0, 16], sizes = [8, 8], strides = [1, 1]} : vector<8x32xf32> to vector<8x8xf32>
    %571 = vector.extract_strided_slice %534 {offsets = [0, 16], sizes = [8, 8], strides = [1, 1]} : vector<8x32xf32> to vector<8x8xf32>
    %572 = vector.extract_strided_slice %535 {offsets = [0, 16], sizes = [8, 8], strides = [1, 1]} : vector<8x32xf32> to vector<8x8xf32>
    "tpu.trace_start"() <{level = 10 : i32, message = "qd,kd->qk"}> : () -> ()
    %cst_277 = arith.constant dense<0.000000e+00> : vector<8x8xf32>
    %573 = tpu.matmul %570, %571, %cst_277 {dimension_numbers = #tpu.dot_dimension_numbers<[1], [1], [0], [0], [0, 0, 1, 0], [], []>} : vector<8x8xf32>, vector<8x8xf32>, vector<8x8xf32> -> vector<8x8xf32>
    "tpu.trace_stop"() : () -> ()
    %cst_278 = arith.constant 0.353553385 : f32
    %574 = vector.broadcast %cst_278 : f32 to vector<8x8xf32>
    %575 = arith.mulf %573, %574 : vector<8x8xf32>
    %576 = arith.addf %575, %329 : vector<8x8xf32>
    %cst_279 = arith.constant dense<0xFF800000> : vector<8xf32>
    %577 = vector.multi_reduction <maximumf>, %576, %cst_279 [1] : vector<8x8xf32> to vector<8xf32>
    %578 = vector.shape_cast %577 : vector<8xf32> to vector<8x1xf32>
    %579 = vector.broadcast %578 : vector<8x1xf32> to vector<8x8xf32>
    %580 = arith.subf %576, %579 : vector<8x8xf32>
    %581 = math.exp %580 : vector<8x8xf32>
    %cst_280 = arith.constant dense<0.000000e+00> : vector<8xf32>
    %582 = vector.multi_reduction <add>, %581, %cst_280 [1] : vector<8x8xf32> to vector<8xf32>
    %583 = vector.shape_cast %582 : vector<8xf32> to vector<8x1xf32>
    %584 = vector.broadcast %583 : vector<8x1xf32> to vector<8x8xf32>
    %585 = arith.divf %581, %584 : vector<8x8xf32>
    %cst_281 = arith.constant dense<0.000000e+00> : vector<8x8xf32>
    %586 = tpu.matmul %585, %572, %cst_281 {dimension_numbers = #tpu.dot_dimension_numbers<[1], [0], [0], [1], [0, 0, 1, 1], [], []>} : vector<8x8xf32>, vector<8x8xf32>, vector<8x8xf32> -> vector<8x8xf32>
    %587 = vector.extract_strided_slice %533 {offsets = [0, 24], sizes = [8, 8], strides = [1, 1]} : vector<8x32xf32> to vector<8x8xf32>
    %588 = vector.extract_strided_slice %534 {offsets = [0, 24], sizes = [8, 8], strides = [1, 1]} : vector<8x32xf32> to vector<8x8xf32>
    %589 = vector.extract_strided_slice %535 {offsets = [0, 24], sizes = [8, 8], strides = [1, 1]} : vector<8x32xf32> to vector<8x8xf32>
    "tpu.trace_start"() <{level = 10 : i32, message = "qd,kd->qk"}> : () -> ()
    %cst_282 = arith.constant dense<0.000000e+00> : vector<8x8xf32>
    %590 = tpu.matmul %587, %588, %cst_282 {dimension_numbers = #tpu.dot_dimension_numbers<[1], [1], [0], [0], [0, 0, 1, 0], [], []>} : vector<8x8xf32>, vector<8x8xf32>, vector<8x8xf32> -> vector<8x8xf32>
    "tpu.trace_stop"() : () -> ()
    %cst_283 = arith.constant 0.353553385 : f32
    %591 = vector.broadcast %cst_283 : f32 to vector<8x8xf32>
    %592 = arith.mulf %590, %591 : vector<8x8xf32>
    %593 = arith.addf %592, %329 : vector<8x8xf32>
    %cst_284 = arith.constant dense<0xFF800000> : vector<8xf32>
    %594 = vector.multi_reduction <maximumf>, %593, %cst_284 [1] : vector<8x8xf32> to vector<8xf32>
    %595 = vector.shape_cast %594 : vector<8xf32> to vector<8x1xf32>
    %596 = vector.broadcast %595 : vector<8x1xf32> to vector<8x8xf32>
    %597 = arith.subf %593, %596 : vector<8x8xf32>
    %598 = math.exp %597 : vector<8x8xf32>
    %cst_285 = arith.constant dense<0.000000e+00> : vector<8xf32>
    %599 = vector.multi_reduction <add>, %598, %cst_285 [1] : vector<8x8xf32> to vector<8xf32>
    %600 = vector.shape_cast %599 : vector<8xf32> to vector<8x1xf32>
    %601 = vector.broadcast %600 : vector<8x1xf32> to vector<8x8xf32>
    %602 = arith.divf %598, %601 : vector<8x8xf32>
    %cst_286 = arith.constant dense<0.000000e+00> : vector<8x8xf32>
    %603 = tpu.matmul %602, %589, %cst_286 {dimension_numbers = #tpu.dot_dimension_numbers<[1], [0], [0], [1], [0, 0, 1, 1], [], []>} : vector<8x8xf32>, vector<8x8xf32>, vector<8x8xf32> -> vector<8x8xf32>
    %604 = tpu.concatenate %552, %569, %586, %603 in 1 : vector<8x8xf32>, vector<8x8xf32>, vector<8x8xf32>, vector<8x8xf32> -> vector<8x32xf32>
    %cst_287 = arith.constant dense<0.000000e+00> : vector<8x32xf32>
    %605 = tpu.matmul %604, %527, %cst_287 {dimension_numbers = #tpu.dot_dimension_numbers<[1], [0], [0], [1], [0, 0, 1, 1], [], []>} : vector<8x32xf32>, vector<32x32xf32>, vector<8x32xf32> -> vector<8x32xf32>
    %606 = vector.broadcast %529 : vector<1x32xf32> to vector<8x32xf32>
    %607 = arith.addf %605, %606 : vector<8x32xf32>
    %608 = arith.addf %521, %607 : vector<8x32xf32>
    %c1_288 = arith.constant 1 : index
    %c0_289 = arith.constant 0 : index
    %c0_290 = arith.constant 0 : index
    %609 = vector.load %arg27[%c1_288, %c0_289, %c0_290] : memref<2x1x32xf32, #tpu.memory_space<vmem>>, vector<1x1x32xf32>
    %610 = vector.shape_cast %609 : vector<1x1x32xf32> to vector<1x32xf32>
    %c1_291 = arith.constant 1 : index
    %c0_292 = arith.constant 0 : index
    %c0_293 = arith.constant 0 : index
    %611 = vector.load %arg28[%c1_291, %c0_292, %c0_293] : memref<2x1x32xf32, #tpu.memory_space<vmem>>, vector<1x1x32xf32>
    %612 = vector.shape_cast %611 : vector<1x1x32xf32> to vector<1x32xf32>
    %cst_294 = arith.constant dense<0.000000e+00> : vector<8xf32>
    %613 = vector.multi_reduction <add>, %608, %cst_294 [1] : vector<8x32xf32> to vector<8xf32>
    %614 = vector.shape_cast %613 : vector<8xf32> to vector<8x1xf32>
    %cst_295 = arith.constant 3.200000e+01 : f32
    %615 = vector.broadcast %cst_295 : f32 to vector<8x1xf32>
    %616 = arith.divf %614, %615 : vector<8x1xf32>
    %617 = vector.broadcast %616 : vector<8x1xf32> to vector<8x32xf32>
    %618 = arith.subf %608, %617 : vector<8x32xf32>
    %619 = arith.mulf %618, %618 : vector<8x32xf32>
    %cst_296 = arith.constant dense<0.000000e+00> : vector<8xf32>
    %620 = vector.multi_reduction <add>, %619, %cst_296 [1] : vector<8x32xf32> to vector<8xf32>
    %621 = vector.shape_cast %620 : vector<8xf32> to vector<8x1xf32>
    %cst_297 = arith.constant 3.200000e+01 : f32
    %622 = vector.broadcast %cst_297 : f32 to vector<8x1xf32>
    %623 = arith.divf %621, %622 : vector<8x1xf32>
    %cst_298 = arith.constant 9.99999974E-6 : f32
    %624 = vector.broadcast %cst_298 : f32 to vector<8x1xf32>
    %625 = arith.addf %623, %624 : vector<8x1xf32>
    %626 = math.rsqrt %625 : vector<8x1xf32>
    %627 = vector.broadcast %626 : vector<8x1xf32> to vector<8x32xf32>
    %628 = arith.mulf %618, %627 : vector<8x32xf32>
    %629 = vector.broadcast %610 : vector<1x32xf32> to vector<8x32xf32>
    %630 = arith.mulf %628, %629 : vector<8x32xf32>
    %631 = vector.broadcast %612 : vector<1x32xf32> to vector<8x32xf32>
    %632 = arith.addf %630, %631 : vector<8x32xf32>
    %c1_299 = arith.constant 1 : index
    %c0_300 = arith.constant 0 : index
    %c0_301 = arith.constant 0 : index
    %633 = vector.load %arg19[%c1_299, %c0_300, %c0_301] : memref<2x32x32xf32, #tpu.memory_space<vmem>>, vector<1x32x32xf32>
    %634 = vector.shape_cast %633 : vector<1x32x32xf32> to vector<32x32xf32>
    %cst_302 = arith.constant dense<0.000000e+00> : vector<1x32xf32>
    %635 = tpu.matmul %323, %634, %cst_302 {dimension_numbers = #tpu.dot_dimension_numbers<[1], [0], [0], [1], [0, 0, 1, 1], [], []>} : vector<1x32xf32>, vector<32x32xf32>, vector<1x32xf32> -> vector<1x32xf32>
    %c1_303 = arith.constant 1 : index
    %c0_304 = arith.constant 0 : index
    %c0_305 = arith.constant 0 : index
    %636 = vector.load %arg20[%c1_303, %c0_304, %c0_305] : memref<2x1x32xf32, #tpu.memory_space<vmem>>, vector<1x1x32xf32>
    %637 = vector.shape_cast %636 : vector<1x1x32xf32> to vector<1x32xf32>
    %638 = arith.addf %635, %637 : vector<1x32xf32>
    %c1_306 = arith.constant 1 : index
    %c0_307 = arith.constant 0 : index
    %c0_308 = arith.constant 0 : index
    %639 = vector.load %arg21[%c1_306, %c0_307, %c0_308] : memref<2x32x32xf32, #tpu.memory_space<vmem>>, vector<1x32x32xf32>
    %640 = vector.shape_cast %639 : vector<1x32x32xf32> to vector<32x32xf32>
    %cst_309 = arith.constant dense<0.000000e+00> : vector<1x32xf32>
    %641 = tpu.matmul %638, %640, %cst_309 {dimension_numbers = #tpu.dot_dimension_numbers<[1], [0], [0], [1], [0, 0, 1, 1], [], []>} : vector<1x32xf32>, vector<32x32xf32>, vector<1x32xf32> -> vector<1x32xf32>
    %c1_310 = arith.constant 1 : index
    %c0_311 = arith.constant 0 : index
    %c0_312 = arith.constant 0 : index
    %642 = vector.load %arg22[%c1_310, %c0_311, %c0_312] : memref<2x1x32xf32, #tpu.memory_space<vmem>>, vector<1x1x32xf32>
    %643 = vector.shape_cast %642 : vector<1x1x32xf32> to vector<1x32xf32>
    %644 = arith.addf %641, %643 : vector<1x32xf32>
    %645 = vector.broadcast %644 : vector<1x32xf32> to vector<8x32xf32>
    %646 = arith.addf %632, %645 : vector<8x32xf32>
    %c1_313 = arith.constant 1 : index
    %c0_314 = arith.constant 0 : index
    %c0_315 = arith.constant 0 : index
    %647 = vector.load %arg29[%c1_313, %c0_314, %c0_315] : memref<2x1x32xf32, #tpu.memory_space<vmem>>, vector<1x1x32xf32>
    %648 = vector.shape_cast %647 : vector<1x1x32xf32> to vector<1x32xf32>
    %c1_316 = arith.constant 1 : index
    %c0_317 = arith.constant 0 : index
    %c0_318 = arith.constant 0 : index
    %649 = vector.load %arg30[%c1_316, %c0_317, %c0_318] : memref<2x1x32xf32, #tpu.memory_space<vmem>>, vector<1x1x32xf32>
    %650 = vector.shape_cast %649 : vector<1x1x32xf32> to vector<1x32xf32>
    %cst_319 = arith.constant dense<0.000000e+00> : vector<8xf32>
    %651 = vector.multi_reduction <add>, %646, %cst_319 [1] : vector<8x32xf32> to vector<8xf32>
    %652 = vector.shape_cast %651 : vector<8xf32> to vector<8x1xf32>
    %cst_320 = arith.constant 3.200000e+01 : f32
    %653 = vector.broadcast %cst_320 : f32 to vector<8x1xf32>
    %654 = arith.divf %652, %653 : vector<8x1xf32>
    %655 = vector.broadcast %654 : vector<8x1xf32> to vector<8x32xf32>
    %656 = arith.subf %646, %655 : vector<8x32xf32>
    %657 = arith.mulf %656, %656 : vector<8x32xf32>
    %cst_321 = arith.constant dense<0.000000e+00> : vector<8xf32>
    %658 = vector.multi_reduction <add>, %657, %cst_321 [1] : vector<8x32xf32> to vector<8xf32>
    %659 = vector.shape_cast %658 : vector<8xf32> to vector<8x1xf32>
    %cst_322 = arith.constant 3.200000e+01 : f32
    %660 = vector.broadcast %cst_322 : f32 to vector<8x1xf32>
    %661 = arith.divf %659, %660 : vector<8x1xf32>
    %cst_323 = arith.constant 9.99999974E-6 : f32
    %662 = vector.broadcast %cst_323 : f32 to vector<8x1xf32>
    %663 = arith.addf %661, %662 : vector<8x1xf32>
    %664 = math.rsqrt %663 : vector<8x1xf32>
    %665 = vector.broadcast %664 : vector<8x1xf32> to vector<8x32xf32>
    %666 = arith.mulf %656, %665 : vector<8x32xf32>
    %667 = vector.broadcast %648 : vector<1x32xf32> to vector<8x32xf32>
    %668 = arith.mulf %666, %667 : vector<8x32xf32>
    %669 = vector.broadcast %650 : vector<1x32xf32> to vector<8x32xf32>
    %670 = arith.addf %668, %669 : vector<8x32xf32>
    %c1_324 = arith.constant 1 : index
    %c0_325 = arith.constant 0 : index
    %c0_326 = arith.constant 0 : index
    %671 = vector.load %arg23[%c1_324, %c0_325, %c0_326] : memref<2x32x64xf32, #tpu.memory_space<vmem>>, vector<1x32x64xf32>
    %672 = vector.shape_cast %671 : vector<1x32x64xf32> to vector<32x64xf32>
    %c1_327 = arith.constant 1 : index
    %c0_328 = arith.constant 0 : index
    %c0_329 = arith.constant 0 : index
    %673 = vector.load %arg24[%c1_327, %c0_328, %c0_329] : memref<2x1x64xf32, #tpu.memory_space<vmem>>, vector<1x1x64xf32>
    %674 = vector.shape_cast %673 : vector<1x1x64xf32> to vector<1x64xf32>
    %c1_330 = arith.constant 1 : index
    %c0_331 = arith.constant 0 : index
    %c0_332 = arith.constant 0 : index
    %675 = vector.load %arg25[%c1_330, %c0_331, %c0_332] : memref<2x64x32xf32, #tpu.memory_space<vmem>>, vector<1x64x32xf32>
    %676 = vector.shape_cast %675 : vector<1x64x32xf32> to vector<64x32xf32>
    %c1_333 = arith.constant 1 : index
    %c0_334 = arith.constant 0 : index
    %c0_335 = arith.constant 0 : index
    %677 = vector.load %arg26[%c1_333, %c0_334, %c0_335] : memref<2x1x32xf32, #tpu.memory_space<vmem>>, vector<1x1x32xf32>
    %678 = vector.shape_cast %677 : vector<1x1x32xf32> to vector<1x32xf32>
    %cst_336 = arith.constant dense<0.000000e+00> : vector<8x64xf32>
    %679 = tpu.matmul %670, %672, %cst_336 {dimension_numbers = #tpu.dot_dimension_numbers<[1], [0], [0], [1], [0, 0, 1, 1], [], []>} : vector<8x32xf32>, vector<32x64xf32>, vector<8x64xf32> -> vector<8x64xf32>
    %680 = vector.broadcast %674 : vector<1x64xf32> to vector<8x64xf32>
    %681 = arith.addf %679, %680 : vector<8x64xf32>
    %cst_337 = arith.constant 0.000000e+00 : f32
    %682 = vector.broadcast %cst_337 : f32 to vector<8x64xf32>
    %683 = arith.maximumf %681, %682 : vector<8x64xf32>
    %cst_338 = arith.constant dense<0.000000e+00> : vector<8x32xf32>
    %684 = tpu.matmul %683, %676, %cst_338 {dimension_numbers = #tpu.dot_dimension_numbers<[1], [0], [0], [1], [0, 0, 1, 1], [], []>} : vector<8x64xf32>, vector<64x32xf32>, vector<8x32xf32> -> vector<8x32xf32>
    %685 = vector.broadcast %678 : vector<1x32xf32> to vector<8x32xf32>
    %686 = arith.addf %684, %685 : vector<8x32xf32>
    %687 = arith.addf %670, %686 : vector<8x32xf32>
    %c1_339 = arith.constant 1 : index
    %c0_340 = arith.constant 0 : index
    %c0_341 = arith.constant 0 : index
    %688 = vector.load %arg31[%c1_339, %c0_340, %c0_341] : memref<2x1x32xf32, #tpu.memory_space<vmem>>, vector<1x1x32xf32>
    %689 = vector.shape_cast %688 : vector<1x1x32xf32> to vector<1x32xf32>
    %c1_342 = arith.constant 1 : index
    %c0_343 = arith.constant 0 : index
    %c0_344 = arith.constant 0 : index
    %690 = vector.load %arg32[%c1_342, %c0_343, %c0_344] : memref<2x1x32xf32, #tpu.memory_space<vmem>>, vector<1x1x32xf32>
    %691 = vector.shape_cast %690 : vector<1x1x32xf32> to vector<1x32xf32>
    %cst_345 = arith.constant dense<0.000000e+00> : vector<8xf32>
    %692 = vector.multi_reduction <add>, %687, %cst_345 [1] : vector<8x32xf32> to vector<8xf32>
    %693 = vector.shape_cast %692 : vector<8xf32> to vector<8x1xf32>
    %cst_346 = arith.constant 3.200000e+01 : f32
    %694 = vector.broadcast %cst_346 : f32 to vector<8x1xf32>
    %695 = arith.divf %693, %694 : vector<8x1xf32>
    %696 = vector.broadcast %695 : vector<8x1xf32> to vector<8x32xf32>
    %697 = arith.subf %687, %696 : vector<8x32xf32>
    %698 = arith.mulf %697, %697 : vector<8x32xf32>
    %cst_347 = arith.constant dense<0.000000e+00> : vector<8xf32>
    %699 = vector.multi_reduction <add>, %698, %cst_347 [1] : vector<8x32xf32> to vector<8xf32>
    %700 = vector.shape_cast %699 : vector<8xf32> to vector<8x1xf32>
    %cst_348 = arith.constant 3.200000e+01 : f32
    %701 = vector.broadcast %cst_348 : f32 to vector<8x1xf32>
    %702 = arith.divf %700, %701 : vector<8x1xf32>
    %cst_349 = arith.constant 9.99999974E-6 : f32
    %703 = vector.broadcast %cst_349 : f32 to vector<8x1xf32>
    %704 = arith.addf %702, %703 : vector<8x1xf32>
    %705 = math.rsqrt %704 : vector<8x1xf32>
    %706 = vector.broadcast %705 : vector<8x1xf32> to vector<8x32xf32>
    %707 = arith.mulf %697, %706 : vector<8x32xf32>
    %708 = vector.broadcast %689 : vector<1x32xf32> to vector<8x32xf32>
    %709 = arith.mulf %707, %708 : vector<8x32xf32>
    %710 = vector.broadcast %691 : vector<1x32xf32> to vector<8x32xf32>
    %711 = arith.addf %709, %710 : vector<8x32xf32>
    %c0_350 = arith.constant 0 : index
    %c0_351 = arith.constant 0 : index
    %712 = vector.load %arg35[%c0_350, %c0_351] : memref<1x32xf32, #tpu.memory_space<vmem>>, vector<1x32xf32>
    %c0_352 = arith.constant 0 : index
    %c0_353 = arith.constant 0 : index
    %713 = vector.load %arg36[%c0_352, %c0_353] : memref<1x32xf32, #tpu.memory_space<vmem>>, vector<1x32xf32>
    %cst_354 = arith.constant dense<0.000000e+00> : vector<8xf32>
    %714 = vector.multi_reduction <add>, %711, %cst_354 [1] : vector<8x32xf32> to vector<8xf32>
    %715 = vector.shape_cast %714 : vector<8xf32> to vector<8x1xf32>
    %cst_355 = arith.constant 3.200000e+01 : f32
    %716 = vector.broadcast %cst_355 : f32 to vector<8x1xf32>
    %717 = arith.divf %715, %716 : vector<8x1xf32>
    %718 = vector.broadcast %717 : vector<8x1xf32> to vector<8x32xf32>
    %719 = arith.subf %711, %718 : vector<8x32xf32>
    %720 = arith.mulf %719, %719 : vector<8x32xf32>
    %cst_356 = arith.constant dense<0.000000e+00> : vector<8xf32>
    %721 = vector.multi_reduction <add>, %720, %cst_356 [1] : vector<8x32xf32> to vector<8xf32>
    %722 = vector.shape_cast %721 : vector<8xf32> to vector<8x1xf32>
    %cst_357 = arith.constant 3.200000e+01 : f32
    %723 = vector.broadcast %cst_357 : f32 to vector<8x1xf32>
    %724 = arith.divf %722, %723 : vector<8x1xf32>
    %cst_358 = arith.constant 9.99999974E-6 : f32
    %725 = vector.broadcast %cst_358 : f32 to vector<8x1xf32>
    %726 = arith.addf %724, %725 : vector<8x1xf32>
    %727 = math.rsqrt %726 : vector<8x1xf32>
    %728 = vector.broadcast %727 : vector<8x1xf32> to vector<8x32xf32>
    %729 = arith.mulf %719, %728 : vector<8x32xf32>
    %730 = vector.broadcast %712 : vector<1x32xf32> to vector<8x32xf32>
    %731 = arith.mulf %729, %730 : vector<8x32xf32>
    %732 = vector.broadcast %713 : vector<1x32xf32> to vector<8x32xf32>
    %733 = arith.addf %731, %732 : vector<8x32xf32>
    %c0_359 = arith.constant 0 : index
    %c0_360 = arith.constant 0 : index
    %734 = vector.load %arg37[%c0_359, %c0_360] : memref<32x128xf32, #tpu.memory_space<vmem>>, vector<32x128xf32>
    %cst_361 = arith.constant dense<0.000000e+00> : vector<8x128xf32>
    %735 = tpu.matmul %733, %734, %cst_361 {dimension_numbers = #tpu.dot_dimension_numbers<[1], [0], [0], [1], [0, 0, 1, 1], [], []>} : vector<8x32xf32>, vector<32x128xf32>, vector<8x128xf32> -> vector<8x128xf32>
    %c0_362 = arith.constant 0 : index
    %c0_363 = arith.constant 0 : index
    %736 = vector.load %arg38[%c0_362, %c0_363] : memref<1x128xf32, #tpu.memory_space<vmem>>, vector<1x128xf32>
    %737 = vector.broadcast %736 : vector<1x128xf32> to vector<8x128xf32>
    %738 = arith.addf %735, %737 : vector<8x128xf32>
    %c0_364 = arith.constant 0 : index
    %c0_365 = arith.constant 0 : index
    %c0_366 = arith.constant 0 : index
    %739 = vector.load %arg39[%c0_364, %c0_365, %c0_366] : memref<1x8x128xf32, #tpu.memory_space<vmem>>, vector<1x8x128xf32>
    %740 = vector.shape_cast %739 : vector<1x8x128xf32> to vector<8x128xf32>
    %741 = vector.shape_cast %738 : vector<8x128xf32> to vector<1x8x128xf32>
    tpu.vector_store %arg39[%c0_364, %c0_365, %c0_366], %741 {strides = array<i32>} : memref<1x8x128xf32, #tpu.memory_space<vmem>>, vector<1x8x128xf32>,
    return
  }
  func.func @transform_0(%arg0: i32) -> (i32, i32, i32) {
    %c0_i32 = arith.constant 0 : i32
    %c0_i32_0 = arith.constant 0 : i32
    %c0_i32_1 = arith.constant 0 : i32
    return %arg0, %c0_i32, %c0_i32_0 : i32, i32, i32
  }
  func.func @transform_1(%arg0: i32) -> (i32, i32, i32) {
    %c0_i32 = arith.constant 0 : i32
    %c0_i32_0 = arith.constant 0 : i32
    %c0_i32_1 = arith.constant 0 : i32
    return %arg0, %c0_i32, %c0_i32_0 : i32, i32, i32
  }
  func.func @transform_2(%arg0: i32) -> (i32, i32, i32) {
    %c0_i32 = arith.constant 0 : i32
    %c0_i32_0 = arith.constant 0 : i32
    %c0_i32_1 = arith.constant 0 : i32
    %c0_i32_2 = arith.constant 0 : i32
    return %c0_i32, %c0_i32_0, %c0_i32_1 : i32, i32, i32
  }
  func.func @transform_3(%arg0: i32) -> (i32, i32, i32) {
    %c0_i32 = arith.constant 0 : i32
    %c0_i32_0 = arith.constant 0 : i32
    %c0_i32_1 = arith.constant 0 : i32
    %c0_i32_2 = arith.constant 0 : i32
    return %c0_i32, %c0_i32_0, %c0_i32_1 : i32, i32, i32
  }
  func.func @transform_4(%arg0: i32) -> (i32, i32, i32) {
    %c0_i32 = arith.constant 0 : i32
    %c0_i32_0 = arith.constant 0 : i32
    %c0_i32_1 = arith.constant 0 : i32
    %c0_i32_2 = arith.constant 0 : i32
    return %c0_i32, %c0_i32_0, %c0_i32_1 : i32, i32, i32
  }
  func.func @transform_5(%arg0: i32) -> (i32, i32, i32) {
    %c0_i32 = arith.constant 0 : i32
    %c0_i32_0 = arith.constant 0 : i32
    %c0_i32_1 = arith.constant 0 : i32
    %c0_i32_2 = arith.constant 0 : i32
    return %c0_i32, %c0_i32_0, %c0_i32_1 : i32, i32, i32
  }
  func.func @transform_6(%arg0: i32) -> (i32, i32, i32) {
    %c0_i32 = arith.constant 0 : i32
    %c0_i32_0 = arith.constant 0 : i32
    %c0_i32_1 = arith.constant 0 : i32
    %c0_i32_2 = arith.constant 0 : i32
    return %c0_i32, %c0_i32_0, %c0_i32_1 : i32, i32, i32
  }
  func.func @transform_7(%arg0: i32) -> (i32, i32, i32) {
    %c0_i32 = arith.constant 0 : i32
    %c0_i32_0 = arith.constant 0 : i32
    %c0_i32_1 = arith.constant 0 : i32
    %c0_i32_2 = arith.constant 0 : i32
    return %c0_i32, %c0_i32_0, %c0_i32_1 : i32, i32, i32
  }
  func.func @transform_8(%arg0: i32) -> (i32, i32, i32) {
    %c0_i32 = arith.constant 0 : i32
    %c0_i32_0 = arith.constant 0 : i32
    %c0_i32_1 = arith.constant 0 : i32
    %c0_i32_2 = arith.constant 0 : i32
    return %c0_i32, %c0_i32_0, %c0_i32_1 : i32, i32, i32
  }
  func.func @transform_9(%arg0: i32) -> (i32, i32, i32) {
    %c0_i32 = arith.constant 0 : i32
    %c0_i32_0 = arith.constant 0 : i32
    %c0_i32_1 = arith.constant 0 : i32
    %c0_i32_2 = arith.constant 0 : i32
    return %c0_i32, %c0_i32_0, %c0_i32_1 : i32, i32, i32
  }
  func.func @transform_10(%arg0: i32) -> (i32, i32, i32) {
    %c0_i32 = arith.constant 0 : i32
    %c0_i32_0 = arith.constant 0 : i32
    %c0_i32_1 = arith.constant 0 : i32
    %c0_i32_2 = arith.constant 0 : i32
    return %c0_i32, %c0_i32_0, %c0_i32_1 : i32, i32, i32
  }
  func.func @transform_11(%arg0: i32) -> (i32, i32, i32) {
    %c0_i32 = arith.constant 0 : i32
    %c0_i32_0 = arith.constant 0 : i32
    %c0_i32_1 = arith.constant 0 : i32
    %c0_i32_2 = arith.constant 0 : i32
    return %c0_i32, %c0_i32_0, %c0_i32_1 : i32, i32, i32
  }
  func.func @transform_12(%arg0: i32) -> (i32, i32, i32) {
    %c0_i32 = arith.constant 0 : i32
    %c0_i32_0 = arith.constant 0 : i32
    %c0_i32_1 = arith.constant 0 : i32
    %c0_i32_2 = arith.constant 0 : i32
    return %c0_i32, %c0_i32_0, %c0_i32_1 : i32, i32, i32
  }
  func.func @transform_13(%arg0: i32) -> (i32, i32, i32) {
    %c0_i32 = arith.constant 0 : i32
    %c0_i32_0 = arith.constant 0 : i32
    %c0_i32_1 = arith.constant 0 : i32
    %c0_i32_2 = arith.constant 0 : i32
    return %c0_i32, %c0_i32_0, %c0_i32_1 : i32, i32, i32
  }
  func.func @transform_14(%arg0: i32) -> (i32, i32, i32) {
    %c0_i32 = arith.constant 0 : i32
    %c0_i32_0 = arith.constant 0 : i32
    %c0_i32_1 = arith.constant 0 : i32
    %c0_i32_2 = arith.constant 0 : i32
    return %c0_i32, %c0_i32_0, %c0_i32_1 : i32, i32, i32
  }
  func.func @transform_15(%arg0: i32) -> (i32, i32, i32) {
    %c0_i32 = arith.constant 0 : i32
    %c0_i32_0 = arith.constant 0 : i32
    %c0_i32_1 = arith.constant 0 : i32
    %c0_i32_2 = arith.constant 0 : i32
    return %c0_i32, %c0_i32_0, %c0_i32_1 : i32, i32, i32
  }
  func.func @transform_16(%arg0: i32) -> (i32, i32, i32) {
    %c0_i32 = arith.constant 0 : i32
    %c0_i32_0 = arith.constant 0 : i32
    %c0_i32_1 = arith.constant 0 : i32
    %c0_i32_2 = arith.constant 0 : i32
    return %c0_i32, %c0_i32_0, %c0_i32_1 : i32, i32, i32
  }
  func.func @transform_17(%arg0: i32) -> (i32, i32, i32) {
    %c0_i32 = arith.constant 0 : i32
    %c0_i32_0 = arith.constant 0 : i32
    %c0_i32_1 = arith.constant 0 : i32
    %c0_i32_2 = arith.constant 0 : i32
    return %c0_i32, %c0_i32_0, %c0_i32_1 : i32, i32, i32
  }
  func.func @transform_18(%arg0: i32) -> (i32, i32, i32) {
    %c0_i32 = arith.constant 0 : i32
    %c0_i32_0 = arith.constant 0 : i32
    %c0_i32_1 = arith.constant 0 : i32
    %c0_i32_2 = arith.constant 0 : i32
    return %c0_i32, %c0_i32_0, %c0_i32_1 : i32, i32, i32
  }
  func.func @transform_19(%arg0: i32) -> (i32, i32, i32) {
    %c0_i32 = arith.constant 0 : i32
    %c0_i32_0 = arith.constant 0 : i32
    %c0_i32_1 = arith.constant 0 : i32
    %c0_i32_2 = arith.constant 0 : i32
    return %c0_i32, %c0_i32_0, %c0_i32_1 : i32, i32, i32
  }
  func.func @transform_20(%arg0: i32) -> (i32, i32, i32) {
    %c0_i32 = arith.constant 0 : i32
    %c0_i32_0 = arith.constant 0 : i32
    %c0_i32_1 = arith.constant 0 : i32
    %c0_i32_2 = arith.constant 0 : i32
    return %c0_i32, %c0_i32_0, %c0_i32_1 : i32, i32, i32
  }
  func.func @transform_21(%arg0: i32) -> (i32, i32, i32) {
    %c0_i32 = arith.constant 0 : i32
    %c0_i32_0 = arith.constant 0 : i32
    %c0_i32_1 = arith.constant 0 : i32
    %c0_i32_2 = arith.constant 0 : i32
    return %c0_i32, %c0_i32_0, %c0_i32_1 : i32, i32, i32
  }
  func.func @transform_22(%arg0: i32) -> (i32, i32, i32) {
    %c0_i32 = arith.constant 0 : i32
    %c0_i32_0 = arith.constant 0 : i32
    %c0_i32_1 = arith.constant 0 : i32
    %c0_i32_2 = arith.constant 0 : i32
    return %c0_i32, %c0_i32_0, %c0_i32_1 : i32, i32, i32
  }
  func.func @transform_23(%arg0: i32) -> (i32, i32, i32) {
    %c0_i32 = arith.constant 0 : i32
    %c0_i32_0 = arith.constant 0 : i32
    %c0_i32_1 = arith.constant 0 : i32
    %c0_i32_2 = arith.constant 0 : i32
    return %c0_i32, %c0_i32_0, %c0_i32_1 : i32, i32, i32
  }
  func.func @transform_24(%arg0: i32) -> (i32, i32, i32) {
    %c0_i32 = arith.constant 0 : i32
    %c0_i32_0 = arith.constant 0 : i32
    %c0_i32_1 = arith.constant 0 : i32
    %c0_i32_2 = arith.constant 0 : i32
    return %c0_i32, %c0_i32_0, %c0_i32_1 : i32, i32, i32
  }
  func.func @transform_25(%arg0: i32) -> (i32, i32, i32) {
    %c0_i32 = arith.constant 0 : i32
    %c0_i32_0 = arith.constant 0 : i32
    %c0_i32_1 = arith.constant 0 : i32
    %c0_i32_2 = arith.constant 0 : i32
    return %c0_i32, %c0_i32_0, %c0_i32_1 : i32, i32, i32
  }
  func.func @transform_26(%arg0: i32) -> (i32, i32, i32) {
    %c0_i32 = arith.constant 0 : i32
    %c0_i32_0 = arith.constant 0 : i32
    %c0_i32_1 = arith.constant 0 : i32
    %c0_i32_2 = arith.constant 0 : i32
    return %c0_i32, %c0_i32_0, %c0_i32_1 : i32, i32, i32
  }
  func.func @transform_27(%arg0: i32) -> (i32, i32, i32) {
    %c0_i32 = arith.constant 0 : i32
    %c0_i32_0 = arith.constant 0 : i32
    %c0_i32_1 = arith.constant 0 : i32
    %c0_i32_2 = arith.constant 0 : i32
    return %c0_i32, %c0_i32_0, %c0_i32_1 : i32, i32, i32
  }
  func.func @transform_28(%arg0: i32) -> (i32, i32, i32) {
    %c0_i32 = arith.constant 0 : i32
    %c0_i32_0 = arith.constant 0 : i32
    %c0_i32_1 = arith.constant 0 : i32
    %c0_i32_2 = arith.constant 0 : i32
    return %c0_i32, %c0_i32_0, %c0_i32_1 : i32, i32, i32
  }
  func.func @transform_29(%arg0: i32) -> (i32, i32, i32) {
    %c0_i32 = arith.constant 0 : i32
    %c0_i32_0 = arith.constant 0 : i32
    %c0_i32_1 = arith.constant 0 : i32
    %c0_i32_2 = arith.constant 0 : i32
    return %c0_i32, %c0_i32_0, %c0_i32_1 : i32, i32, i32
  }
  func.func @transform_30(%arg0: i32) -> (i32, i32, i32) {
    %c0_i32 = arith.constant 0 : i32
    %c0_i32_0 = arith.constant 0 : i32
    %c0_i32_1 = arith.constant 0 : i32
    %c0_i32_2 = arith.constant 0 : i32
    return %c0_i32, %c0_i32_0, %c0_i32_1 : i32, i32, i32
  }
  func.func @transform_31(%arg0: i32) -> (i32, i32, i32) {
    %c0_i32 = arith.constant 0 : i32
    %c0_i32_0 = arith.constant 0 : i32
    %c0_i32_1 = arith.constant 0 : i32
    %c0_i32_2 = arith.constant 0 : i32
    return %c0_i32, %c0_i32_0, %c0_i32_1 : i32, i32, i32
  }
  func.func @transform_32(%arg0: i32) -> (i32, i32) {
    %c0_i32 = arith.constant 0 : i32
    %c0_i32_0 = arith.constant 0 : i32
    %c0_i32_1 = arith.constant 0 : i32
    return %c0_i32, %c0_i32_0 : i32, i32
  }
  func.func @transform_33(%arg0: i32) -> (i32, i32) {
    %c0_i32 = arith.constant 0 : i32
    %c0_i32_0 = arith.constant 0 : i32
    %c0_i32_1 = arith.constant 0 : i32
    return %c0_i32, %c0_i32_0 : i32, i32
  }
  func.func @transform_34(%arg0: i32) -> (i32, i32) {
    %c0_i32 = arith.constant 0 : i32
    %c0_i32_0 = arith.constant 0 : i32
    %c0_i32_1 = arith.constant 0 : i32
    return %c0_i32, %c0_i32_0 : i32, i32
  }
  func.func @transform_35(%arg0: i32) -> (i32, i32) {
    %c0_i32 = arith.constant 0 : i32
    %c0_i32_0 = arith.constant 0 : i32
    %c0_i32_1 = arith.constant 0 : i32
    return %c0_i32, %c0_i32_0 : i32, i32
  }
  func.func @transform_36(%arg0: i32) -> (i32, i32) {
    %c0_i32 = arith.constant 0 : i32
    %c0_i32_0 = arith.constant 0 : i32
    %c0_i32_1 = arith.constant 0 : i32
    return %c0_i32, %c0_i32_0 : i32, i32
  }
  func.func @transform_37(%arg0: i32) -> (i32, i32) {
    %c0_i32 = arith.constant 0 : i32
    %c0_i32_0 = arith.constant 0 : i32
    %c0_i32_1 = arith.constant 0 : i32
    return %c0_i32, %c0_i32_0 : i32, i32
  }
  func.func @transform_38(%arg0: i32) -> (i32, i32, i32) {
    %c0_i32 = arith.constant 0 : i32
    %c0_i32_0 = arith.constant 0 : i32
    %c0_i32_1 = arith.constant 0 : i32
    return %arg0, %c0_i32, %c0_i32_0 : i32, i32, i32
  }
}

</mosaic_0001>

<bundles_post_ra>
// kernel: encoder_decoder_forward.1
= control target key start
LH: loop header
LB: loop body
LE: loop exit
PB: predicated region body
PF: predicated region fallthrough
CT: control target
= control target key end

     0   :  { %s7843_s6 = smov 1   ;;  %s7844_s10 = smov 2   ;;  %s8933_s0 = inlined_call_operand.smem [shape: u32[39], index: -1, kind: input, shape index: {}] }
   0x1   :  { %s7907_s5 = sld [smem:[%s8933_s0]]   ;;  %s7845_s14 = smov 3  }
   0x2   :  { %s7912_s9 = sld [smem:[%s8933_s0 + %s7843_s6]]   ;;  %s7846_s18 = smov 4  }
   0x3   :  { %s7917_s13 = sld [smem:[%s8933_s0 + %s7844_s10]]   ;;  %s7847_s22 = smov 5  }
   0x4   :  { %s7922_s17 = sld [smem:[%s8933_s0 + %s7845_s14]]   ;;  %s7848_s26 = smov 6  }
   0x5   :  { %s7927_s21 = sld [smem:[%s8933_s0 + %s7846_s18]]   ;;  %s7849_s30 = smov 7  }
   0x6   :  { %s7932_s25 = sld [smem:[%s8933_s0 + %s7847_s22]]   ;;  %s7850_s4 = smov 8  }
   0x7   :  { %9003 = sst [smem:[#allocation5_spill]] %s7907_s5  ;;  %s7851_s10 = smov 9  }
   0x8   :  { %9004 = sst [smem:[#allocation6_spill]] %s7912_s9  ;;  %s7852_s15 = smov 10  }
   0x9   :  { %9005 = sst [smem:[#allocation7_spill]] %s7917_s13  ;;  %s7853_s20 = smov 11  }
   0xa   :  { %9006 = sst [smem:[#allocation8_spill]] %s7922_s17  ;;  %s7855_s1 = smov 13  }
   0xb   :  { %9007 = sst [smem:[#allocation9_spill]] %s7927_s21  ;;  %s7856_s7 = smov 14  }
   0xc   :  { %9008 = sst [smem:[#allocation10_spill]] %s7932_s25  ;;  %s7858_s22 = smov 16  }
   0xd   :  { %s7937_s29 = sld [smem:[%s8933_s0 + %s7848_s26]]   ;;  %s7854_s26 = smov 12  }
   0xe   :  { %s7942_s3 = sld [smem:[%s8933_s0 + %s7849_s30]]   ;;  %s7859_s28 = smov 17  }
   0xf   :  { %s7947_s8 = sld [smem:[%s8933_s0 + %s7850_s4]]  }
  0x10   :  { %s7952_s14 = sld [smem:[%s8933_s0 + %s7851_s10]]  }
  0x11   :  { %s7957_s19 = sld [smem:[%s8933_s0 + %s7852_s15]]   ;;  %s7857_s15 = smov 15  }
  0x12   :  { %s7962_s24 = sld [smem:[%s8933_s0 + %s7853_s20]]  }
  0x13   :  { %9009 = sst [smem:[#allocation11_spill]] %s7937_s29 }
  0x14   :  { %9010 = sst [smem:[#allocation12_spill]] %s7942_s3 }
  0x15   :  { %9011 = sst [smem:[#allocation13_spill]] %s7947_s8 }
  0x16   :  { %9012 = sst [smem:[#allocation14_spill]] %s7952_s14 }
  0x17   :  { %9013 = sst [smem:[#allocation15_spill]] %s7957_s19 }
  0x18   :  { %9014 = sst [smem:[#allocation16_spill]] %s7962_s24 }
  0x19   :  { %s7967_s30 = sld [smem:[%s8933_s0 + %s7854_s26]]  }
  0x1a   :  { %s7972_s6 = sld [smem:[%s8933_s0 + %s7855_s1]]  }
  0x1b   :  { %s7977_s12 = sld [smem:[%s8933_s0 + %s7856_s7]]   ;;  %s7860_s7 = smov 18  }
  0x1c   :  { %s7982_s20 = sld [smem:[%s8933_s0 + %s7857_s15]]   ;;  %s7861_s15 = smov 19  }
  0x1d   :  { %s7987_s27 = sld [smem:[%s8933_s0 + %s7858_s22]]   ;;  %s7862_s22 = smov 20  }
  0x1e   :  { %s7992_s4 = sld [smem:[%s8933_s0 + %s7859_s28]]   ;;  %s7863_s28 = smov 21  }
  0x1f   :  { %9015 = sst [smem:[#allocation17_spill]] %s7967_s30 }
  0x20   :  { %9016 = sst [smem:[#allocation18_spill]] %s7972_s6 }
  0x21   :  { %s7997_s9 = sld [smem:[%s8933_s0 + %s7860_s7]]   ;;  %s7864_s7 = smov 22  }
  0x22   :  { %9017 = sst [smem:[#allocation19_spill]] %s7982_s20 }
  0x23   :  { %9018 = sst [smem:[#allocation20_spill]] %s7987_s27 }
  0x24   :  { %9019 = sst [smem:[#allocation21_spill]] %s7992_s4 }
  0x25   :  { %s8002_s20 = sld [smem:[%s8933_s0 + %s7861_s15]]   ;;  %s7865_s15 = smov 23  }
  0x26   :  { %s8007_s27 = sld [smem:[%s8933_s0 + %s7862_s22]]   ;;  %s7866_s22 = smov 24  }
  0x27   :  { %9020 = sst [smem:[#allocation22_spill]] %s7997_s9 }
  0x28   :  { %s8012_s4 = sld [smem:[%s8933_s0 + %s7863_s28]]   ;;  %s7867_s28 = smov 25  }
  0x29   :  { %s8017_s9 = sld [smem:[%s8933_s0 + %s7864_s7]]   ;;  %s7868_s7 = smov 26  }
  0x2b   :  { %9021 = sst [smem:[#allocation23_spill]] %s8002_s20 }
  0x2c   :  { %9022 = sst [smem:[#allocation24_spill]] %s8007_s27 }
  0x2d   :  { %s8022_s20 = sld [smem:[%s8933_s0 + %s7865_s15]]   ;;  %s7869_s15 = smov 27  }
  0x2e   :  { %9023 = sst [smem:[#allocation25_spill]] %s8012_s4 }
  0x2f   :  { %9024 = sst [smem:[#allocation26_spill]] %s8017_s9 }
  0x30   :  { %s8027_s27 = sld [smem:[%s8933_s0 + %s7866_s22]]   ;;  %s7870_s22 = smov 28  }
  0x31   :  { %s8032_s4 = sld [smem:[%s8933_s0 + %s7867_s28]]   ;;  %s7871_s28 = smov 29  }
  0x32   :  { %s8037_s9 = sld [smem:[%s8933_s0 + %s7868_s7]]   ;;  %s7872_s7 = smov 30  }
  0x33   :  { %9025 = sst [smem:[#allocation27_spill]] %s8022_s20 }
  0x34   :  { %s8042_s20 = sld [smem:[%s8933_s0 + %s7869_s15]]   ;;  %s7873_s15 = smov 31  }
  0x36   :  { %9026 = sst [smem:[#allocation28_spill]] %s8027_s27 }
  0x37   :  { %9027 = sst [smem:[#allocation29_spill]] %s8032_s4 }
  0x38   :  { %9028 = sst [smem:[#allocation30_spill]] %s8037_s9 }
  0x39   :  { %s8047_s27 = sld [smem:[%s8933_s0 + %s7870_s22]]   ;;  %s7874_s22 = smov 32  }
  0x3a   :  { %9029 = sst [smem:[#allocation31_spill]] %s8042_s20 }
  0x3b   :  { %s8052_s4 = sld [smem:[%s8933_s0 + %s7871_s28]]   ;;  %s7875_s28 = smov 33  }
  0x3c   :  { %s8057_s9 = sld [smem:[%s8933_s0 + %s7872_s7]]   ;;  %s7876_s7 = smov 34  }
  0x3d   :  { %s8062_s20 = sld [smem:[%s8933_s0 + %s7873_s15]]   ;;  %s7877_s15 = smov 35  }
  0x3f   :  { %9030 = sst [smem:[#allocation32_spill]] %s8047_s27 }
  0x40   :  { %s8067_s27 = sld [smem:[%s8933_s0 + %s7874_s22]]   ;;  %s7878_s22 = smov 36  }
  0x41   :  { %9031 = sst [smem:[#allocation33_spill]] %s8052_s4 }
  0x42   :  { %9032 = sst [smem:[#allocation34_spill]] %s8057_s9 }
  0x43   :  { %9033 = sst [smem:[#allocation35_spill]] %s8062_s20 }
  0x44   :  { %s8072_s4 = sld [smem:[%s8933_s0 + %s7875_s28]]   ;;  %s7879_s28 = smov 37  }
  0x45   :  { %s8077_s9 = sld [smem:[%s8933_s0 + %s7876_s7]]   ;;  %s7880_s7 = smov 38  }
  0x46   :  { %9034 = sst [smem:[#allocation36_spill]] %s8067_s27 }
  0x47   :  { %s8082_s20 = sld [smem:[%s8933_s0 + %s7877_s15]]  }
  0x48   :  { %s8087_s27 = sld [smem:[%s8933_s0 + %s7878_s22]]  }
  0x4a   :  { %9035 = sst [smem:[#allocation37_spill]] %s8072_s4 }
  0x4b   :  { %9036 = sst [smem:[#allocation38_spill]] %s8077_s9 }
  0x4c   :  { %s8092_s4 = sld [smem:[%s8933_s0 + %s7879_s28]]  }
  0x4d   :  { %9037 = sst [smem:[#allocation39_spill]] %s8082_s20 }
  0x4e   :  { %9038 = sst [smem:[#allocation40_spill]] %s8087_s27 }
  0x4f   :  { %s8097_s9 = sld [smem:[%s8933_s0 + %s7880_s7]]  }
  0x52   :  { %9039 = sst [smem:[#allocation41_spill]] %s8092_s4 }
  0x55   :  { %9040 = sst [smem:[#allocation42_spill]] %s8097_s9 }
  0x56   :  { %82 = vsyncpa [#allocation3], 0 }
  0x57   :  { %84 = vsyncpa [#allocation3 + $0x1], 0  ;;  %s8099_s15 = smov 0   ;;  %s8101_s16 = smov 0  }
  0x58   :  { %s8103_s18 = smov 0   ;;  %s8105_s22 = smov 0  }
  0x59 LB: > { %s9041_s30 = sld [smem:[#allocation17_spill]]  ;;  %s8120_s0 = sadd.s32 4294967295, %s7841_s22   ;;  %s7841_s22 = sphi %s8105_s22, %s9113_s22   ;;  %s7837_s18 = sphi %s8103_s18, %s9116_s18   ;;  %s7833_s16 = sphi %s8101_s16, %s9115_s16   ;;  %s7829_s15 = sphi %s8099_s15, %s9114_s15  }
  0x5a   : > { %s9042_s29 = sld [smem:[#allocation11_spill]]  ;;  %s6654_s23 = sadd.s32 4294967294, %s7841_s22  }
  0x5b   : > { %s9043_s24 = sld [smem:[#allocation16_spill]]  ;;  %s8124_s26 = sadd.s32 1, %s7841_s22  }
  0x5c   : > { %s9044_s14 = sld [smem:[#allocation14_spill]]  ;;  %s905_s28 = sadd.s32 1, %s7837_s18 }
  0x5d   : > { %s9045_s8 = sld [smem:[#allocation13_spill]]  ;;  %s902_s1 = ssub.s32 %s7841_s22, %s8124_s26 }
  0x5e   : > { %s9046_s6 = sld [smem:[#allocation18_spill]]  ;;  %p915_p0 = scmp.ne.s32.totalorder %s7837_s18, %s7833_s16 }
  0x5f   : > { %s9047_s3 = sld [smem:[#allocation12_spill]]  ;;  %p903_p1 = scmp.eq.s32.totalorder %s902_s1, 0 }
  0x60   : > { %s9048_s19 = sld [smem:[#allocation15_spill]]  ;;  %p916_p2 = scmp.eq.s32.totalorder %s8120_s0, 1 }
  0x61   : > { %s9049_s25 = sld [smem:[#allocation10_spill]]  ;;  %p921_p3 = scmp.ne.s32.totalorder %s7833_s16, %s7829_s15 }
  0x62   : > { %s9050_s21 = sld [smem:[#allocation9_spill]]  ;;  %p922_p4 = scmp.eq.s32.totalorder %s6654_s23, 1 }
  0x63   : > { %s9051_s17 = sld [smem:[#allocation8_spill]]  ;;  %p8137_p5 = por %p916_p2, %p915_p0 }
  0x64   : > { %s9052_s13 = sld [smem:[#allocation7_spill]]  ;;  %p8141_p6 = por %p922_p4, %p921_p3 }
  0x65   : > { %9053 = sst [smem:[#allocation43_spill]] %s7829_s15  ;;  %p6657_p7 = scmp.ge.s32.totalorder %s7841_s22, 1 }
  0x66   : > { %9054 = sst [smem:[#allocation44_spill]] %s7833_s16  ;;  %p1063_p8 = scmp.lt.s32.totalorder %s7841_s22, 3 }
  0x67   : > { %9055 = sst [smem:[#allocation45_spill]] %s7837_s18 }
  0x68   : > { %9056 = sst [smem:[#allocation46_spill]] %s7841_s22  ;;  %p1064_p9 = pnand %p6657_p7, %p1063_p8 }
  0x69   : > { %9057 = sst [smem:[#allocation47_spill]] %s8120_s0  ;;  %p1161_p10 = scmp.lt.s32.totalorder (!%p1064_p9), %s8120_s0, 1 }
  0x6a   : > { %9058 = sst [smem:[#allocation48_spill]] %s8124_s26  ;;  %s8951_s1 = smov (!%p1064_p9), 96  }
  0x6b   : > { %s8135_s2 = scalar_select %p903_p1, %s7837_s18, %s905_s28  }
  0x6c   : > { %s9060_s7 = scalar_select %p8137_p5, 1, 0 }
  0x6d   : > { %9059 = sst [smem:[#allocation49_spill]] %s8135_s2  ;;  %1067 = sbr.rel (%p1064_p9) target bundleno = 12721 (0x31b1), region = 172 }
  0x6e   : > { %9061 = sst [smem:[#allocation50_spill]] %s9060_s7  ;;  %s9071_s2 = smov (!%p1064_p9), 112  }
  0x6f   : > { %s9062_s10 = scalar_select %p8141_p6, 1, 0 }
  0x70   : > { %s9064_s5 = sld [smem:[#allocation5_spill]] (!%p1064_p9)  ;;  %s9072_s18 = smov (!%p1064_p9), 48  }
  0x71   : > { %9063 = sst [smem:[#allocation51_spill]] %s9062_s10  ;;  %s9073_s26 = smov (!%p1064_p9), 72  }
  0x72   : > { %v1175_v0 = vld [vmem:[%s9052_s13 + $0x18] sm:$0xff]  ;;  %v1174_v1 = vld [vmem:[%s9052_s13 + $0x10] sm:$0xff]  ;;  %v1173_v2 = vld [vmem:[%s9052_s13 + $0x8] sm:$0xff]  ;;  %s8152_s11 = scalar_select %p1161_p10, %s8120_s0, 1  ;;  %vm1188_vm0 = vcmask 261120   ;;  %vm1276_vm1 = vcmask 64512  }
  0x73   : > { %7102 = vmatprep.subr.mxu0 %v1175_v0  ;;  %v1172_v3 = vld [vmem:[%s9052_s13] sm:$0xff]  ;;  %vm1362_vm2 = vcmask 130048   ;;  %vm2106_vm3 = vcmask 195584   ;;  %vm2352_vm4 = vcmask 523264   ;;  %s9074_s10 = smov 104   ;;  %s9075_s15 = smov 40  }
  0x74   : > { %7103 = vmatpush3.msra.mxu0 %v1175_v0  ;;  %s6876_s23 = sshll.u32 %s8152_s11, 4  ;;  %v6662_v6 = vld [vmem:[%s9051_s17] ss:$0 sm:$0xff]  ;;  %s9076_s22 = smov 8   ;;  %vm7896_vm5 = vmmov 0  }
  0x75   : > { %7104 = vmatprep.subr.mxu0 %v1174_v1  ;;  %s9077_s7 = smov 16   ;;  %s9078_s9 = smov 24  }
  0x76   : > { %7105 = vmatpush3.msra.mxu0 %v1174_v1  ;;  %s1165_s28 = scalar_lea.vmem %s9064_s5, %s6876_s23  ;;  %s8953_s23 = smov 64  }
  0x77   : > { %7106 = vmatprep.subr.mxu0 %v1173_v2  ;;  %v8157_v4 = vld [vmem:[%s1165_s28] sm:$0xff]  ;;  %v8159_v5 = vld [vmem:[%s1165_s28 + $0x8] sm:$0xff]  ;;  %s8955_s28 = smov 120   ;;  %s9068_s5 = smov 64  }
  0x78   : > { %7107 = vmatpush3.msra.mxu0 %v1173_v2  ;;  %7110 = vmatprep.mubr.msk.f32.mxu0 %vm1188_vm0, %v8157_v4  ;;  %s9093_s0 = sld [smem:[#allocation32_spill]] }
  0x79   : > { %7108 = vmatprep.subr.mxu0 %v1172_v3  ;;  %s9094_s4 = sld [smem:[#allocation33_spill]] }
  0x7a   : > { %7109 = vmatpush3.msra.mxu0 %v1172_v3  ;;  %s9095_s16 = sld [smem:[#allocation27_spill]] }
  0x7b   : > { %7111 = vmatmul.mubr.msk.f32.vlgmr.msra.gmra.mxu0 %vm1188_vm0, %v8159_v5  ;;  %s9096_s27 = sld [smem:[#allocation29_spill]] }
 0x13b   : > { %v7112_v7 = vpop.f32.mrf.mxu0 }
 0x13c   : > { %v8166_v8 = vadd.f32 %v7112_v7, %v6662_v6 }
 0x13d   : > { %v1261_v9 = vpop.f32.mrf.mxu0 }
 0x13e   : > { %v8168_v10 = vadd.f32 %v6662_v6, %v1261_v9  ;;  %1274 = vrot.lane.b32.xlu0 %v8166_v8, %s8951_s1 }
 0x140   : > { %7117 = vmatprep.mubr.msk.f32.mxu1 %vm1276_vm1, %v8168_v10 }
 0x142   : > { %1272 = vrot.lane.b32.xlu0 %v8168_v10, %s8951_s1  ;;  %s8957_s1 = smov 88  }
 0x1b0   : > { %v1275_v11 = vpop.permute.xlu0 %1274 }
 0x1b1   : > { %7113 = vmatprep.subr.msk.mxu1 %vm1276_vm1, %v1275_v11 }
 0x1b2   : > { %7114 = vmatpush3.xpose.msk.msra.mxu1 %vm1276_vm1, %v1275_v11 }
 0x1b4   : > { %v1273_v12 = vpop.permute.xlu0 %1272 }
 0x1b5   : > { %7115 = vmatprep.subr.msk.mxu1 %vm1276_vm1, %v1273_v12 }
 0x1b6   : > { %7116 = vmatpush3.xpose.msk.msra.mxu1 %vm1276_vm1, %v1273_v12 }
 0x1b9   : > { %7118 = vmatmul.mubr.msk.f32.vlgmr.msra.gmra.mxu1 %vm1276_vm1, %v8166_v8 }
 0x279   : > { %v7119_v13 = vpop.f32.mrf.mxu1 }
 0x27a   : > { %v1361_v16 = vmul.f32 0.35355338, %v7119_v13 }
 0x27b   : > { %v1351_v14 = vpop.f32.mrf.mxu1 }
 0x27c   : > { %v1360_v15 = vmul.f32 0.35355338, %v1351_v14  ;;  %v1366_v18 = vsel %vm1362_vm2, %v1361_v16, -inf }
 0x27e   : > { %v1363_v17 = vsel %vm1362_vm2, %v1360_v15, -inf }
 0x27f   : > { %1364 = vmax.xlane.f32.xlu1 %v1363_v17 }
 0x283   : > { %1367 = vmax.xlane.f32.xlu1 %v1366_v18 }
 0x308   : > { %v1365_v19 = vpop.xlane.xlu1 %1364 }
 0x309   : > { %v1369_v20 = vsub.f32 %v1360_v15, %v1365_v19 }
 0x30b   : > { %v1371_v21 = vmul.f32 1.442695, %v1369_v20 }
 0x30c   : > { %v1368_v22 = vpop.xlane.xlu1 %1367 }
 0x30d   : > { %7651 = vpow2.f32 %v1371_v21  ;;  %v1370_v23 = vsub.f32 %v1361_v16, %v1368_v22 }
 0x30f   : > { %v1373_v24 = vmul.f32 1.442695, %v1370_v23 }
 0x311   : > { %7653 = vpow2.f32 %v1373_v24 }
 0x31a   : > { %v7652_v25 = vpop.eup %7651 }
 0x31b   : > { %v1375_v26 = vsel %vm1362_vm2, %v7652_v25, 0.0 }
 0x31c   : > { %1376 = vadd.xlane.f32.xlu0 %v1375_v26 }
 0x31e   : > { %v7654_v27 = vpop.eup %7653 }
 0x31f   : > { %v1378_v28 = vsel %vm1362_vm2, %v7654_v27, 0.0 }
 0x320   : > { %1379 = vadd.xlane.f32.xlu1 %v1378_v28 }
 0x331   : > { %1387 = vrot.lane.b32.xlu1 %v8166_v8, %s8953_s23 }
 0x332   : > { %1472 = vrot.lane.b32.xlu0 %v8168_v10, %s8955_s28 }
 0x335   : > { %1385 = vrot.lane.b32.xlu1 %v8168_v10, %s8953_s23  ;;  %s8963_s23 = smov 56  }
 0x339   : > { %1478 = vrot.lane.b32.xlu1 %v8166_v8, %s8957_s1 }
 0x33d   : > { %1476 = vrot.lane.b32.xlu1 %v8168_v10, %s8957_s1  ;;  %s8959_s1 = smov 112  }
 0x341   : > { %1474 = vrot.lane.b32.xlu1 %v8166_v8, %s8955_s28  ;;  %s8961_s28 = smov 80  }
 0x3a5   : > { %v1377_v29 = vpop.xlane.xlu0 %1376 }
 0x3a6   : > { %7655 = vrcp.f32 %v1377_v29 }
 0x3a9   : > { %v1380_v30 = vpop.xlane.xlu1 %1379  ;;  %v1473_v39 = vpop.permute.xlu0 %1472 }
 0x3aa   : > { %7657 = vrcp.f32 %v1380_v30 }
 0x3ad   : > { %v1388_v31 = vpop.permute.xlu1 %1387 }
 0x3ae   : > { %7120 = vmatprep.subr.mxu1 %v1388_v31 }
 0x3af   : > { %7121 = vmatpush3.msra.mxu1 %v1388_v31 }
 0x3b1   : > { %v1386_v32 = vpop.permute.xlu1 %1385 }
 0x3b2   : > { %7122 = vmatprep.subr.mxu1 %v1386_v32 }
 0x3b3   : > { %v7656_v33 = vpop.eup %7655  ;;  %7123 = vmatpush3.msra.mxu1 %v1386_v32 }
 0x3b4   : > { %v1382_v34 = vmul.f32 %v7656_v33, %v7652_v25 }
 0x3b5   : > { %v1479_v35 = vpop.permute.xlu1 %1478 }
 0x3b6   : > { %7124 = vmatprep.mubr.msk.f32.mxu1 %vm1362_vm2, %v1382_v34  ;;  %7127 = vmatprep.subr.msk.mxu1 %vm1276_vm1, %v1479_v35 }
 0x3b7   : > { %v7658_v36 = vpop.eup %7657 }
 0x3b8   : > { %v1384_v37 = vmul.f32 %v7658_v36, %v7654_v27 }
 0x3b9   : > { %v1477_v38 = vpop.permute.xlu1 %1476 }
 0x3ba   : > { %7125 = vmatmul.mubr.msk.f32.vlgmr.msra.gmra.mxu1 %vm1362_vm2, %v1384_v37 }
 0x3bb   : > { %7128 = vmatpush3.xpose.msk.msra.mxu1 %vm1276_vm1, %v1479_v35  ;;  %7131 = vmatprep.mubr.msk.f32.mxu1 %vm1276_vm1, %v1473_v39 }
 0x3bc   : > { %7129 = vmatprep.subr.msk.mxu1 %vm1276_vm1, %v1477_v38 }
 0x3bd   : > { %v1475_v40 = vpop.permute.xlu1 %1474 }
 0x3bf   : > { %7130 = vmatpush3.xpose.msk.msra.mxu1 %vm1276_vm1, %v1477_v38 }
 0x3c2   : > { %7132 = vmatmul.mubr.msk.f32.vlgmr.msra.gmra.mxu1 %vm1276_vm1, %v1475_v40 }
 0x47a   : > { %v8206_v41 = vpop.f32.mrf.mxu1 }
 0x47c   : > { %v8208_v42 = vpop.f32.mrf.mxu1 }
 0x482   : > { %v7133_v43 = vpop.f32.mrf.mxu1 }
 0x483   : > { %v1564_v44 = vmul.f32 0.35355338, %v7133_v43 }
 0x484   : > { %v1554_v45 = vpop.f32.mrf.mxu1 }
 0x485   : > { %v1563_v46 = vmul.f32 0.35355338, %v1554_v45  ;;  %v1568_v47 = vsel %vm1362_vm2, %v1564_v44, -inf }
 0x486   : > { %1569 = vmax.xlane.f32.xlu0 %v1568_v47 }
 0x487   : > { %v1565_v48 = vsel %vm1362_vm2, %v1563_v46, -inf }
 0x488   : > { %1566 = vmax.xlane.f32.xlu1 %v1565_v48 }
 0x499   : > { %1589 = vrot.lane.b32.xlu1 %v8166_v8, %s8963_s23 }
 0x49c   : > { %1587 = vrot.lane.b32.xlu0 %v8168_v10, %s8963_s23  ;;  %s8965_s23 = smov 104  }
 0x49d   : > { %1680 = vrot.lane.b32.xlu1 %v8166_v8, %s8961_s28 }
 0x4a0   : > { %1674 = vrot.lane.b32.xlu0 %v8168_v10, %s8959_s1 }
 0x4a1   : > { %1678 = vrot.lane.b32.xlu1 %v8168_v10, %s8961_s28  ;;  %s8967_s28 = smov 72  }
 0x50f   : > { %v1570_v49 = vpop.xlane.xlu0 %1569 }
 0x510   : > { %v1572_v50 = vsub.f32 %v1564_v44, %v1570_v49 }
 0x511   : > { %v1567_v51 = vpop.xlane.xlu1 %1566 }
 0x512   : > { %v1575_v52 = vmul.f32 1.442695, %v1572_v50  ;;  %v1571_v53 = vsub.f32 %v1563_v46, %v1567_v51 }
 0x513   : > { %v1588_v56 = vpop.permute.xlu0 %1587 }
 0x514   : > { %7659 = vpow2.f32 %v1575_v52  ;;  %v1573_v54 = vmul.f32 1.442695, %v1571_v53 }
 0x515   : > { %v1590_v55 = vpop.permute.xlu1 %1589 }
 0x516   : > { %7661 = vpow2.f32 %v1573_v54  ;;  %7134 = vmatprep.subr.mxu0 %v1590_v55 }
 0x517   : > { %7135 = vmatpush3.msra.mxu0 %v1590_v55  ;;  %v1675_v7 = vpop.permute.xlu0 %1674 }
 0x518   : > { %7136 = vmatprep.subr.mxu0 %v1588_v56 }
 0x519   : > { %7137 = vmatpush3.msra.mxu0 %v1588_v56  ;;  %v1681_v57 = vpop.permute.xlu1 %1680 }
 0x51a   : > { %7141 = vmatprep.subr.msk.mxu0 %vm1276_vm1, %v1681_v57 }
 0x51d   : > { %v1679_v62 = vpop.permute.xlu1 %1678 }
 0x521   : > { %v7660_v58 = vpop.eup %7659 }
 0x522   : > { %v1580_v59 = vsel %vm1362_vm2, %v7660_v58, 0.0 }
 0x523   : > { %v7662_v60 = vpop.eup %7661  ;;  %1581 = vadd.xlane.f32.xlu1 %v1580_v59 }
 0x524   : > { %v1577_v61 = vsel %vm1362_vm2, %v7662_v60, 0.0 }
 0x527   : > { %1578 = vadd.xlane.f32.xlu1 %v1577_v61 }
 0x538   : > { %1676 = vrot.lane.b32.xlu1 %v8166_v8, %s8959_s1  ;;  %s8969_s1 = smov 48  }
 0x5ac   : > { %v1582_v63 = vpop.xlane.xlu1 %1581 }
 0x5ad   : > { %7663 = vrcp.f32 %v1582_v63 }
 0x5b0   : > { %v1579_v0 = vpop.xlane.xlu1 %1578 }
 0x5b1   : > { %7665 = vrcp.f32 %v1579_v0 }
 0x5b4   : > { %v1677_v9 = vpop.permute.xlu1 %1676 }
 0x5ba   : > { %v7664_v1 = vpop.eup %7663 }
 0x5bb   : > { %v1586_v6 = vmul.f32 %v7664_v1, %v7660_v58 }
 0x5be   : > { %v7666_v2 = vpop.eup %7665 }
 0x5bf   : > { %v1584_v3 = vmul.f32 %v7666_v2, %v7662_v60 }
 0x5c1   : > { %7138 = vmatprep.mubr.msk.f32.mxu0 %vm1362_vm2, %v1584_v3 }
 0x5c2   : > { %7139 = vmatmul.mubr.msk.f32.vlgmr.msra.gmra.mxu0 %vm1362_vm2, %v1586_v6  ;;  %v1179_v6 = vld [vmem:[%s9050_s21 + $0x10] sm:$0xff] }
 0x5c3   : > { %7142 = vmatpush3.xpose.msk.msra.mxu0 %vm1276_vm1, %v1681_v57  ;;  %7145 = vmatprep.mubr.msk.f32.mxu0 %vm1276_vm1, %v1675_v7  ;;  %v1178_v7 = vld [vmem:[%s9050_s21 + $0x8] sm:$0xff] }
 0x5c4   : > { %7143 = vmatprep.subr.msk.mxu0 %vm1276_vm1, %v1679_v62 }
 0x5c7   : > { %7144 = vmatpush3.xpose.msk.msra.mxu0 %vm1276_vm1, %v1679_v62 }
 0x5ca   : > { %7146 = vmatmul.mubr.msk.f32.vlgmr.msra.gmra.mxu0 %vm1276_vm1, %v1677_v9  ;;  %v1177_v9 = vld [vmem:[%s9050_s21] sm:$0xff] }
 0x682   : > { %v8234_v11 = vpop.f32.mrf.mxu0 }
 0x684   : > { %v8236_v12 = vpop.f32.mrf.mxu0 }
 0x68a   : > { %v7147_v13 = vpop.f32.mrf.mxu0 }
 0x68b   : > { %v1766_v14 = vmul.f32 0.35355338, %v7147_v13 }
 0x68c   : > { %v1756_v15 = vpop.f32.mrf.mxu0 }
 0x68d   : > { %v1765_v16 = vmul.f32 0.35355338, %v1756_v15  ;;  %v1770_v17 = vsel %vm1362_vm2, %v1766_v14, -inf }
 0x68e   : > { %1771 = vmax.xlane.f32.xlu1 %v1770_v17 }
 0x68f   : > { %v1767_v18 = vsel %vm1362_vm2, %v1765_v16, -inf }
 0x690   : > { %1768 = vmax.xlane.f32.xlu0 %v1767_v18 }
 0x69f   : > { %1791 = vrot.lane.b32.xlu1 %v8166_v8, %s8969_s1 }
 0x6a3   : > { %1882 = vrot.lane.b32.xlu1 %v8166_v8, %s8967_s28 }
 0x6a7   : > { %1880 = vrot.lane.b32.xlu1 %v8168_v10, %s8967_s28  ;;  %s8975_s28 = smov 8  }
 0x6ab   : > { %1878 = vrot.lane.b32.xlu1 %v8166_v8, %s8965_s23 }
 0x717   : > { %v1772_v19 = vpop.xlane.xlu1 %1771 }
 0x718   : > { %v1774_v20 = vsub.f32 %v1766_v14, %v1772_v19 }
 0x719   : > { %v1769_v21 = vpop.xlane.xlu0 %1768 }
 0x71a   : > { %v1777_v22 = vmul.f32 1.442695, %v1774_v20  ;;  %v1773_v23 = vsub.f32 %v1765_v16, %v1769_v21 }
 0x71b   : > { %v1792_v24 = vpop.permute.xlu1 %1791 }
 0x71c   : > { %7667 = vpow2.f32 %v1777_v22  ;;  %v1775_v25 = vmul.f32 1.442695, %v1773_v23  ;;  %7148 = vmatprep.subr.mxu1 %v1792_v24 }
 0x71d   : > { %7149 = vmatpush3.msra.mxu1 %v1792_v24 }
 0x71e   : > { %7669 = vpow2.f32 %v1775_v25  ;;  %v6689_v25 = vld [vmem:[%s9049_s25] ss:$0 sm:$0xff] }
 0x71f   : > { %v1883_v33 = vpop.permute.xlu1 %1882 }
 0x723   : > { %v1881_v39 = vpop.permute.xlu1 %1880 }
 0x727   : > { %v1879_v40 = vpop.permute.xlu1 %1878 }
 0x729   : > { %v7668_v26 = vpop.eup %7667 }
 0x72a   : > { %v1782_v27 = vsel %vm1362_vm2, %v7668_v26, 0.0 }
 0x72b   : > { %v7670_v28 = vpop.eup %7669  ;;  %1783 = vadd.xlane.f32.xlu0 %v1782_v27 }
 0x72c   : > { %v1779_v29 = vsel %vm1362_vm2, %v7670_v28, 0.0 }
 0x72f   : > { %1780 = vadd.xlane.f32.xlu0 %v1779_v29 }
 0x745   : > { %1789 = vrot.lane.b32.xlu0 %v8168_v10, %s8969_s1  ;;  %s8971_s1 = smov 16  }
 0x749   : > { %1876 = vrot.lane.b32.xlu0 %v8168_v10, %s8965_s23  ;;  %s8977_s23 = smov 40  }
 0x7b4   : > { %v1784_v30 = vpop.xlane.xlu0 %1783 }
 0x7b5   : > { %7671 = vrcp.f32 %v1784_v30 }
 0x7b8   : > { %v1781_v31 = vpop.xlane.xlu0 %1780 }
 0x7b9   : > { %7673 = vrcp.f32 %v1781_v31 }
 0x7bc   : > { %v1790_v32 = vpop.permute.xlu0 %1789 }
 0x7bd   : > { %7150 = vmatprep.subr.mxu1 %v1790_v32 }
 0x7be   : > { %7151 = vmatpush3.msra.mxu1 %v1790_v32 }
 0x7bf   : > { %7155 = vmatprep.subr.msk.mxu1 %vm1276_vm1, %v1883_v33 }
 0x7c0   : > { %v1877_v38 = vpop.permute.xlu0 %1876 }
 0x7c2   : > { %v7672_v34 = vpop.eup %7671 }
 0x7c3   : > { %v1788_v37 = vmul.f32 %v7672_v34, %v7668_v26 }
 0x7c6   : > { %v7674_v35 = vpop.eup %7673 }
 0x7c7   : > { %v1786_v36 = vmul.f32 %v7674_v35, %v7670_v28 }
 0x7c9   : > { %7152 = vmatprep.mubr.msk.f32.mxu1 %vm1362_vm2, %v1786_v36 }
 0x7ca   : > { %7153 = vmatmul.mubr.msk.f32.vlgmr.msra.gmra.mxu1 %vm1362_vm2, %v1788_v37 }
 0x7cb   : > { %7156 = vmatpush3.xpose.msk.msra.mxu1 %vm1276_vm1, %v1883_v33  ;;  %7159 = vmatprep.mubr.msk.f32.mxu1 %vm1276_vm1, %v1877_v38 }
 0x7cc   : > { %7157 = vmatprep.subr.msk.mxu1 %vm1276_vm1, %v1881_v39 }
 0x7cf   : > { %7158 = vmatpush3.xpose.msk.msra.mxu1 %vm1276_vm1, %v1881_v39 }
 0x7d2   : > { %7160 = vmatmul.mubr.msk.f32.vlgmr.msra.gmra.mxu1 %vm1276_vm1, %v1879_v40  ;;  %v2246_v40 = vld [vmem:[%s9042_s29 + $0x18] sm:$0xff] }
 0x7d3   : > { %7180 = vmatprep.subr.mxu1 %v2246_v40 }
 0x7d4   : > { %7181 = vmatpush3.msra.mxu1 %v2246_v40 }
 0x88a   : > { %v7154_v43 = vpop.f32.mrf.mxu1 }
 0x88c   : > { %v1867_v44 = vpop.f32.mrf.mxu1 }
 0x892   : > { %v7161_v45 = vpop.f32.mrf.mxu1 }
 0x893   : > { %v1968_v46 = vmul.f32 0.35355338, %v7161_v45  ;;  %v2243_v45 = vld [vmem:[%s9042_s29] sm:$0xff] }
 0x894   : > { %v1958_v47 = vpop.f32.mrf.mxu1 }
 0x895   : > { %v1967_v48 = vmul.f32 0.35355338, %v1958_v47  ;;  %v1972_v49 = vsel %vm1362_vm2, %v1968_v46, -inf  ;;  %v2254_v47 = vld [vmem:[%s9045_s8 + $0x30] sm:$0xff] }
 0x896   : > { %1973 = vmax.xlane.f32.xlu1 %v1972_v49  ;;  %v2252_v49 = vld [vmem:[%s9045_s8 + $0x20] sm:$0xff] }
 0x897   : > { %v1969_v50 = vsel %vm1362_vm2, %v1967_v48, -inf }
 0x898   : > { %1970 = vmax.xlane.f32.xlu0 %v1969_v50 }
 0x8a7   : > { %1993 = vrot.lane.b32.xlu1 %v8166_v8, %s8977_s23 }
 0x8ab   : > { %2080 = vrot.lane.b32.xlu1 %v8236_v12, %s8975_s28 }
 0x8af   : > { %2082 = vrot.lane.b32.xlu1 %v8234_v11, %s8975_s28  ;;  %s9066_s28 = smov 88  }
 0x8b3   : > { %2090 = vrot.lane.b32.xlu1 %v7154_v43, %s8971_s1  ;;  %v2245_v43 = vld [vmem:[%s9042_s29 + $0x10] sm:$0xff] }
 0x8b4   : > { %7182 = vmatprep.subr.mxu1 %v2245_v43 }
 0x8b5   : > { %7183 = vmatpush3.msra.mxu1 %v2245_v43  ;;  %v6700_v43 = vld [vmem:[%s9041_s30] ss:$0 sm:$0xff] }
 0x91f   : > { %v1974_v51 = vpop.xlane.xlu1 %1973 }
 0x920   : > { %v1976_v52 = vsub.f32 %v1968_v46, %v1974_v51  ;;  %v2255_v46 = vld [vmem:[%s9045_s8 + $0x38] sm:$0xff] }
 0x921   : > { %v1971_v53 = vpop.xlane.xlu0 %1970 }
 0x922   : > { %v1979_v54 = vmul.f32 1.442695, %v1976_v52  ;;  %v1975_v55 = vsub.f32 %v1967_v48, %v1971_v53  ;;  %v2253_v48 = vld [vmem:[%s9045_s8 + $0x28] sm:$0xff] }
 0x923   : > { %v1994_v56 = vpop.permute.xlu1 %1993 }
 0x924   : > { %7675 = vpow2.f32 %v1979_v54  ;;  %v1977_v57 = vmul.f32 1.442695, %v1975_v55  ;;  %7162 = vmatprep.subr.mxu0 %v1994_v56 }
 0x925   : > { %7163 = vmatpush3.msra.mxu0 %v1994_v56 }
 0x926   : > { %7677 = vpow2.f32 %v1977_v57  ;;  %v6692_v57 = vld [vmem:[%s9048_s19] ss:$0 sm:$0xff] }
 0x927   : > { %v2081_v13 = vpop.permute.xlu1 %2080 }
 0x928   : > { %v2102_v17 = vsel %vm1276_vm1, %v8208_v42, %v2081_v13 }
 0x92b   : > { %v2083_v14 = vpop.permute.xlu1 %2082 }
 0x92c   : > { %v2103_v19 = vsel %vm1276_vm1, %v8206_v41, %v2083_v14 }
 0x92f   : > { %v2091_v15 = vpop.permute.xlu1 %2090 }
 0x930   : > { %v2105_v22 = vsel %vm1362_vm2, %v2103_v19, %v2091_v15  ;;  %v6697_v15 = vld [vmem:[%s9044_s14] ss:$0 sm:$0xff] }
 0x931   : > { %v7676_v8 = vpop.eup %7675 }
 0x932   : > { %v1984_v58 = vsel %vm1362_vm2, %v7676_v8, 0.0 }
 0x933   : > { %v7678_v59 = vpop.eup %7677  ;;  %1985 = vadd.xlane.f32.xlu0 %v1984_v58  ;;  %v6693_v58 = vld [vmem:[%s9043_s24] ss:$0 sm:$0xff] }
 0x934   : > { %v1981_v60 = vsel %vm1362_vm2, %v7678_v59, 0.0 }
 0x937   : > { %1982 = vadd.xlane.f32.xlu0 %v1981_v60 }
 0x94d   : > { %1991 = vrot.lane.b32.xlu0 %v8168_v10, %s8977_s23  ;;  %v1180_v10 = vld [vmem:[%s9050_s21 + $0x18] sm:$0xff]  ;;  %s9067_s23 = smov 120  }
 0x951   : > { %2088 = vrot.lane.b32.xlu0 %v1867_v44, %s8971_s1  ;;  %s8973_s1 = smov 24   ;;  %v2244_v44 = vld [vmem:[%s9042_s29 + $0x8] sm:$0xff] }
 0x952   : > { %7184 = vmatprep.subr.mxu1 %v2244_v44 }
 0x953   : > { %7185 = vmatpush3.msra.mxu1 %v2244_v44 }
 0x954   : > { %7186 = vmatprep.subr.mxu1 %v2243_v45 }
 0x955   : > { %7187 = vmatpush3.msra.mxu1 %v2243_v45 }
 0x9bc   : > { %v1986_v61 = vpop.xlane.xlu0 %1985 }
 0x9bd   : > { %7679 = vrcp.f32 %v1986_v61 }
 0x9c0   : > { %v1983_v62 = vpop.xlane.xlu0 %1982 }
 0x9c1   : > { %7681 = vrcp.f32 %v1983_v62 }
 0x9c4   : > { %v1992_v63 = vpop.permute.xlu0 %1991 }
 0x9c5   : > { %7164 = vmatprep.subr.mxu0 %v1992_v63 }
 0x9c6   : > { %7165 = vmatpush3.msra.mxu0 %v1992_v63 }
 0x9c7   : > { %7169 = vmatprep.subr.mxu0 %v1180_v10 }
 0x9c8   : > { %v2089_v16 = vpop.permute.xlu0 %2088 }
 0x9c9   : > { %v2104_v20 = vsel %vm1362_vm2, %v2102_v17, %v2089_v16 }
 0x9ca   : > { %v7680_v0 = vpop.eup %7679 }
 0x9cb   : > { %v1990_v3 = vmul.f32 %v7680_v0, %v7676_v8 }
 0x9ce   : > { %v7682_v1 = vpop.eup %7681 }
 0x9cf   : > { %v1988_v2 = vmul.f32 %v7682_v1, %v7678_v59  ;;  %v2251_v1 = vld [vmem:[%s9045_s8 + $0x18] sm:$0xff] }
 0x9d1   : > { %7166 = vmatprep.mubr.msk.f32.mxu0 %vm1362_vm2, %v1988_v2  ;;  %v2250_v2 = vld [vmem:[%s9045_s8 + $0x10] sm:$0xff] }
 0x9d2   : > { %7167 = vmatmul.mubr.msk.f32.vlgmr.msra.gmra.mxu0 %vm1362_vm2, %v1990_v3  ;;  %v2249_v3 = vld [vmem:[%s9045_s8 + $0x8] sm:$0xff] }
 0x9d3   : > { %7170 = vmatpush3.msra.mxu0 %v1180_v10  ;;  %v2248_v10 = vld [vmem:[%s9045_s8] sm:$0xff] }
 0x9d4   : > { %7171 = vmatprep.subr.mxu0 %v1179_v6 }
 0x9d5   : > { %7172 = vmatpush3.msra.mxu0 %v1179_v6  ;;  %v6694_v6 = vld [vmem:[%s9047_s3] ss:$0 sm:$0xff] }
 0x9d6   : > { %7173 = vmatprep.subr.mxu0 %v1178_v7 }
 0x9d7   : > { %7174 = vmatpush3.msra.mxu0 %v1178_v7 }
 0x9d8   : > { %7175 = vmatprep.subr.mxu0 %v1177_v9 }
 0x9d9   : > { %7176 = vmatpush3.msra.mxu0 %v1177_v9 }
 0x9da   : > { %7191 = vmatprep.subr.mxu0 %v2255_v46 }
 0xa92   : > { %v7168_v11 = vpop.f32.mrf.mxu0 }
 0xa93   : > { %2098 = vrot.lane.b32.xlu1 %v7168_v11, %s8973_s1 }
 0xa94   : > { %v2069_v12 = vpop.f32.mrf.mxu0 }
 0xa95   : > { %2096 = vrot.lane.b32.xlu0 %v2069_v12, %s8973_s1  ;;  %s9065_s1 = smov 96  }
 0xb05   : > { %v2099_v18 = vpop.permute.xlu1 %2098 }
 0xb06   : > { %v2108_v24 = vsel %vm2106_vm3, %v2105_v22, %v2099_v18 }
 0xb07   : > { %v2097_v21 = vpop.permute.xlu0 %2096 }
 0xb08   : > { %v2107_v23 = vsel %vm2106_vm3, %v2104_v20, %v2097_v21 }
 0xb09   : > { %7177 = vmatprep.mubr.msk.f32.mxu0 %vm1188_vm0, %v2107_v23 }
 0xb0a   : > { %7178 = vmatmul.mubr.msk.f32.vlgmr.msra.gmra.mxu0 %vm1188_vm0, %v2108_v24 }
 0xb0b   : > { %7192 = vmatpush3.msra.mxu0 %v2255_v46 }
 0xb0c   : > { %7193 = vmatprep.subr.mxu0 %v2254_v47 }
 0xb0d   : > { %7194 = vmatpush3.msra.mxu0 %v2254_v47 }
 0xb0e   : > { %7195 = vmatprep.subr.mxu0 %v2253_v48 }
 0xb0f   : > { %7196 = vmatpush3.msra.mxu0 %v2253_v48  ;;  %v6701_v48 = vld [vmem:[%s9046_s6] ss:$0 sm:$0xff] }
 0xb10   : > { %7197 = vmatprep.subr.mxu0 %v2252_v49 }
 0xb11   : > { %7198 = vmatpush3.msra.mxu0 %v2252_v49 }
 0xb12   : > { %7199 = vmatprep.subr.mxu0 %v2251_v1 }
 0xb13   : > { %7200 = vmatpush3.msra.mxu0 %v2251_v1 }
 0xb14   : > { %7201 = vmatprep.subr.mxu0 %v2250_v2 }
 0xb15   : > { %7202 = vmatpush3.msra.mxu0 %v2250_v2 }
 0xb16   : > { %7203 = vmatprep.subr.mxu0 %v2249_v3 }
 0xb17   : > { %7204 = vmatpush3.msra.mxu0 %v2249_v3 }
 0xb18   : > { %7205 = vmatprep.subr.mxu0 %v2248_v10 }
 0xb19   : > { %7206 = vmatpush3.msra.mxu0 %v2248_v10 }
 0xbca   : > { %v7179_v42 = vpop.f32.mrf.mxu0 }
 0xbcb   : > { %v2193_v26 = vadd.f32 %v7179_v42, %v6689_v25 }
 0xbcc   : > { %v2187_v27 = vpop.f32.mrf.mxu0 }
 0xbcd   : > { %v2188_v28 = vadd.f32 %v6689_v25, %v2187_v27  ;;  %v2197_v41 = vadd.f32 %v2193_v26, %v8159_v5 }
 0xbcf   : > { %v2203_v29 = vsel %vm1188_vm0, %v2197_v41, 0.0  ;;  %v2196_v30 = vadd.f32 %v2188_v28, %v8157_v4 }
 0xbd0   : > { %2204 = vadd.xlane.f32.xlu1 %v2203_v29 }
 0xbd1   : > { %v2200_v31 = vsel %vm1188_vm0, %v2196_v30, 0.0 }
 0xbd2   : > { %2201 = vadd.xlane.f32.xlu0 %v2200_v31 }
 0xc59   : > { %v2205_v32 = vpop.xlane.xlu1 %2204 }
 0xc5a   : > { %v2208_v33 = vmul.f32 0.03125, %v2205_v32  ;;  %v6705_v32 = vld [vmem:[%s9052_s13 + $0x38] sm:$0xff] }
 0xc5b   : > { %v2202_v34 = vpop.xlane.xlu0 %2201  ;;  %7210 = vmatprep.subr.mxu1 %v6705_v32 }
 0xc5c   : > { %v2207_v35 = vmul.f32 0.03125, %v2202_v34  ;;  %v2210_v36 = vsub.f32 %v2197_v41, %v2208_v33  ;;  %v6704_v33 = vld [vmem:[%s9052_s13 + $0x30] sm:$0xff]  ;;  %v6703_v34 = vld [vmem:[%s9052_s13 + $0x28] sm:$0xff] }
 0xc5e   : > { %v2209_v37 = vsub.f32 %v2196_v30, %v2207_v35  ;;  %v2212_v39 = vmul.f32 %v2210_v36, %v2210_v36  ;;  %v6702_v35 = vld [vmem:[%s9052_s13 + $0x20] sm:$0xff]  ;;  %s9069_s13 = smov 56  }
 0xc60   : > { %v2211_v38 = vmul.f32 %v2209_v37, %v2209_v37  ;;  %v2216_v4 = vsel %vm1188_vm0, %v2212_v39, 0.0 }
 0xc62   : > { %v2213_v5 = vsel %vm1188_vm0, %v2211_v38, 0.0 }
 0xc63   : > { %2214 = vadd.xlane.f32.xlu0 %v2213_v5 }
 0xc67   : > { %2217 = vadd.xlane.f32.xlu0 %v2216_v4 }
 0xcec   : > { %v2215_v50 = vpop.xlane.xlu0 %2214 }
 0xced   : > { %v2219_v51 = vmul.f32 0.03125, %v2215_v50 }
 0xcef   : > { %v2221_v52 = vadd.f32 1e-05, %v2219_v51 }
 0xcf0   : > { %v2218_v53 = vpop.xlane.xlu0 %2217 }
 0xcf1   : > { %7683 = vrsqrt.f32 %v2221_v52  ;;  %v2220_v54 = vmul.f32 0.03125, %v2218_v53  ;;  %v6712_v52 = vld [vmem:[%s9051_s17 + $0x1] ss:$0 sm:$0xff]  ;;  %s9070_s17 = smov 80  }
 0xcf3   : > { %v2222_v55 = vadd.f32 1e-05, %v2220_v54 }
 0xcf5   : > { %7685 = vrsqrt.f32 %v2222_v55 }
 0xcfe   : > { %v7684_v56 = vpop.eup %7683 }
 0xcff   : > { %v2225_v8 = vmul.f32 %v7684_v56, %v2209_v37 }
 0xd01   : > { %v2233_v59 = vmul.f32 %v6692_v57, %v2225_v8 }
 0xd02   : > { %v7686_v60 = vpop.eup %7685 }
 0xd03   : > { %v2226_v61 = vmul.f32 %v7686_v60, %v2210_v36  ;;  %v2241_v62 = vadd.f32 %v6693_v58, %v2233_v59 }
 0xd05   : > { %v2234_v63 = vmul.f32 %v6692_v57, %v2226_v61  ;;  %7188 = vmatprep.mubr.msk.f32.mxu1 %vm1188_vm0, %v2241_v62 }
 0xd07   : > { %v2242_v0 = vadd.f32 %v6693_v58, %v2234_v63 }
 0xd09   : > { %7189 = vmatmul.mubr.msk.f32.vlgmr.msra.gmra.mxu1 %vm1188_vm0, %v2242_v0 }
 0xd0a   : > { %7211 = vmatpush3.msra.mxu1 %v6705_v32 }
 0xd0b   : > { %7212 = vmatprep.subr.mxu1 %v6704_v33 }
 0xd0c   : > { %7213 = vmatpush3.msra.mxu1 %v6704_v33 }
 0xd0d   : > { %7214 = vmatprep.subr.mxu1 %v6703_v34 }
 0xd0e   : > { %7215 = vmatpush3.msra.mxu1 %v6703_v34 }
 0xd0f   : > { %7216 = vmatprep.subr.mxu1 %v6702_v35 }
 0xd10   : > { %7217 = vmatpush3.msra.mxu1 %v6702_v35 }
 0xdc9   : > { %v7190_v7 = vpop.f32.mrf.mxu1 }
 0xdca   : > { %v2341_v9 = vadd.f32 %v7190_v7, %v6694_v6 }
 0xdcb   : > { %v2335_v11 = vpop.f32.mrf.mxu1 }
 0xdcc   : > { %v2336_v12 = vadd.f32 %v6694_v6, %v2335_v11  ;;  %v2345_v14 = vmax.f32 %v2341_v9, 0.0 }
 0xdce   : > { %v2344_v13 = vmax.f32 %v2336_v12, 0.0 }
 0xdd0   : > { %7207 = vmatprep.mubr.msk.f32.mxu0 %vm2352_vm4, %v2344_v13 }
 0xdd1   : > { %7208 = vmatmul.mubr.msk.f32.vlgmr.msra.gmra.mxu0 %vm2352_vm4, %v2345_v14 }
 0xe91   : > { %v7209_v16 = vpop.f32.mrf.mxu0 }
 0xe92   : > { %v2431_v17 = vadd.f32 %v7209_v16, %v6697_v15 }
 0xe93   : > { %v2425_v18 = vpop.f32.mrf.mxu0 }
 0xe94   : > { %v2426_v19 = vadd.f32 %v6697_v15, %v2425_v18  ;;  %v2435_v20 = vadd.f32 %v2431_v17, %v2242_v0 }
 0xe96   : > { %v2441_v21 = vsel %vm1188_vm0, %v2435_v20, 0.0  ;;  %v2434_v22 = vadd.f32 %v2426_v19, %v2241_v62 }
 0xe97   : > { %2442 = vadd.xlane.f32.xlu0 %v2441_v21 }
 0xe98   : > { %v2438_v23 = vsel %vm1188_vm0, %v2434_v22, 0.0 }
 0xe99   : > { %2439 = vadd.xlane.f32.xlu1 %v2438_v23 }
 0xf20   : > { %v2443_v24 = vpop.xlane.xlu0 %2442 }
 0xf21   : > { %v2445_v25 = vmul.f32 0.03125, %v2443_v24 }
 0xf22   : > { %v2440_v42 = vpop.xlane.xlu1 %2439 }
 0xf23   : > { %v2447_v26 = vsub.f32 %v2435_v20, %v2445_v25  ;;  %v2444_v27 = vmul.f32 0.03125, %v2440_v42 }
 0xf25   : > { %v2446_v28 = vsub.f32 %v2434_v22, %v2444_v27  ;;  %v2449_v41 = vmul.f32 %v2447_v26, %v2447_v26 }
 0xf27   : > { %v2453_v29 = vsel %vm1188_vm0, %v2449_v41, 0.0  ;;  %v2448_v30 = vmul.f32 %v2446_v28, %v2446_v28 }
 0xf28   : > { %2454 = vadd.xlane.f32.xlu0 %v2453_v29 }
 0xf29   : > { %v2450_v31 = vsel %vm1188_vm0, %v2448_v30, 0.0 }
 0xf2a   : > { %2451 = vadd.xlane.f32.xlu1 %v2450_v31 }
 0xfb1   : > { %v2455_v36 = vpop.xlane.xlu0 %2454 }
 0xfb2   : > { %v2457_v37 = vmul.f32 0.03125, %v2455_v36 }
 0xfb3   : > { %v2452_v38 = vpop.xlane.xlu1 %2451 }
 0xfb4   : > { %v2459_v5 = vadd.f32 1e-05, %v2457_v37  ;;  %v2456_v39 = vmul.f32 0.03125, %v2452_v38 }
 0xfb6   : > { %7687 = vrsqrt.f32 %v2459_v5  ;;  %v2458_v4 = vadd.f32 1e-05, %v2456_v39 }
 0xfb8   : > { %7689 = vrsqrt.f32 %v2458_v4 }
 0xfc3   : > { %v7688_v40 = vpop.eup %7687 }
 0xfc4   : > { %v2463_v44 = vmul.f32 %v7688_v40, %v2447_v26 }
 0xfc5   : > { %v7690_v45 = vpop.eup %7689 }
 0xfc6   : > { %v2462_v46 = vmul.f32 %v7690_v45, %v2446_v28  ;;  %v2471_v47 = vmul.f32 %v6700_v43, %v2463_v44 }
 0xfc8   : > { %v2470_v49 = vmul.f32 %v6700_v43, %v2462_v46  ;;  %v8333_v51 = vadd.f32 %v6701_v48, %v2471_v47 }
 0xfca   : > { %v8331_v50 = vadd.f32 %v6701_v48, %v2470_v49 }
 0xfcc   : > { %7218 = vmatprep.mubr.msk.f32.mxu1 %vm1188_vm0, %v8331_v50 }
 0xfcd   : > { %7219 = vmatmul.mubr.msk.f32.vlgmr.msra.gmra.mxu1 %vm1188_vm0, %v8333_v51 }
0x108d   : > { %v7220_v53 = vpop.f32.mrf.mxu1 }
0x108e   : > { %v8340_v54 = vadd.f32 %v7220_v53, %v6712_v52 }
0x108f   : > { %v2572_v55 = vpop.f32.mrf.mxu1 }
0x1090   : > { %v8342_v56 = vadd.f32 %v6712_v52, %v2572_v55  ;;  %2585 = vrot.lane.b32.xlu1 %v8340_v54, %s9065_s1 }
0x1092   : > { %2583 = vrot.lane.b32.xlu0 %v8342_v56, %s9065_s1  ;;  %7225 = vmatprep.mubr.msk.f32.mxu1 %vm1276_vm1, %v8342_v56 }
0x1094   : > { %2787 = vrot.lane.b32.xlu1 %v8340_v54, %s9066_s28 }
0x1096   : > { %2781 = vrot.lane.b32.xlu0 %v8342_v56, %s9067_s23 }
0x1098   : > { %2785 = vrot.lane.b32.xlu1 %v8342_v56, %s9066_s28 }
0x109c   : > { %2783 = vrot.lane.b32.xlu1 %v8340_v54, %s9067_s23 }
0x1102   : > { %v2586_v57 = vpop.permute.xlu1 %2585 }
0x1103   : > { %7221 = vmatprep.subr.msk.mxu1 %vm1276_vm1, %v2586_v57 }
0x1104   : > { %7222 = vmatpush3.xpose.msk.msra.mxu1 %vm1276_vm1, %v2586_v57  ;;  %v2584_v8 = vpop.permute.xlu0 %2583 }
0x1105   : > { %7223 = vmatprep.subr.msk.mxu1 %vm1276_vm1, %v2584_v8 }
0x1106   : > { %v2788_v58 = vpop.permute.xlu1 %2787 }
0x1108   : > { %7224 = vmatpush3.xpose.msk.msra.mxu1 %vm1276_vm1, %v2584_v8  ;;  %v2782_v59 = vpop.permute.xlu0 %2781 }
0x1109   : > { %7235 = vmatprep.subr.msk.mxu1 %vm1276_vm1, %v2788_v58 }
0x110a   : > { %v2786_v60 = vpop.permute.xlu1 %2785 }
0x110b   : > { %7226 = vmatmul.mubr.msk.f32.vlgmr.msra.gmra.mxu1 %vm1276_vm1, %v8340_v54 }
0x110c   : > { %7236 = vmatpush3.xpose.msk.msra.mxu1 %vm1276_vm1, %v2788_v58  ;;  %7239 = vmatprep.mubr.msk.f32.mxu1 %vm1276_vm1, %v2782_v59 }
0x110d   : > { %7237 = vmatprep.subr.msk.mxu1 %vm1276_vm1, %v2786_v60 }
0x110e   : > { %v2784_v61 = vpop.permute.xlu1 %2783 }
0x1110   : > { %7238 = vmatpush3.xpose.msk.msra.mxu1 %vm1276_vm1, %v2786_v60 }
0x1113   : > { %7240 = vmatmul.mubr.msk.f32.vlgmr.msra.gmra.mxu1 %vm1276_vm1, %v2784_v61 }
0x11cb   : > { %v7227_v62 = vpop.f32.mrf.mxu1 }
0x11cc   : > { %v2671_v63 = vmul.f32 0.35355338, %v7227_v62 }
0x11cd   : > { %v2661_v0 = vpop.f32.mrf.mxu1 }
0x11ce   : > { %v2670_v1 = vmul.f32 0.35355338, %v2661_v0  ;;  %v2675_v2 = vsel %vm1362_vm2, %v2671_v63, -inf }
0x11cf   : > { %2676 = vmax.xlane.f32.xlu1 %v2675_v2 }
0x11d0   : > { %v2672_v3 = vsel %vm1362_vm2, %v2670_v1, -inf }
0x11d1   : > { %2673 = vmax.xlane.f32.xlu0 %v2672_v3 }
0x11d3   : > { %v7241_v10 = vpop.f32.mrf.mxu1 }
0x11d4   : > { %v2873_v9 = vmul.f32 0.35355338, %v7241_v10 }
0x11d5   : > { %v2863_v6 = vpop.f32.mrf.mxu1 }
0x11d6   : > { %v2872_v7 = vmul.f32 0.35355338, %v2863_v6  ;;  %v2877_v12 = vsel %vm1362_vm2, %v2873_v9, -inf }
0x11d8   : > { %v2874_v11 = vsel %vm1362_vm2, %v2872_v7, -inf }
0x11d9   : > { %2875 = vmax.xlane.f32.xlu0 %v2874_v11 }
0x11dd   : > { %2878 = vmax.xlane.f32.xlu0 %v2877_v12 }
0x11e0   : > { %2696 = vrot.lane.b32.xlu1 %v8340_v54, %s9068_s5 }
0x11e4   : > { %2898 = vrot.lane.b32.xlu1 %v8340_v54, %s9069_s13 }
0x11e8   : > { %2896 = vrot.lane.b32.xlu1 %v8342_v56, %s9069_s13 }
0x11f3   : > { %2694 = vrot.lane.b32.xlu0 %v8342_v56, %s9068_s5 }
0x1258   : > { %v2677_v13 = vpop.xlane.xlu1 %2676 }
0x1259   : > { %v2679_v14 = vsub.f32 %v2671_v63, %v2677_v13 }
0x125a   : > { %v2674_v15 = vpop.xlane.xlu0 %2673 }
0x125b   : > { %v2682_v16 = vmul.f32 1.442695, %v2679_v14  ;;  %v2678_v17 = vsub.f32 %v2670_v1, %v2674_v15 }
0x125c   : > { %v2697_v18 = vpop.permute.xlu1 %2696 }
0x125d   : > { %7691 = vpow2.f32 %v2682_v16  ;;  %v2680_v19 = vmul.f32 1.442695, %v2678_v17  ;;  %7228 = vmatprep.subr.mxu0 %v2697_v18 }
0x125e   : > { %7229 = vmatpush3.msra.mxu0 %v2697_v18 }
0x125f   : > { %7693 = vpow2.f32 %v2680_v19 }
0x1260   : > { %v2899_v27 = vpop.permute.xlu1 %2898 }
0x1262   : > { %v2876_v20 = vpop.xlane.xlu0 %2875 }
0x1263   : > { %v2880_v30 = vsub.f32 %v2872_v7, %v2876_v20 }
0x1264   : > { %v2897_v34 = vpop.permute.xlu1 %2896 }
0x1265   : > { %v2882_v31 = vmul.f32 1.442695, %v2880_v30 }
0x1266   : > { %v2879_v21 = vpop.xlane.xlu0 %2878 }
0x1267   : > { %v2881_v22 = vsub.f32 %v2873_v9, %v2879_v21 }
0x1269   : > { %v2884_v23 = vmul.f32 1.442695, %v2881_v22 }
0x126a   : > { %v7692_v24 = vpop.eup %7691  ;;  %v2695_v25 = vpop.permute.xlu0 %2694 }
0x126b   : > { %7695 = vpow2.f32 %v2884_v23  ;;  %7230 = vmatprep.subr.mxu0 %v2695_v25  ;;  %v2687_v42 = vsel %vm1362_vm2, %v7692_v24, 0.0 }
0x126c   : > { %v7694_v26 = vpop.eup %7693  ;;  %2688 = vadd.xlane.f32.xlu0 %v2687_v42  ;;  %7231 = vmatpush3.msra.mxu0 %v2695_v25  ;;  %7697 = vpow2.f32 %v2882_v31 }
0x126d   : > { %7242 = vmatprep.subr.mxu0 %v2899_v27  ;;  %v2684_v28 = vsel %vm1362_vm2, %v7694_v26, 0.0 }
0x126e   : > { %2685 = vadd.xlane.f32.xlu1 %v2684_v28 }
0x1278   : > { %v7696_v41 = vpop.eup %7695 }
0x1279   : > { %v2889_v29 = vsel %vm1362_vm2, %v7696_v41, 0.0  ;;  %v7698_v32 = vpop.eup %7697 }
0x127a   : > { %2890 = vadd.xlane.f32.xlu0 %v2889_v29  ;;  %v2886_v33 = vsel %vm1362_vm2, %v7698_v32, 0.0 }
0x127f   : > { %2987 = vrot.lane.b32.xlu1 %v8342_v56, %s9070_s17 }
0x1290   : > { %2989 = vrot.lane.b32.xlu0 %v8340_v54, %s9070_s17 }
0x1294   : > { %2983 = vrot.lane.b32.xlu0 %v8342_v56, %s9071_s2 }
0x12a3   : > { %2887 = vadd.xlane.f32.xlu1 %v2886_v33 }
0x12b4   : > { %2985 = vrot.lane.b32.xlu1 %v8340_v54, %s9071_s2 }
0x12f5   : > { %v2689_v35 = vpop.xlane.xlu0 %2688 }
0x12f6   : > { %7699 = vrcp.f32 %v2689_v35 }
0x12f7   : > { %v2686_v36 = vpop.xlane.xlu1 %2685 }
0x12f8   : > { %7701 = vrcp.f32 %v2686_v36 }
0x12fb   : > { %v2988_v43 = vpop.permute.xlu1 %2987 }
0x1303   : > { %v7700_v37 = vpop.eup %7699  ;;  %v2891_v5 = vpop.xlane.xlu0 %2890 }
0x1304   : > { %v2693_v4 = vmul.f32 %v7700_v37, %v7692_v24  ;;  %7703 = vrcp.f32 %v2891_v5 }
0x1305   : > { %v7702_v38 = vpop.eup %7701 }
0x1306   : > { %v2691_v39 = vmul.f32 %v7702_v38, %v7694_v26 }
0x1307   : > { %v2990_v40 = vpop.permute.xlu0 %2989 }
0x1308   : > { %7232 = vmatprep.mubr.msk.f32.mxu0 %vm1362_vm2, %v2691_v39 }
0x1309   : > { %7233 = vmatmul.mubr.msk.f32.vlgmr.msra.gmra.mxu0 %vm1362_vm2, %v2693_v4 }
0x130a   : > { %7243 = vmatpush3.msra.mxu0 %v2899_v27 }
0x130b   : > { %7244 = vmatprep.subr.mxu0 %v2897_v34  ;;  %v2984_v49 = vpop.permute.xlu0 %2983 }
0x130c   : > { %7245 = vmatpush3.msra.mxu0 %v2897_v34 }
0x130d   : > { %7249 = vmatprep.subr.msk.mxu0 %vm1276_vm1, %v2990_v40 }
0x1311   : > { %v7704_v45 = vpop.eup %7703 }
0x1312   : > { %v2895_v48 = vmul.f32 %v7704_v45, %v7696_v41 }
0x132c   : > { %v2888_v44 = vpop.xlane.xlu1 %2887 }
0x132d   : > { %7705 = vrcp.f32 %v2888_v44 }
0x1330   : > { %v2986_v52 = vpop.permute.xlu1 %2985 }
0x133a   : > { %v7706_v46 = vpop.eup %7705 }
0x133b   : > { %v2893_v47 = vmul.f32 %v7706_v46, %v7698_v32 }
0x133d   : > { %7246 = vmatprep.mubr.msk.f32.mxu0 %vm1362_vm2, %v2893_v47 }
0x133e   : > { %7247 = vmatmul.mubr.msk.f32.vlgmr.msra.gmra.mxu0 %vm1362_vm2, %v2895_v48  ;;  %v6709_v48 = vld [vmem:[%s9050_s21 + $0x30] sm:$0xff] }
0x133f   : > { %7250 = vmatpush3.xpose.msk.msra.mxu0 %vm1276_vm1, %v2990_v40  ;;  %7253 = vmatprep.mubr.msk.f32.mxu0 %vm1276_vm1, %v2984_v49  ;;  %v6708_v49 = vld [vmem:[%s9050_s21 + $0x28] sm:$0xff] }
0x1340   : > { %7251 = vmatprep.subr.msk.mxu0 %vm1276_vm1, %v2988_v43 }
0x1343   : > { %7252 = vmatpush3.xpose.msk.msra.mxu0 %vm1276_vm1, %v2988_v43 }
0x1346   : > { %7254 = vmatmul.mubr.msk.f32.vlgmr.msra.gmra.mxu0 %vm1276_vm1, %v2986_v52  ;;  %v6707_v52 = vld [vmem:[%s9050_s21 + $0x20] sm:$0xff] }
0x13c9   : > { %v8404_v53 = vpop.f32.mrf.mxu0 }
0x13cb   : > { %v8406_v55 = vpop.f32.mrf.mxu0 }
0x13fe   : > { %v8408_v57 = vpop.f32.mrf.mxu0 }
0x1400   : > { %v8410_v8 = vpop.f32.mrf.mxu0 }
0x1406   : > { %v7255_v58 = vpop.f32.mrf.mxu0 }
0x1407   : > { %v3075_v59 = vmul.f32 0.35355338, %v7255_v58 }
0x1408   : > { %v3065_v60 = vpop.f32.mrf.mxu0 }
0x1409   : > { %v3074_v61 = vmul.f32 0.35355338, %v3065_v60  ;;  %v3079_v62 = vsel %vm1362_vm2, %v3075_v59, -inf }
0x140a   : > { %3080 = vmax.xlane.f32.xlu1 %v3079_v62 }
0x140b   : > { %v3076_v63 = vsel %vm1362_vm2, %v3074_v61, -inf }
0x140c   : > { %3077 = vmax.xlane.f32.xlu0 %v3076_v63 }
0x141b   : > { %3100 = vrot.lane.b32.xlu1 %v8340_v54, %s9072_s18 }
0x141f   : > { %3191 = vrot.lane.b32.xlu1 %v8340_v54, %s9073_s26 }
0x1423   : > { %3189 = vrot.lane.b32.xlu1 %v8342_v56, %s9073_s26 }
0x1427   : > { %3187 = vrot.lane.b32.xlu1 %v8340_v54, %s9074_s10 }
0x1493   : > { %v3081_v0 = vpop.xlane.xlu1 %3080 }
0x1494   : > { %v3083_v1 = vsub.f32 %v3075_v59, %v3081_v0 }
0x1495   : > { %v3078_v2 = vpop.xlane.xlu0 %3077 }
0x1496   : > { %v3086_v3 = vmul.f32 1.442695, %v3083_v1  ;;  %v3082_v10 = vsub.f32 %v3074_v61, %v3078_v2 }
0x1497   : > { %v3101_v6 = vpop.permute.xlu1 %3100 }
0x1498   : > { %7707 = vpow2.f32 %v3086_v3  ;;  %v3084_v7 = vmul.f32 1.442695, %v3082_v10  ;;  %7256 = vmatprep.subr.mxu1 %v3101_v6 }
0x1499   : > { %7257 = vmatpush3.msra.mxu1 %v3101_v6 }
0x149a   : > { %7709 = vpow2.f32 %v3084_v7  ;;  %v6739_v7 = vld [vmem:[%s9049_s25 + $0x1] ss:$0 sm:$0xff]  ;;  %s6661_s25 = sshll.u32 %s8152_s11, 3  ;;  %s9083_s11 = sld [smem:[#allocation36_spill]] }
0x149b   : > { %v3192_v17 = vpop.permute.xlu1 %3191 }
0x149f   : > { %v3190_v23 = vpop.permute.xlu1 %3189 }
0x14a3   : > { %v3188_v24 = vpop.permute.xlu1 %3187 }
0x14a5   : > { %v7708_v9 = vpop.eup %7707 }
0x14a6   : > { %v3091_v11 = vsel %vm1362_vm2, %v7708_v9, 0.0 }
0x14a7   : > { %v7710_v12 = vpop.eup %7709  ;;  %3092 = vadd.xlane.f32.xlu0 %v3091_v11 }
0x14a8   : > { %v3088_v13 = vsel %vm1362_vm2, %v7710_v12, 0.0 }
0x14ab   : > { %3089 = vadd.xlane.f32.xlu0 %v3088_v13 }
0x14c1   : > { %3098 = vrot.lane.b32.xlu0 %v8342_v56, %s9072_s18 }
0x14c5   : > { %3185 = vrot.lane.b32.xlu0 %v8342_v56, %s9074_s10 }
0x1530   : > { %v3093_v14 = vpop.xlane.xlu0 %3092 }
0x1531   : > { %7711 = vrcp.f32 %v3093_v14 }
0x1534   : > { %v3090_v15 = vpop.xlane.xlu0 %3089 }
0x1535   : > { %7713 = vrcp.f32 %v3090_v15 }
0x1538   : > { %v3099_v16 = vpop.permute.xlu0 %3098 }
0x1539   : > { %7258 = vmatprep.subr.mxu1 %v3099_v16 }
0x153a   : > { %7259 = vmatpush3.msra.mxu1 %v3099_v16 }
0x153b   : > { %7263 = vmatprep.subr.msk.mxu1 %vm1276_vm1, %v3192_v17 }
0x153c   : > { %v3186_v22 = vpop.permute.xlu0 %3185 }
0x153e   : > { %v7712_v18 = vpop.eup %7711 }
0x153f   : > { %v3097_v21 = vmul.f32 %v7712_v18, %v7708_v9 }
0x1542   : > { %v7714_v19 = vpop.eup %7713 }
0x1543   : > { %v3095_v20 = vmul.f32 %v7714_v19, %v7710_v12 }
0x1545   : > { %7260 = vmatprep.mubr.msk.f32.mxu1 %vm1362_vm2, %v3095_v20 }
0x1546   : > { %7261 = vmatmul.mubr.msk.f32.vlgmr.msra.gmra.mxu1 %vm1362_vm2, %v3097_v21 }
0x1547   : > { %7264 = vmatpush3.xpose.msk.msra.mxu1 %vm1276_vm1, %v3192_v17  ;;  %7267 = vmatprep.mubr.msk.f32.mxu1 %vm1276_vm1, %v3186_v22 }
0x1548   : > { %7265 = vmatprep.subr.msk.mxu1 %vm1276_vm1, %v3190_v23 }
0x154b   : > { %7266 = vmatpush3.xpose.msk.msra.mxu1 %vm1276_vm1, %v3190_v23 }
0x154e   : > { %7268 = vmatmul.mubr.msk.f32.vlgmr.msra.gmra.mxu1 %vm1276_vm1, %v3188_v24  ;;  %v6749_v24 = vld [vmem:[%s9042_s29 + $0x38] sm:$0xff] }
0x154f   : > { %7288 = vmatprep.subr.mxu1 %v6749_v24 }
0x1550   : > { %7289 = vmatpush3.msra.mxu1 %v6749_v24 }
0x1606   : > { %v7262_v25 = vpop.f32.mrf.mxu1 }
0x1608   : > { %v3176_v42 = vpop.f32.mrf.mxu1 }
0x160e   : > { %v7269_v26 = vpop.f32.mrf.mxu1 }
0x160f   : > { %v3277_v27 = vmul.f32 0.35355338, %v7269_v26  ;;  %v6746_v26 = vld [vmem:[%s9042_s29 + $0x20] sm:$0xff] }
0x1610   : > { %v3267_v28 = vpop.f32.mrf.mxu1 }
0x1611   : > { %v3276_v41 = vmul.f32 0.35355338, %v3267_v28  ;;  %v3281_v29 = vsel %vm1362_vm2, %v3277_v27, -inf  ;;  %v6758_v28 = vld [vmem:[%s9045_s8 + $0x78] sm:$0xff] }
0x1612   : > { %3282 = vmax.xlane.f32.xlu1 %v3281_v29  ;;  %v6756_v29 = vld [vmem:[%s9045_s8 + $0x68] sm:$0xff] }
0x1613   : > { %v3278_v30 = vsel %vm1362_vm2, %v3276_v41, -inf }
0x1614   : > { %3279 = vmax.xlane.f32.xlu0 %v3278_v30  ;;  %v6755_v30 = vld [vmem:[%s9045_s8 + $0x60] sm:$0xff] }
0x1623   : > { %3302 = vrot.lane.b32.xlu1 %v8340_v54, %s9075_s15 }
0x1627   : > { %3389 = vrot.lane.b32.xlu1 %v8410_v8, %s9076_s22 }
0x162b   : > { %3391 = vrot.lane.b32.xlu1 %v8408_v57, %s9076_s22 }
0x162f   : > { %3399 = vrot.lane.b32.xlu1 %v7262_v25, %s9077_s7  ;;  %v6748_v25 = vld [vmem:[%s9042_s29 + $0x30] sm:$0xff] }
0x1630   : > { %7290 = vmatprep.subr.mxu1 %v6748_v25 }
0x1631   : > { %7291 = vmatpush3.msra.mxu1 %v6748_v25 }
0x169b   : > { %v3283_v31 = vpop.xlane.xlu1 %3282 }
0x169c   : > { %v3285_v32 = vsub.f32 %v3277_v27, %v3283_v31  ;;  %v7895_v27 = vmov 0.0  }
0x169d   : > { %v3280_v33 = vpop.xlane.xlu0 %3279 }
0x169e   : > { %v3288_v34 = vmul.f32 1.442695, %v3285_v32  ;;  %v3284_v35 = vsub.f32 %v3276_v41, %v3280_v33  ;;  %v6757_v41 = vld [vmem:[%s9045_s8 + $0x70] sm:$0xff] }
0x169f   : > { %v3303_v36 = vpop.permute.xlu1 %3302 }
0x16a0   : > { %7715 = vpow2.f32 %v3288_v34  ;;  %v3286_v37 = vmul.f32 1.442695, %v3284_v35  ;;  %7270 = vmatprep.subr.mxu0 %v3303_v36 }
0x16a1   : > { %7271 = vmatpush3.msra.mxu0 %v3303_v36 }
0x16a2   : > { %7717 = vpow2.f32 %v3286_v37 }
0x16a3   : > { %v3390_v58 = vpop.permute.xlu1 %3389 }
0x16a4   : > { %v3411_v62 = vsel %vm1276_vm1, %v8406_v55, %v3390_v58  ;;  %v6751_v58 = vld [vmem:[%s9045_s8 + $0x40] sm:$0xff] }
0x16a7   : > { %v3392_v59 = vpop.permute.xlu1 %3391 }
0x16a8   : > { %v3412_v0 = vsel %vm1276_vm1, %v8404_v53, %v3392_v59  ;;  %v6760_v59 = vld [vmem:[%s9047_s3 + $0x1] ss:$0 sm:$0xff]  ;;  %s9084_s3 = sld [smem:[#allocation37_spill]] }
0x16ab   : > { %v3400_v60 = vpop.permute.xlu1 %3399 }
0x16ac   : > { %v3414_v3 = vsel %vm1362_vm2, %v3412_v0, %v3400_v60 }
0x16ad   : > { %v7716_v54 = vpop.eup %7715 }
0x16ae   : > { %v3293_v38 = vsel %vm1362_vm2, %v7716_v54, 0.0 }
0x16af   : > { %v7718_v5 = vpop.eup %7717  ;;  %3294 = vadd.xlane.f32.xlu0 %v3293_v38 }
0x16b0   : > { %v3290_v39 = vsel %vm1362_vm2, %v7718_v5, 0.0 }
0x16b3   : > { %3291 = vadd.xlane.f32.xlu0 %v3290_v39 }
0x16c9   : > { %3300 = vrot.lane.b32.xlu0 %v8342_v56, %s9075_s15  ;;  %v6710_v56 = vld [vmem:[%s9050_s21 + $0x38] sm:$0xff]  ;;  %s9079_s21 = sld [smem:[#allocation6_spill]] }
0x16cd   : > { %3397 = vrot.lane.b32.xlu0 %v3176_v42, %s9077_s7  ;;  %v6747_v42 = vld [vmem:[%s9042_s29 + $0x28] sm:$0xff]  ;;  %s9091_s29 = sld [smem:[#allocation26_spill]] }
0x16ce   : > { %7292 = vmatprep.subr.mxu1 %v6747_v42 }
0x16cf   : > { %7293 = vmatpush3.msra.mxu1 %v6747_v42 }
0x16d0   : > { %7294 = vmatprep.subr.mxu1 %v6746_v26 }
0x16d1   : > { %7295 = vmatpush3.msra.mxu1 %v6746_v26 }
0x16d2   : > { %7318 = vmatprep.subr.mxu1 %v7895_v27 }
0x1738   : > { %v3295_v4 = vpop.xlane.xlu0 %3294 }
0x1739   : > { %7719 = vrcp.f32 %v3295_v4 }
0x173c   : > { %v3292_v40 = vpop.xlane.xlu0 %3291 }
0x173d   : > { %7721 = vrcp.f32 %v3292_v40 }
0x1740   : > { %v3301_v43 = vpop.permute.xlu0 %3300 }
0x1741   : > { %7272 = vmatprep.subr.mxu0 %v3301_v43 }
0x1742   : > { %7273 = vmatpush3.msra.mxu0 %v3301_v43 }
0x1743   : > { %7277 = vmatprep.subr.mxu0 %v6710_v56 }
0x1744   : > { %v3398_v61 = vpop.permute.xlu0 %3397 }
0x1745   : > { %v3413_v1 = vsel %vm1362_vm2, %v3411_v62, %v3398_v61 }
0x1746   : > { %v7720_v44 = vpop.eup %7719 }
0x1747   : > { %v3299_v47 = vmul.f32 %v7720_v44, %v7716_v54  ;;  %v6744_v54 = vld [vmem:[%s9048_s19 + $0x1] ss:$0 sm:$0xff]  ;;  %s1169_s19 = scalar_lea.vmem %s9079_s21, %s6661_s25  ;;  %s9080_s21 = sld [smem:[#allocation19_spill]] }
0x1748   : > { %s9081_s25 = sld [smem:[#allocation20_spill]] }
0x174a   : > { %v7722_v45 = vpop.eup %7721 }
0x174b   : > { %v3297_v46 = vmul.f32 %v7722_v45, %v7718_v5  ;;  %v6745_v5 = vld [vmem:[%s9043_s24 + $0x1] ss:$0 sm:$0xff]  ;;  %s9090_s24 = sld [smem:[#allocation31_spill]] }
0x174d   : > { %7274 = vmatprep.mubr.msk.f32.mxu0 %vm1362_vm2, %v3297_v46  ;;  %v3859_v46 = vld [vmem:[%s7977_s12 + $0x18] sm:$0xff] }
0x174e   : > { %7275 = vmatmul.mubr.msk.f32.vlgmr.msra.gmra.mxu0 %vm1362_vm2, %v3299_v47  ;;  %v3858_v47 = vld [vmem:[%s7977_s12 + $0x10] sm:$0xff] }
0x174f   : > { %7278 = vmatpush3.msra.mxu0 %v6710_v56  ;;  %v3857_v56 = vld [vmem:[%s7977_s12 + $0x8] sm:$0xff] }
0x1750   : > { %7279 = vmatprep.subr.mxu0 %v6709_v48 }
0x1751   : > { %7280 = vmatpush3.msra.mxu0 %v6709_v48  ;;  %v3856_v48 = vld [vmem:[%s7977_s12] sm:$0xff] }
0x1752   : > { %7281 = vmatprep.subr.mxu0 %v6708_v49 }
0x1753   : > { %7282 = vmatpush3.msra.mxu0 %v6708_v49  ;;  %v8504_v49 = vld [vmem:[%s1169_s19] sm:$0xff]  ;;  %s9082_s19 = sld [smem:[#allocation22_spill]] }
0x1754   : > { %7283 = vmatprep.subr.mxu0 %v6707_v52 }
0x1755   : > { %7284 = vmatpush3.msra.mxu0 %v6707_v52  ;;  %v6754_v52 = vld [vmem:[%s9045_s8 + $0x58] sm:$0xff] }
0x1756   : > { %7299 = vmatprep.subr.mxu0 %v6758_v28 }
0x180e   : > { %v7276_v57 = vpop.f32.mrf.mxu0 }
0x180f   : > { %3407 = vrot.lane.b32.xlu1 %v7276_v57, %s9078_s9  ;;  %v6753_v57 = vld [vmem:[%s9045_s8 + $0x50] sm:$0xff] }
0x1810   : > { %v3378_v8 = vpop.f32.mrf.mxu0 }
0x1811   : > { %3405 = vrot.lane.b32.xlu0 %v3378_v8, %s9078_s9  ;;  %v6752_v8 = vld [vmem:[%s9045_s8 + $0x48] sm:$0xff]  ;;  %s9088_s8 = sld [smem:[#allocation25_spill]] }
0x1881   : > { %v3408_v63 = vpop.permute.xlu1 %3407 }
0x1882   : > { %v3416_v6 = vsel %vm2106_vm3, %v3414_v3, %v3408_v63 }
0x1883   : > { %v3406_v2 = vpop.permute.xlu0 %3405 }
0x1884   : > { %v3415_v10 = vsel %vm2106_vm3, %v3413_v1, %v3406_v2  ;;  %v6772_v2 = vld [vmem:[%s9080_s21] ss:$0 sm:$0xff] }
0x1885   : > { %7285 = vmatprep.mubr.msk.f32.mxu0 %vm1188_vm0, %v3415_v10 }
0x1886   : > { %7286 = vmatmul.mubr.msk.f32.vlgmr.msra.gmra.mxu0 %vm1188_vm0, %v3416_v6 }
0x1887   : > { %7300 = vmatpush3.msra.mxu0 %v6758_v28 }
0x1888   : > { %7301 = vmatprep.subr.mxu0 %v6757_v41 }
0x1889   : > { %7302 = vmatpush3.msra.mxu0 %v6757_v41  ;;  %v6763_v41 = vld [vmem:[%s9044_s14 + $0x1] ss:$0 sm:$0xff]  ;;  %s9089_s14 = sld [smem:[#allocation30_spill]] }
0x188a   : > { %7303 = vmatprep.subr.mxu0 %v6756_v29 }
0x188b   : > { %7304 = vmatpush3.msra.mxu0 %v6756_v29 }
0x188c   : > { %7305 = vmatprep.subr.mxu0 %v6755_v30 }
0x188d   : > { %7306 = vmatpush3.msra.mxu0 %v6755_v30 }
0x188e   : > { %7307 = vmatprep.subr.mxu0 %v6754_v52 }
0x188f   : > { %7308 = vmatpush3.msra.mxu0 %v6754_v52 }
0x1890   : > { %7309 = vmatprep.subr.mxu0 %v6753_v57 }
0x1891   : > { %7310 = vmatpush3.msra.mxu0 %v6753_v57 }
0x1892   : > { %7311 = vmatprep.subr.mxu0 %v6752_v8 }
0x1893   : > { %7312 = vmatpush3.msra.mxu0 %v6752_v8 }
0x1894   : > { %7313 = vmatprep.subr.mxu0 %v6751_v58 }
0x1895   : > { %7314 = vmatpush3.msra.mxu0 %v6751_v58 }
0x1896   : > { %7339 = vmatprep.subr.mxu0 %v7895_v27 }
0x1946   : > { %v7287_v9 = vpop.f32.mrf.mxu0 }
0x1947   : > { %v3501_v55 = vadd.f32 %v7287_v9, %v6739_v7 }
0x1948   : > { %v3495_v11 = vpop.f32.mrf.mxu0 }
0x1949   : > { %v3505_v12 = vadd.f32 %v3501_v55, %v8333_v51  ;;  %v3496_v53 = vadd.f32 %v6739_v7, %v3495_v11 }
0x194b   : > { %v3513_v13 = vsel %vm1188_vm0, %v3505_v12, 0.0  ;;  %v3504_v14 = vadd.f32 %v3496_v53, %v8331_v50 }
0x194c   : > { %3514 = vadd.xlane.f32.xlu1 %v3513_v13 }
0x194d   : > { %v3510_v15 = vsel %vm1188_vm0, %v3504_v14, 0.0 }
0x194e   : > { %3511 = vadd.xlane.f32.xlu0 %v3510_v15 }
0x19d5   : > { %v3515_v16 = vpop.xlane.xlu1 %3514 }
0x19d6   : > { %v3517_v17 = vmul.f32 0.03125, %v3515_v16 }
0x19d7   : > { %v3512_v18 = vpop.xlane.xlu0 %3511 }
0x19d8   : > { %v3516_v19 = vmul.f32 0.03125, %v3512_v18  ;;  %v3519_v20 = vsub.f32 %v3505_v12, %v3517_v17 }
0x19da   : > { %v3518_v21 = vsub.f32 %v3504_v14, %v3516_v19  ;;  %v3521_v23 = vmul.f32 %v3519_v20, %v3519_v20  ;;  %v3849_v14 = vlaneseq  ;;  %v7897_v19 = vmov -1e+30  }
0x19dc   : > { %v3520_v51 = vmul.f32 %v3518_v21, %v3518_v21  ;;  %v3525_v50 = vsel %vm1188_vm0, %v3521_v23, 0.0  ;;  %v8560_v15 = vshrl.u32 %v3849_v14, 7  ;;  %v3852_v16 = vand.u32 127, %v3849_v14 }
0x19de   : > { %v3522_v22 = vsel %vm1188_vm0, %v3520_v51, 0.0  ;;  %vm3853_vm6 = vcmp.ge.s32.totalorder %v8560_v15, %v3852_v16 }
0x19df   : > { %3523 = vadd.xlane.f32.xlu0 %v3522_v22 }
0x19e3   : > { %3526 = vadd.xlane.f32.xlu0 %v3525_v50 }
0x1a68   : > { %v3524_v31 = vpop.xlane.xlu0 %3523 }
0x1a69   : > { %v3528_v32 = vmul.f32 0.03125, %v3524_v31 }
0x1a6b   : > { %v3530_v33 = vadd.f32 1e-05, %v3528_v32 }
0x1a6c   : > { %v3527_v34 = vpop.xlane.xlu0 %3526 }
0x1a6d   : > { %7723 = vrsqrt.f32 %v3530_v33  ;;  %v3529_v35 = vmul.f32 0.03125, %v3527_v34 }
0x1a6f   : > { %v3531_v36 = vadd.f32 1e-05, %v3529_v35 }
0x1a71   : > { %7725 = vrsqrt.f32 %v3531_v36 }
0x1a7a   : > { %v7724_v37 = vpop.eup %7723 }
0x1a7b   : > { %v3534_v38 = vmul.f32 %v7724_v37, %v3518_v21 }
0x1a7d   : > { %v3542_v39 = vmul.f32 %v6744_v54, %v3534_v38 }
0x1a7e   : > { %v7726_v4 = vpop.eup %7725 }
0x1a7f   : > { %v3535_v40 = vmul.f32 %v7726_v4, %v3519_v20  ;;  %v8486_v43 = vadd.f32 %v6745_v5, %v3542_v39  ;;  %v8563_v20 = vsel %vm3853_vm6, 0.0, %v7897_v19 }
0x1a81   : > { %v3543_v44 = vmul.f32 %v6744_v54, %v3535_v40  ;;  %7296 = vmatprep.mubr.msk.f32.mxu1 %vm1188_vm0, %v8486_v43 }
0x1a83   : > { %v8490_v45 = vadd.f32 %v6745_v5, %v3543_v44 }
0x1a85   : > { %7297 = vmatmul.mubr.msk.f32.vlgmr.msra.gmra.mxu1 %vm1188_vm0, %v8490_v45 }
0x1a86   : > { %7319 = vmatpush3.msra.mxu1 %v3859_v46  ;;  %7326 = vmatprep.mubr.msk.f32.mxu1 %vm7896_vm5, %v7895_v27 }
0x1a87   : > { %7320 = vmatprep.subr.mxu1 %v7895_v27 }
0x1a88   : > { %7321 = vmatpush3.msra.mxu1 %v3858_v47 }
0x1a89   : > { %7322 = vmatprep.subr.mxu1 %v7895_v27 }
0x1a8a   : > { %7323 = vmatpush3.msra.mxu1 %v3857_v56 }
0x1a8b   : > { %7324 = vmatprep.subr.mxu1 %v7895_v27 }
0x1a8c   : > { %7325 = vmatpush3.msra.mxu1 %v3856_v48 }
0x1a8d   : > { %7327 = vmatmul.mubr.msk.f32.vlgmr.msra.gmra.mxu1 %vm1188_vm0, %v8504_v49  ;;  %7329 = vmatprep.subr.mxu1 %v7895_v27 }
0x1a8e   : > { %7331 = vmatprep.mubr.msk.f32.mxu1 %vm7896_vm5, %v7895_v27 }
0x1b45   : > { %v7298_v60 = vpop.f32.mrf.mxu1 }
0x1b46   : > { %v3654_v61 = vadd.f32 %v7298_v60, %v6760_v59 }
0x1b47   : > { %v3648_v62 = vpop.f32.mrf.mxu1 }
0x1b48   : > { %v3649_v63 = vadd.f32 %v6760_v59, %v3648_v62  ;;  %v3658_v1 = vmax.f32 %v3654_v61, 0.0 }
0x1b4a   : > { %v3657_v0 = vmax.f32 %v3649_v63, 0.0 }
0x1b4c   : > { %7315 = vmatprep.mubr.msk.f32.mxu0 %vm2352_vm4, %v3657_v0 }
0x1b4d   : > { %v3941_v3 = vpop.f32.mrf.mxu1  ;;  %7316 = vmatmul.mubr.msk.f32.vlgmr.msra.gmra.mxu0 %vm2352_vm4, %v3658_v1 }
0x1b4e   : > { %v8521_v10 = vadd.f32 %v6772_v2, %v3941_v3  ;;  %7341 = vmatprep.mubr.msk.f32.mxu0 %vm7896_vm5, %v7895_v27 }
0x1b4f   : > { %v7328_v6 = vpop.f32.mrf.mxu1 }
0x1b50   : > { %4113 = vrot.lane.b32.xlu0 %v8521_v10, %s9066_s28  ;;  %3946 = vrot.lane.b32.xlu1 %v8521_v10, %s9065_s1 }
0x1b54   : > { %4278 = vrot.lane.b32.xlu0 %v8521_v10, %s9071_s2  ;;  %4111 = vrot.lane.b32.xlu1 %v8521_v10, %s9067_s23 }
0x1b58   : > { %4445 = vrot.lane.b32.xlu0 %v8521_v10, %s9074_s10  ;;  %4280 = vrot.lane.b32.xlu1 %v8521_v10, %s9070_s17 }
0x1b5c   : > { %4447 = vrot.lane.b32.xlu1 %v8521_v10, %s9073_s26 }
0x1bc2   : > { %v4114_v7 = vpop.permute.xlu0 %4113  ;;  %v3947_v9 = vpop.permute.xlu1 %3946 }
0x1bc3   : > { %7330 = vmatpush3.xpose.msk.msra.mxu1 %vm1276_vm1, %v3947_v9  ;;  %7340 = vmatpush3.xpose.msk.msra.mxu0 %vm1276_vm1, %v4114_v7 }
0x1bc4   : > { %7349 = vmatprep.subr.mxu0 %v7895_v27  ;;  %7334 = vmatprep.subr.mxu1 %v7895_v27 }
0x1bc6   : > { %7332 = vmatmul.mubr.msk.f32.vlgmr.msra.gmra.mxu1 %vm1276_vm1, %v8521_v10  ;;  %v4112_v55 = vpop.permute.xlu1 %4111  ;;  %v4279_v12 = vpop.permute.xlu0 %4278 }
0x1bc7   : > { %7342 = vmatmul.mubr.msk.f32.vlgmr.msra.gmra.mxu0 %vm1276_vm1, %v4112_v55  ;;  %7336 = vmatprep.mubr.msk.f32.mxu1 %vm7896_vm5, %v7895_v27 }
0x1bc8   : > { %7351 = vmatprep.mubr.msk.f32.mxu0 %vm7896_vm5, %v7895_v27 }
0x1bca   : > { %v4281_v11 = vpop.permute.xlu1 %4280  ;;  %v4446_v13 = vpop.permute.xlu0 %4445 }
0x1bcb   : > { %7350 = vmatpush3.xpose.msk.msra.mxu0 %vm1276_vm1, %v4281_v11 }
0x1bcc   : > { %7359 = vmatprep.subr.mxu0 %v7895_v27 }
0x1bce   : > { %v4448_v53 = vpop.permute.xlu1 %4447  ;;  %7352 = vmatmul.mubr.msk.f32.vlgmr.msra.gmra.mxu0 %vm1276_vm1, %v4279_v12 }
0x1bcf   : > { %7360 = vmatpush3.xpose.msk.msra.mxu0 %vm1276_vm1, %v4448_v53  ;;  %7361 = vmatprep.mubr.msk.f32.mxu0 %vm7896_vm5, %v7895_v27 }
0x1bd0   : > { %7369 = vmatprep.subr.mxu0 %v7895_v27 }
0x1bd2   : > { %7362 = vmatmul.mubr.msk.f32.vlgmr.msra.gmra.mxu0 %vm1276_vm1, %v4446_v13 }
0x1bd3   : > { %7377 = vmatprep.mubr.msk.f32.mxu0 %vm7896_vm5, %v7895_v27 }
0x1c0d   : > { %v7317_v17 = vpop.f32.mrf.mxu0 }
0x1c0e   : > { %v3743_v35 = vadd.f32 %v7317_v17, %v6763_v41 }
0x1c0f   : > { %v3737_v18 = vpop.f32.mrf.mxu0 }
0x1c10   : > { %v3738_v30 = vadd.f32 %v6763_v41, %v3737_v18  ;;  %v3747_v39 = vadd.f32 %v3743_v35, %v8490_v45 }
0x1c12   : > { %v3746_v36 = vadd.f32 %v3738_v30, %v8486_v43  ;;  %v3755_v44 = vsel %vm1188_vm0, %v3747_v39, 0.0 }
0x1c14   : > { %v3752_v40 = vsel %vm1188_vm0, %v3746_v36, 0.0 }
0x1c86   : > { %v4018_v21 = vpop.f32.mrf.mxu1 }
0x1c87   : > { %v4022_v51 = vmul.f32 0.35355338, %v4018_v21  ;;  %v4185_v22 = vpop.f32.mrf.mxu0 }
0x1c88   : > { %v4189_v23 = vmul.f32 0.35355338, %v4185_v22  ;;  %v7333_v50 = vpop.f32.mrf.mxu1 }
0x1c89   : > { %v4023_v24 = vadd.f32 %v4022_v51, %v8563_v20  ;;  %v7343_v25 = vpop.f32.mrf.mxu0 }
0x1c8a   : > { %v4190_v42 = vadd.f32 %v4189_v23, %v8563_v20 }
0x1c8b   : > { %v4024_v26 = vsel %vm1276_vm1, %v4023_v24, -inf }
0x1c8c   : > { %4025 = vmax.xlane.f32.xlu1 %v4024_v26  ;;  %v4191_v28 = vsel %vm1276_vm1, %v4190_v42, -inf }
0x1c8d   : > { %4192 = vmax.xlane.f32.xlu0 %v4191_v28 }
0x1c8e   : > { %v4352_v29 = vpop.f32.mrf.mxu0 }
0x1c8f   : > { %v4356_v31 = vmul.f32 0.35355338, %v4352_v29 }
0x1c90   : > { %v7353_v32 = vpop.f32.mrf.mxu0 }
0x1c91   : > { %v4357_v33 = vadd.f32 %v4356_v31, %v8563_v20 }
0x1c92   : > { %v4519_v34 = vpop.f32.mrf.mxu0 }
0x1c93   : > { %v4523_v37 = vmul.f32 0.35355338, %v4519_v34  ;;  %v4358_v54 = vsel %vm1276_vm1, %v4357_v33, -inf }
0x1c94   : > { %4359 = vmax.xlane.f32.xlu0 %v4358_v54  ;;  %v7363_v38 = vpop.f32.mrf.mxu0  ;;  %v6768_v54 = vld [vmem:[%s9041_s30 + $0x1] ss:$0 sm:$0xff]  ;;  %s9092_s30 = sld [smem:[#allocation28_spill]] }
0x1c95   : > { %v4524_v5 = vadd.f32 %v4523_v37, %v8563_v20 }
0x1c97   : > { %v4525_v4 = vsel %vm1276_vm1, %v4524_v5, -inf }
0x1c98   : > { %4526 = vmax.xlane.f32.xlu1 %v4525_v4  ;;  %3753 = vadd.xlane.f32.xlu0 %v3752_v40 }
0x1c9c   : > { %3756 = vadd.xlane.f32.xlu1 %v3755_v44 }
0x1cad   : > { %4202 = vrot.lane.b32.xlu1 %v8521_v10, %s9069_s13 }
0x1cae   : > { %4035 = vrot.lane.b32.xlu0 %v8521_v10, %s9068_s5 }
0x1d15   : > { %v4026_v43 = vpop.xlane.xlu1 %4025 }
0x1d16   : > { %v4027_v46 = vsub.f32 %v4023_v24, %v4026_v43  ;;  %v4193_v47 = vpop.xlane.xlu0 %4192 }
0x1d17   : > { %v4194_v56 = vsub.f32 %v4190_v42, %v4193_v47 }
0x1d18   : > { %v4028_v45 = vmul.f32 1.442695, %v4027_v46 }
0x1d19   : > { %v4195_v48 = vmul.f32 1.442695, %v4194_v56 }
0x1d1a   : > { %7727 = vpow2.f32 %v4028_v45 }
0x1d1b   : > { %7729 = vpow2.f32 %v4195_v48 }
0x1d1d   : > { %v4360_v52 = vpop.xlane.xlu0 %4359 }
0x1d1e   : > { %v4361_v57 = vsub.f32 %v4357_v33, %v4360_v52 }
0x1d20   : > { %v4362_v8 = vmul.f32 1.442695, %v4361_v57 }
0x1d21   : > { %v4527_v58 = vpop.xlane.xlu1 %4526  ;;  %v3754_v59 = vpop.xlane.xlu0 %3753 }
0x1d22   : > { %7731 = vpow2.f32 %v4362_v8  ;;  %v4528_v60 = vsub.f32 %v4524_v5, %v4527_v58  ;;  %v3758_v12 = vmul.f32 0.03125, %v3754_v59  ;;  %v6769_v5 = vld [vmem:[%s9046_s6 + $0x1] ss:$0 sm:$0xff]  ;;  %s9085_s6 = sld [smem:[#allocation24_spill]] }
0x1d24   : > { %v4529_v61 = vmul.f32 1.442695, %v4528_v60  ;;  %v3760_v13 = vsub.f32 %v3746_v36, %v3758_v12  ;;  %v3862_v12 = vld [vmem:[%s9081_s25 + $0x8] sm:$0xff] }
0x1d25   : > { %v4036_v62 = vpop.permute.xlu0 %4035  ;;  %v3757_v55 = vpop.xlane.xlu1 %3756 }
0x1d26   : > { %7733 = vpow2.f32 %v4529_v61  ;;  %7335 = vmatpush3.msra.mxu1 %v4036_v62  ;;  %v3759_v11 = vmul.f32 0.03125, %v3757_v55  ;;  %v3762_v17 = vmul.f32 %v3760_v13, %v3760_v13  ;;  %v3864_v55 = vld [vmem:[%s9081_s25 + $0x18] sm:$0xff] }
0x1d27   : > { %v7728_v63 = vpop.eup %7727  ;;  %7344 = vmatprep.subr.mxu1 %v7895_v27  ;;  %7370 = vmatpush3.msra.mxu0 %v3864_v55 }
0x1d28   : > { %v7730_v0 = vpop.eup %7729  ;;  %v4030_v1 = vsel %vm1276_vm1, %v7728_v63, 0.0  ;;  %v3761_v53 = vsub.f32 %v3747_v39, %v3759_v11  ;;  %v3764_v18 = vsel %vm1188_vm0, %v3762_v17, 0.0  ;;  %7371 = vmatprep.subr.mxu0 %v7895_v27  ;;  %v3863_v11 = vld [vmem:[%s9081_s25 + $0x10] sm:$0xff]  ;;  %v4736_v17 = vld [vmem:[%s9082_s19] sm:$0xff] }
0x1d29   : > { %4031 = vadd.xlane.f32.xlu0 %v4030_v1  ;;  %v4197_v2 = vsel %vm1276_vm1, %v7730_v0, 0.0  ;;  %v4203_v19 = vpop.permute.xlu1 %4202  ;;  %7372 = vmatpush3.msra.mxu0 %v3863_v11 }
0x1d2a   : > { %4198 = vadd.xlane.f32.xlu1 %v4197_v2  ;;  %v3763_v14 = vmul.f32 %v3761_v53, %v3761_v53  ;;  %7373 = vmatprep.subr.mxu0 %v7895_v27 }
0x1d2b   : > { %7374 = vmatpush3.msra.mxu0 %v3862_v12 }
0x1d2c   : > { %v3767_v16 = vsel %vm1188_vm0, %v3763_v14, 0.0  ;;  %7375 = vmatprep.subr.mxu0 %v7895_v27  ;;  %v4738_v14 = vld [vmem:[%s9082_s19 + $0x10] sm:$0xff] }
0x1d2f   : > { %v7732_v3 = vpop.eup %7731 }
0x1d30   : > { %v4364_v6 = vsel %vm1276_vm1, %v7732_v3, 0.0 }
0x1d31   : > { %4365 = vadd.xlane.f32.xlu0 %v4364_v6 }
0x1d33   : > { %v7734_v7 = vpop.eup %7733 }
0x1d34   : > { %v4531_v9 = vsel %vm1276_vm1, %v7734_v7, 0.0 }
0x1d35   : > { %4532 = vadd.xlane.f32.xlu1 %v4531_v9 }
0x1d46   : > { %4369 = vrot.lane.b32.xlu1 %v8521_v10, %s9072_s18 }
0x1d47   : > { %4536 = vrot.lane.b32.xlu0 %v8521_v10, %s9075_s15 }
0x1d66   : > { %3768 = vadd.xlane.f32.xlu0 %v3767_v16  ;;  %v4737_v16 = vld [vmem:[%s9082_s19 + $0x8] sm:$0xff] }
0x1d6a   : > { %3765 = vadd.xlane.f32.xlu1 %v3764_v18 }
0x1db2   : > { %v4032_v21 = vpop.xlane.xlu0 %4031 }
0x1db3   : > { %7735 = vrcp.f32 %v4032_v21  ;;  %v4199_v51 = vpop.xlane.xlu1 %4198 }
0x1db4   : > { %7737 = vrcp.f32 %v4199_v51 }
0x1dba   : > { %v4366_v22 = vpop.xlane.xlu0 %4365 }
0x1dbb   : > { %7739 = vrcp.f32 %v4366_v22 }
0x1dbe   : > { %v4533_v10 = vpop.xlane.xlu1 %4532  ;;  %v4537_v41 = vpop.permute.xlu0 %4536 }
0x1dbf   : > { %7741 = vrcp.f32 %v4533_v10 }
0x1dc0   : > { %v7736_v23 = vpop.eup %7735 }
0x1dc1   : > { %v4034_v50 = vmul.f32 %v7736_v23, %v7728_v63  ;;  %v7738_v24 = vpop.eup %7737 }
0x1dc2   : > { %v4201_v25 = vmul.f32 %v7738_v24, %v7730_v0  ;;  %v4370_v42 = vpop.permute.xlu1 %4369 }
0x1dc3   : > { %7337 = vmatmul.mubr.msk.f32.vlgmr.msra.gmra.mxu1 %vm1276_vm1, %v4034_v50 }
0x1dc4   : > { %7345 = vmatpush3.msra.mxu1 %v4203_v19  ;;  %7346 = vmatprep.mubr.msk.f32.mxu1 %vm7896_vm5, %v7895_v27 }
0x1dc5   : > { %7354 = vmatprep.subr.mxu1 %v7895_v27 }
0x1dc7   : > { %7347 = vmatmul.mubr.msk.f32.vlgmr.msra.gmra.mxu1 %vm1276_vm1, %v4201_v25 }
0x1dc8   : > { %v7740_v26 = vpop.eup %7739  ;;  %7355 = vmatpush3.msra.mxu1 %v4370_v42  ;;  %7356 = vmatprep.mubr.msk.f32.mxu1 %vm7896_vm5, %v7895_v27 }
0x1dc9   : > { %7364 = vmatprep.subr.mxu1 %v7895_v27  ;;  %v4368_v28 = vmul.f32 %v7740_v26, %v7732_v3 }
0x1dcb   : > { %7357 = vmatmul.mubr.msk.f32.vlgmr.msra.gmra.mxu1 %vm1276_vm1, %v4368_v28 }
0x1dcc   : > { %v7742_v29 = vpop.eup %7741  ;;  %7365 = vmatpush3.msra.mxu1 %v4537_v41  ;;  %7366 = vmatprep.mubr.msk.f32.mxu1 %vm7896_vm5, %v7895_v27  ;;  %v6770_v41 = vld [vmem:[%s9083_s11] ss:$0 sm:$0xff]  ;;  %s9087_s11 = sld [smem:[#allocation23_spill]] }
0x1dcd   : > { %v4535_v30 = vmul.f32 %v7742_v29, %v7734_v7  ;;  %7380 = vmatprep.subr.mxu1 %v7895_v27 }
0x1dcf   : > { %7367 = vmatmul.mubr.msk.f32.vlgmr.msra.gmra.mxu1 %vm1276_vm1, %v4535_v30 }
0x1dd0   : > { %7388 = vmatprep.mubr.msk.f32.mxu1 %vm7896_vm5, %v7895_v27 }
0x1def   : > { %v3769_v31 = vpop.xlane.xlu0 %3768 }
0x1df0   : > { %v3771_v32 = vmul.f32 0.03125, %v3769_v31 }
0x1df2   : > { %v3773_v33 = vadd.f32 1e-05, %v3771_v32  ;;  %v6771_v32 = vld [vmem:[%s9084_s3] ss:$0 sm:$0xff]  ;;  %s9086_s3 = sld [smem:[#allocation21_spill]] }
0x1df3   : > { %v3766_v34 = vpop.xlane.xlu1 %3765 }
0x1df4   : > { %7743 = vrsqrt.f32 %v3773_v33  ;;  %v3770_v35 = vmul.f32 0.03125, %v3766_v34 }
0x1df6   : > { %v3772_v36 = vadd.f32 1e-05, %v3770_v35 }
0x1df8   : > { %7745 = vrsqrt.f32 %v3772_v36 }
0x1e01   : > { %v7744_v37 = vpop.eup %7743 }
0x1e02   : > { %v3777_v38 = vmul.f32 %v7744_v37, %v3761_v53  ;;  %v3861_v53 = vld [vmem:[%s9081_s25] sm:$0xff] }
0x1e03   : > { %7376 = vmatpush3.msra.mxu0 %v3861_v53  ;;  %v4818_v53 = vld [vmem:[%s9088_s8] sm:$0x1] }
0x1e04   : > { %v3785_v39 = vmul.f32 %v6768_v54, %v3777_v38  ;;  %7391 = vmatprep.subr.mxu0 %v7895_v27 }
0x1e05   : > { %v7746_v4 = vpop.eup %7745 }
0x1e06   : > { %v3793_v40 = vadd.f32 %v6769_v5, %v3785_v39  ;;  %v3776_v44 = vmul.f32 %v7746_v4, %v3760_v13  ;;  %v4739_v13 = vld [vmem:[%s9082_s19 + $0x18] sm:$0xff] }
0x1e07   : > { %7381 = vmatpush3.msra.mxu1 %v4739_v13 }
0x1e08   : > { %v3799_v43 = vsel %vm1188_vm0, %v3793_v40, 0.0  ;;  %v3784_v46 = vmul.f32 %v6768_v54, %v3776_v44  ;;  %7382 = vmatprep.subr.mxu1 %v7895_v27 }
0x1e09   : > { %3800 = vadd.xlane.f32.xlu1 %v3799_v43  ;;  %7383 = vmatpush3.msra.mxu1 %v4738_v14  ;;  %v6788_v14 = vld [vmem:[%s9089_s14] ss:$0 sm:$0xff] }
0x1e0a   : > { %v3792_v47 = vadd.f32 %v6769_v5, %v3784_v46  ;;  %7384 = vmatprep.subr.mxu1 %v7895_v27 }
0x1e0b   : > { %7385 = vmatpush3.msra.mxu1 %v4737_v16 }
0x1e0c   : > { %v3796_v56 = vsel %vm1188_vm0, %v3792_v47, 0.0  ;;  %7386 = vmatprep.subr.mxu1 %v7895_v27 }
0x1e0d   : > { %3797 = vadd.xlane.f32.xlu0 %v3796_v56  ;;  %7387 = vmatpush3.msra.mxu1 %v4736_v17  ;;  %v4816_v56 = vld [vmem:[%s9085_s6 + $0x10] sm:$0xff]  ;;  %v4894_v17 = vsub.s32 0, %v8560_v15 }
0x1e0e   : > { %7402 = vmatprep.subr.mxu1 %v7895_v27  ;;  %v6848_v15 = vld [vmem:[%s9091_s29 + $0x30] sm:$0xff] }
0x1e83   : > { %v4107_v45 = vpop.f32.mrf.mxu1 }
0x1e85   : > { %v7338_v48 = vpop.f32.mrf.mxu1 }
0x1e86   : > { %v4814_v48 = vld [vmem:[%s9085_s6] sm:$0xff] }
0x1e87   : > { %v4274_v52 = vpop.f32.mrf.mxu1 }
0x1e89   : > { %v7348_v57 = vpop.f32.mrf.mxu1 }
0x1e8b   : > { %v4441_v8 = vpop.f32.mrf.mxu1 }
0x1e8d   : > { %v7358_v58 = vpop.f32.mrf.mxu1 }
0x1e8f   : > { %v4608_v59 = vpop.f32.mrf.mxu1 }
0x1e91   : > { %v7368_v60 = vpop.f32.mrf.mxu1 }
0x1e92   : > { %v3801_v61 = vpop.xlane.xlu1 %3800 }
0x1e93   : > { %v3803_v62 = vmul.f32 0.03125, %v3801_v61  ;;  %v4740_v61 = vld [vmem:[%s9087_s11] sm:$0x1] }
0x1e95   : > { %v3805_v63 = vsub.f32 %v3793_v40, %v3803_v62 }
0x1e96   : > { %v3798_v0 = vpop.xlane.xlu0 %3797 }
0x1e97   : > { %v3802_v1 = vmul.f32 0.03125, %v3798_v0  ;;  %v3807_v2 = vmul.f32 %v3805_v63, %v3805_v63 }
0x1e99   : > { %v3804_v3 = vsub.f32 %v3792_v47, %v3802_v1  ;;  %v3811_v6 = vsel %vm1188_vm0, %v3807_v2, 0.0  ;;  %v4817_v47 = vld [vmem:[%s9085_s6 + $0x18] sm:$0xff] }
0x1e9a   : > { %3812 = vadd.xlane.f32.xlu1 %v3811_v6 }
0x1e9b   : > { %v3806_v7 = vmul.f32 %v3804_v3, %v3804_v3 }
0x1e9d   : > { %v3808_v9 = vsel %vm1188_vm0, %v3806_v7, 0.0 }
0x1e9e   : > { %3809 = vadd.xlane.f32.xlu0 %v3808_v9 }
0x1eab   : > { %4617 = vrot.lane.b32.xlu1 %v4441_v8, %s9077_s7 }
0x1eaf   : > { %4621 = vrot.lane.b32.xlu1 %v4608_v59, %s9078_s9 }
0x1eb4   : > { %4613 = vrot.lane.b32.xlu0 %v4274_v52, %s9076_s22  ;;  %v6786_v52 = vld [vmem:[%s9086_s3] ss:$0 sm:$0xff] }
0x1f23   : > { %v3813_v18 = vpop.xlane.xlu1 %3812 }
0x1f24   : > { %v3815_v19 = vmul.f32 0.03125, %v3813_v18 }
0x1f26   : > { %v3817_v21 = vadd.f32 1e-05, %v3815_v19  ;;  %v6789_v19 = vld [vmem:[%s9090_s24] ss:$0 sm:$0xff] }
0x1f27   : > { %v4618_v51 = vpop.permute.xlu1 %4617  ;;  %v3810_v22 = vpop.xlane.xlu0 %3809 }
0x1f28   : > { %7747 = vrsqrt.f32 %v3817_v21  ;;  %v3814_v10 = vmul.f32 0.03125, %v3810_v22 }
0x1f2a   : > { %v3816_v23 = vadd.f32 1e-05, %v3814_v10 }
0x1f2b   : > { %v4614_v50 = vpop.permute.xlu0 %4613  ;;  %v4622_v25 = vpop.permute.xlu1 %4621 }
0x1f2c   : > { %7749 = vrsqrt.f32 %v3816_v23  ;;  %v4624_v24 = vsel %vm1276_vm1, %v4107_v45, %v4614_v50  ;;  %v4815_v45 = vld [vmem:[%s9085_s6 + $0x8] sm:$0xff] }
0x1f2d   : > { %v4625_v42 = vsel %vm1362_vm2, %v4624_v24, %v4618_v51 }
0x1f2e   : > { %v4626_v26 = vsel %vm2106_vm3, %v4625_v42, %v4622_v25 }
0x1f2f   : > { %7378 = vmatmul.mubr.msk.f32.vlgmr.msra.gmra.mxu0 %vm1188_vm0, %v4626_v26 }
0x1f30   : > { %7399 = vmatprep.mubr.msk.f32.mxu0 %vm7896_vm5, %v7895_v27  ;;  %7392 = vmatpush3.msra.mxu0 %v4817_v47  ;;  %v4932_v47 = vld [vmem:[%s9092_s30 + $0x8] sm:$0xff] }
0x1f31   : > { %7393 = vmatprep.subr.mxu0 %v7895_v27 }
0x1f32   : > { %7394 = vmatpush3.msra.mxu0 %v4816_v56  ;;  %v4931_v56 = vld [vmem:[%s9092_s30] sm:$0xff] }
0x1f33   : > { %7395 = vmatprep.subr.mxu0 %v7895_v27 }
0x1f34   : > { %7396 = vmatpush3.msra.mxu0 %v4815_v45  ;;  %v6794_v45 = vld [vmem:[%s9095_s16] ss:$0 sm:$0xff]  ;;  %s9097_s16 = sld [smem:[#allocation34_spill]] }
0x1f35   : > { %v7748_v28 = vpop.eup %7747  ;;  %7397 = vmatprep.subr.mxu0 %v7895_v27 }
0x1f36   : > { %v3821_v29 = vmul.f32 %v7748_v28, %v3805_v63  ;;  %7398 = vmatpush3.msra.mxu0 %v4814_v48  ;;  %v4929_v28 = vld [vmem:[%s9091_s29 + $0x18] sm:$0xff] }
0x1f37   : > { %7413 = vmatprep.subr.mxu0 %v7895_v27 }
0x1f38   : > { %v3829_v30 = vmul.f32 %v6770_v41, %v3821_v29  ;;  %v4927_v29 = vld [vmem:[%s9091_s29 + $0x8] sm:$0xff] }
0x1f39   : > { %v7750_v31 = vpop.eup %7749 }
0x1f3a   : > { %v3820_v33 = vmul.f32 %v7750_v31, %v3804_v3  ;;  %v3837_v34 = vadd.f32 %v6771_v32, %v3829_v30  ;;  %v4926_v30 = vld [vmem:[%s9091_s29] sm:$0xff]  ;;  %v4938_v31 = vld [vmem:[%s9092_s30 + $0x38] sm:$0xff]  ;;  %s9098_s20 = smov %s9097_s16 }
0x1f3c   : > { %v3828_v35 = vmul.f32 %v6770_v41, %v3820_v33  ;;  %v3839_v54 = vsel %vm1188_vm0, %v3837_v34, 0.0  ;;  %v4928_v41 = vld [vmem:[%s9091_s29 + $0x10] sm:$0xff]  ;;  %v4936_v33 = vld [vmem:[%s9092_s30 + $0x28] sm:$0xff]  ;;  %v4935_v34 = vld [vmem:[%s9092_s30 + $0x20] sm:$0xff] }
0x1f3e   : > { %v3836_v36 = vadd.f32 %v6771_v32, %v3828_v35  ;;  %v4937_v32 = vld [vmem:[%s9092_s30 + $0x30] sm:$0xff]  ;;  %v4934_v35 = vld [vmem:[%s9092_s30 + $0x18] sm:$0xff] }
0x1f40   : > { %v3838_v37 = vsel %vm1188_vm0, %v3836_v36, 0.0 }
0x1f41   : > { %v3840_v38 = vadd.f32 %v3839_v54, %v3838_v37 }
0x1f43   : > { %v3841_v5 = vrot.slane %v3840_v38, 4 }
0x1f45   : > { %v3842_v39 = vadd.f32 %v3841_v5, %v3840_v38  ;;  %v6792_v5 = vld [vmem:[%s9093_s0] ss:$0 sm:$0xff] }
0x1f47   : > { %v3843_v4 = vrot.slane %v3842_v39, 2 }
0x1f49   : > { %v3844_v40 = vadd.f32 %v3843_v4, %v3842_v39  ;;  %v6793_v4 = vld [vmem:[%s9094_s4] ss:$0 sm:$0xff] }
0x1f4b   : > { %v3845_v44 = vrot.slane %v3844_v40, 1 }
0x1f4d   : > { %v3846_v43 = vadd.f32 %v3845_v44, %v3844_v40 }
0x1f4f   : > { %v8643_v46 = vmul.f32 0.0625, %v3846_v43  ;;  %v4933_v43 = vld [vmem:[%s9092_s30 + $0x10] sm:$0xff] }
0x1f51   : > { %7389 = vmatmul.mubr.msk.f32.vlgmr.msra.gmra.mxu1 %vm1188_vm0, %v8643_v46 }
0x1f52   : > { %7410 = vmatprep.mubr.msk.f32.mxu1 %vm7896_vm5, %v7895_v27  ;;  %7403 = vmatpush3.msra.mxu1 %v4929_v28 }
0x1f53   : > { %7404 = vmatprep.subr.mxu1 %v7895_v27 }
0x1f54   : > { %7405 = vmatpush3.msra.mxu1 %v4928_v41 }
0x1f55   : > { %7406 = vmatprep.subr.mxu1 %v7895_v27 }
0x1f56   : > { %7407 = vmatpush3.msra.mxu1 %v4927_v29 }
0x1f57   : > { %7408 = vmatprep.subr.mxu1 %v7895_v27 }
0x1f58   : > { %7409 = vmatpush3.msra.mxu1 %v4926_v30 }
0x1f59   : > { %7432 = vmatprep.subr.mxu1 %v7895_v27 }
0x1fef   : > { %v4702_v57 = vpop.f32.mrf.mxu0 }
0x1ff0   : > { %v4703_v8 = vadd.f32 %v6786_v52, %v4702_v57 }
0x1ff1   : > { %v7379_v58 = vpop.f32.mrf.mxu0 }
0x1ff2   : > { %v4706_v59 = vadd.f32 %v4703_v8, %v8504_v49  ;;  %v6796_v58 = vld [vmem:[%s9096_s27] ss:$0 sm:$0xff]  ;;  %s9099_s27 = sld [smem:[#allocation35_spill]] }
0x1ff4   : > { %v4709_v60 = vsel %vm1188_vm0, %v4706_v59, 0.0 }
0x1ff5   : > { %4710 = vadd.xlane.f32.xlu0 %v4709_v60 }
0x2011   : > { %v4810_v62 = vpop.f32.mrf.mxu1 }
0x2012   : > { %v4811_v63 = vadd.f32 %v4810_v62, %v4740_v61 }
0x2013   : > { %v7390_v0 = vpop.f32.mrf.mxu1 }
0x2014   : > { %7400 = vmatmul.mubr.msk.f32.vlgmr.msra.gmra.mxu0 %vm1188_vm0, %v4811_v63 }
0x2015   : > { %7429 = vmatprep.mubr.msk.f32.mxu0 %vm7896_vm5, %v7895_v27  ;;  %7414 = vmatpush3.msra.mxu0 %v4938_v31 }
0x2016   : > { %7415 = vmatprep.subr.mxu0 %v7895_v27 }
0x2017   : > { %7416 = vmatpush3.msra.mxu0 %v4937_v32 }
0x2018   : > { %7417 = vmatprep.subr.mxu0 %v7895_v27 }
0x2019   : > { %7418 = vmatpush3.msra.mxu0 %v4936_v33 }
0x201a   : > { %7419 = vmatprep.subr.mxu0 %v7895_v27 }
0x201b   : > { %7420 = vmatpush3.msra.mxu0 %v4935_v34 }
0x201c   : > { %7421 = vmatprep.subr.mxu0 %v7895_v27 }
0x201d   : > { %7422 = vmatpush3.msra.mxu0 %v4934_v35 }
0x201e   : > { %7423 = vmatprep.subr.mxu0 %v7895_v27 }
0x201f   : > { %7424 = vmatpush3.msra.mxu0 %v4933_v43 }
0x2020   : > { %7425 = vmatprep.subr.mxu0 %v7895_v27 }
0x2021   : > { %7426 = vmatpush3.msra.mxu0 %v4932_v47 }
0x2022   : > { %7427 = vmatprep.subr.mxu0 %v7895_v27 }
0x2023   : > { %7428 = vmatpush3.msra.mxu0 %v4931_v56 }
0x2024   : > { %7453 = vmatprep.subr.mxu0 %v7895_v27 }
0x207e   : > { %v4711_v1 = vpop.xlane.xlu0 %4710 }
0x207f   : > { %v4712_v2 = vmul.f32 0.03125, %v4711_v1 }
0x2081   : > { %v4713_v3 = vsub.f32 %v4706_v59, %v4712_v2 }
0x2083   : > { %v4714_v6 = vmul.f32 %v4713_v3, %v4713_v3 }
0x2085   : > { %v4715_v49 = vsel %vm1188_vm0, %v4714_v6, 0.0 }
0x2086   : > { %4716 = vadd.xlane.f32.xlu1 %v4715_v49  ;;  %v6803_v49 = vld [vmem:[%s7977_s12 + $0x38] sm:$0xff] }
0x20d4   : > { %v4888_v7 = vpop.f32.mrf.mxu0 }
0x20d5   : > { %v4889_v16 = vadd.f32 %v4888_v7, %v4818_v53  ;;  %v6802_v7 = vld [vmem:[%s7977_s12 + $0x30] sm:$0xff] }
0x20d6   : > { %v7401_v9 = vpop.f32.mrf.mxu0 }
0x20d7   : > { %v4895_v51 = vrot.slane %v4889_v16, %v4894_v17  ;;  %v6801_v9 = vld [vmem:[%s7977_s12 + $0x28] sm:$0xff] }
0x210f   : > { %v4717_v55 = vpop.xlane.xlu1 %4716 }
0x2110   : > { %v4718_v11 = vmul.f32 0.03125, %v4717_v55  ;;  %v6800_v55 = vld [vmem:[%s7977_s12 + $0x20] sm:$0xff] }
0x2112   : > { %v4719_v12 = vadd.f32 1e-05, %v4718_v11 }
0x2114   : > { %7751 = vrsqrt.f32 %v4719_v12 }
0x2121   : > { %v7752_v13 = vpop.eup %7751 }
0x2122   : > { %v4721_v18 = vmul.f32 %v7752_v13, %v4713_v3 }
0x2124   : > { %v4728_v21 = vmul.f32 %v6788_v14, %v4721_v18  ;;  %v6798_v14 = vld [vmem:[%s9097_s16] ss:$0 sm:$0xff] }
0x2125   : > { %v6799_v18 = vld [vmem:[%s9099_s27] ss:$0 sm:$0xff] }
0x2126   : > { %v4735_v22 = vadd.f32 %v6789_v19, %v4728_v21 }
0x2128   : > { %v4896_v10 = vadd.f32 %v4895_v51, %v4735_v22  ;;  %v6810_v51 = vld [vmem:[%s9080_s21 + $0x1] ss:$0 sm:$0xff] }
0x212a   : > { %v4899_v23 = vsel %vm1188_vm0, %v4896_v10, 0.0 }
0x212b   : > { %4900 = vadd.xlane.f32.xlu0 %v4899_v23 }
0x21b4   : > { %v4901_v50 = vpop.xlane.xlu0 %4900 }
0x21b5   : > { %v4902_v24 = vmul.f32 0.03125, %v4901_v50 }
0x21b7   : > { %v4903_v25 = vsub.f32 %v4896_v10, %v4902_v24 }
0x21b9   : > { %v4904_v42 = vmul.f32 %v4903_v25, %v4903_v25 }
0x21bb   : > { %v4905_v26 = vsel %vm1188_vm0, %v4904_v42, 0.0 }
0x21bc   : > { %4906 = vadd.xlane.f32.xlu0 %v4905_v26 }
0x2245   : > { %v4907_v36 = vpop.xlane.xlu0 %4906 }
0x2246   : > { %v4908_v37 = vmul.f32 0.03125, %v4907_v36 }
0x2248   : > { %v4909_v54 = vadd.f32 1e-05, %v4908_v37 }
0x224a   : > { %7753 = vrsqrt.f32 %v4909_v54 }
0x2257   : > { %v7754_v38 = vpop.eup %7753 }
0x2258   : > { %v4911_v39 = vmul.f32 %v7754_v38, %v4903_v25 }
0x225a   : > { %v4918_v40 = vmul.f32 %v6792_v5, %v4911_v39 }
0x225c   : > { %v4925_v44 = vadd.f32 %v6793_v4, %v4918_v40 }
0x225e   : > { %7411 = vmatmul.mubr.msk.f32.vlgmr.msra.gmra.mxu1 %vm1188_vm0, %v4925_v44 }
0x225f   : > { %7440 = vmatprep.mubr.msk.f32.mxu1 %vm7896_vm5, %v7895_v27  ;;  %7433 = vmatpush3.msra.mxu1 %v6803_v49 }
0x2260   : > { %7434 = vmatprep.subr.mxu1 %v7895_v27 }
0x2261   : > { %7435 = vmatpush3.msra.mxu1 %v6802_v7 }
0x2262   : > { %7436 = vmatprep.subr.mxu1 %v7895_v27 }
0x2263   : > { %7437 = vmatpush3.msra.mxu1 %v6801_v9 }
0x2264   : > { %7438 = vmatprep.subr.mxu1 %v7895_v27 }
0x2265   : > { %7439 = vmatpush3.msra.mxu1 %v6800_v55 }
0x2266   : > { %7443 = vmatprep.subr.mxu1 %v7895_v27 }
0x231e   : > { %v5015_v48 = vpop.f32.mrf.mxu1 }
0x231f   : > { %v5016_v52 = vadd.f32 %v6794_v45, %v5015_v48 }
0x2320   : > { %v7412_v57 = vpop.f32.mrf.mxu1 }
0x2321   : > { %v5019_v8 = vmax.f32 %v5016_v52, 0.0 }
0x2323   : > { %7430 = vmatmul.mubr.msk.f32.vlgmr.msra.gmra.mxu0 %vm2352_vm4, %v5019_v8 }
0x2324   : > { %7455 = vmatprep.mubr.msk.f32.mxu0 %vm7896_vm5, %v7895_v27 }
0x23e3   : > { %v5095_v59 = vpop.f32.mrf.mxu0 }
0x23e4   : > { %v5096_v60 = vadd.f32 %v6796_v58, %v5095_v59 }
0x23e5   : > { %v7431_v61 = vpop.f32.mrf.mxu0 }
0x23e6   : > { %v5099_v62 = vadd.f32 %v5096_v60, %v4925_v44 }
0x23e8   : > { %v5102_v63 = vsel %vm1188_vm0, %v5099_v62, 0.0 }
0x23e9   : > { %5103 = vadd.xlane.f32.xlu1 %v5102_v63 }
0x2472   : > { %v5104_v0 = vpop.xlane.xlu1 %5103 }
0x2473   : > { %v5105_v1 = vmul.f32 0.03125, %v5104_v0 }
0x2475   : > { %v5106_v2 = vsub.f32 %v5099_v62, %v5105_v1 }
0x2477   : > { %v5107_v3 = vmul.f32 %v5106_v2, %v5106_v2 }
0x2479   : > { %v5108_v6 = vsel %vm1188_vm0, %v5107_v3, 0.0 }
0x247a   : > { %5109 = vadd.xlane.f32.xlu0 %v5108_v6 }
0x2503   : > { %v5110_v11 = vpop.xlane.xlu0 %5109 }
0x2504   : > { %v5111_v12 = vmul.f32 0.03125, %v5110_v11 }
0x2506   : > { %v5112_v53 = vadd.f32 1e-05, %v5111_v12 }
0x2508   : > { %7755 = vrsqrt.f32 %v5112_v53 }
0x2515   : > { %v7756_v13 = vpop.eup %7755 }
0x2516   : > { %v5114_v16 = vmul.f32 %v7756_v13, %v5106_v2 }
0x2518   : > { %v5121_v19 = vmul.f32 %v6798_v14, %v5114_v16 }
0x251a   : > { %v8719_v21 = vadd.f32 %v6799_v18, %v5121_v19 }
0x251c   : > { %7441 = vmatmul.mubr.msk.f32.vlgmr.msra.gmra.mxu1 %vm1188_vm0, %v8719_v21 }
0x251d   : > { %7445 = vmatprep.mubr.msk.f32.mxu1 %vm7896_vm5, %v7895_v27 }
0x25dc   : > { %v5218_v22 = vpop.f32.mrf.mxu1 }
0x25dd   : > { %v8726_v10 = vadd.f32 %v6810_v51, %v5218_v22 }
0x25de   : > { %v7442_v23 = vpop.f32.mrf.mxu1 }
0x25df   : > { %5390 = vrot.lane.b32.xlu0 %v8726_v10, %s9066_s28  ;;  %5223 = vrot.lane.b32.xlu1 %v8726_v10, %s9065_s1 }
0x25e3   : > { %5555 = vrot.lane.b32.xlu0 %v8726_v10, %s9071_s2  ;;  %5388 = vrot.lane.b32.xlu1 %v8726_v10, %s9067_s23  ;;  %s9108_s2 = sld [smem:[#allocation42_spill]] }
0x25e7   : > { %5722 = vrot.lane.b32.xlu0 %v8726_v10, %s9074_s10  ;;  %5557 = vrot.lane.b32.xlu1 %v8726_v10, %s9070_s17  ;;  %s9103_s17 = sld [smem:[#allocation38_spill]] }
0x25eb   : > { %5724 = vrot.lane.b32.xlu1 %v8726_v10, %s9073_s26  ;;  %s9107_s26 = sld [smem:[#allocation47_spill]] }
0x25f1   : > { %s6873_s23 = sshll.u32 %s9107_s26, 7 }
0x2651   : > { %v5391_v50 = vpop.permute.xlu0 %5390  ;;  %v5224_v24 = vpop.permute.xlu1 %5223 }
0x2652   : > { %7444 = vmatpush3.xpose.msk.msra.mxu1 %vm1276_vm1, %v5224_v24  ;;  %7454 = vmatpush3.xpose.msk.msra.mxu0 %vm1276_vm1, %v5391_v50 }
0x2653   : > { %7463 = vmatprep.subr.mxu0 %v7895_v27  ;;  %7448 = vmatprep.subr.mxu1 %v7895_v27 }
0x2655   : > { %7446 = vmatmul.mubr.msk.f32.vlgmr.msra.gmra.mxu1 %vm1276_vm1, %v8726_v10  ;;  %v5389_v25 = vpop.permute.xlu1 %5388  ;;  %v5556_v26 = vpop.permute.xlu0 %5555 }
0x2656   : > { %7456 = vmatmul.mubr.msk.f32.vlgmr.msra.gmra.mxu0 %vm1276_vm1, %v5389_v25  ;;  %7450 = vmatprep.mubr.msk.f32.mxu1 %vm7896_vm5, %v7895_v27 }
0x2657   : > { %7465 = vmatprep.mubr.msk.f32.mxu0 %vm7896_vm5, %v7895_v27 }
0x2659   : > { %v5558_v42 = vpop.permute.xlu1 %5557  ;;  %v5723_v41 = vpop.permute.xlu0 %5722 }
0x265a   : > { %7464 = vmatpush3.xpose.msk.msra.mxu0 %vm1276_vm1, %v5558_v42 }
0x265b   : > { %7473 = vmatprep.subr.mxu0 %v7895_v27 }
0x265d   : > { %7466 = vmatmul.mubr.msk.f32.vlgmr.msra.gmra.mxu0 %vm1276_vm1, %v5556_v26  ;;  %v5725_v28 = vpop.permute.xlu1 %5724  ;;  %v6833_v26 = vld [vmem:[%s9082_s19 + $0x38] sm:$0xff] }
0x265e   : > { %7474 = vmatpush3.xpose.msk.msra.mxu0 %vm1276_vm1, %v5725_v28  ;;  %7475 = vmatprep.mubr.msk.f32.mxu0 %vm7896_vm5, %v7895_v27  ;;  %v6832_v28 = vld [vmem:[%s9082_s19 + $0x30] sm:$0xff] }
0x265f   : > { %7483 = vmatprep.subr.mxu0 %v7895_v27 }
0x2661   : > { %7476 = vmatmul.mubr.msk.f32.vlgmr.msra.gmra.mxu0 %vm1276_vm1, %v5723_v41  ;;  %v6831_v41 = vld [vmem:[%s9082_s19 + $0x28] sm:$0xff] }
0x2662   : > { %7491 = vmatprep.mubr.msk.f32.mxu0 %vm7896_vm5, %v7895_v27 }
0x2715   : > { %v5295_v29 = vpop.f32.mrf.mxu1 }
0x2716   : > { %v5299_v30 = vmul.f32 0.35355338, %v5295_v29  ;;  %v5462_v31 = vpop.f32.mrf.mxu0  ;;  %v6830_v29 = vld [vmem:[%s9082_s19 + $0x20] sm:$0xff] }
0x2717   : > { %v5466_v32 = vmul.f32 0.35355338, %v5462_v31  ;;  %v7447_v33 = vpop.f32.mrf.mxu1  ;;  %v6807_v31 = vld [vmem:[%s9081_s25 + $0x30] sm:$0xff] }
0x2718   : > { %v5300_v34 = vadd.f32 %v5299_v30, %v8563_v20  ;;  %v7457_v35 = vpop.f32.mrf.mxu0  ;;  %v6808_v30 = vld [vmem:[%s9081_s25 + $0x38] sm:$0xff] }
0x2719   : > { %v5467_v36 = vadd.f32 %v5466_v32, %v8563_v20  ;;  %7484 = vmatpush3.msra.mxu0 %v6808_v30  ;;  %v6857_v30 = vld [vmem:[%s9092_s30 + $0x70] sm:$0xff] }
0x271a   : > { %v5301_v37 = vsel %vm1276_vm1, %v5300_v34, -inf  ;;  %7485 = vmatprep.subr.mxu0 %v7895_v27 }
0x271b   : > { %5302 = vmax.xlane.f32.xlu1 %v5301_v37  ;;  %v5468_v54 = vsel %vm1276_vm1, %v5467_v36, -inf  ;;  %7486 = vmatpush3.msra.mxu0 %v6807_v31  ;;  %v6856_v31 = vld [vmem:[%s9092_s30 + $0x68] sm:$0xff] }
0x271c   : > { %5469 = vmax.xlane.f32.xlu0 %v5468_v54  ;;  %7487 = vmatprep.subr.mxu0 %v7895_v27 }
0x271d   : > { %v5629_v38 = vpop.f32.mrf.mxu0 }
0x271e   : > { %v5633_v5 = vmul.f32 0.35355338, %v5629_v38 }
0x271f   : > { %v7467_v39 = vpop.f32.mrf.mxu0 }
0x2720   : > { %v5634_v4 = vadd.f32 %v5633_v5, %v8563_v20 }
0x2721   : > { %v5796_v40 = vpop.f32.mrf.mxu0 }
0x2722   : > { %v5800_v44 = vmul.f32 0.35355338, %v5796_v40  ;;  %v5635_v43 = vsel %vm1276_vm1, %v5634_v4, -inf }
0x2723   : > { %5636 = vmax.xlane.f32.xlu0 %v5635_v43  ;;  %v7477_v47 = vpop.f32.mrf.mxu0 }
0x2724   : > { %v5801_v56 = vadd.f32 %v5800_v44, %v8563_v20 }
0x2726   : > { %v5802_v45 = vsel %vm1276_vm1, %v5801_v56, -inf }
0x2727   : > { %5803 = vmax.xlane.f32.xlu1 %v5802_v45  ;;  %v6839_v45 = vld [vmem:[%s9085_s6 + $0x38] sm:$0xff] }
0x2738   : > { %5479 = vrot.lane.b32.xlu1 %v8726_v10, %s9069_s13  ;;  %s9102_s13 = sld [smem:[#allocation40_spill]] }
0x27a4   : > { %v5303_v48 = vpop.xlane.xlu1 %5302 }
0x27a5   : > { %v5304_v52 = vsub.f32 %v5300_v34, %v5303_v48  ;;  %v5470_v57 = vpop.xlane.xlu0 %5469 }
0x27a6   : > { %v5471_v8 = vsub.f32 %v5467_v36, %v5470_v57  ;;  %v6805_v36 = vld [vmem:[%s9081_s25 + $0x20] sm:$0xff]  ;;  %v6837_v57 = vld [vmem:[%s9085_s6 + $0x28] sm:$0xff] }
0x27a7   : > { %v5305_v58 = vmul.f32 1.442695, %v5304_v52  ;;  %v6838_v52 = vld [vmem:[%s9085_s6 + $0x30] sm:$0xff] }
0x27a8   : > { %v5472_v59 = vmul.f32 1.442695, %v5471_v8  ;;  %v6834_v8 = vld [vmem:[%s9087_s11 + $0x1] sm:$0x1] }
0x27a9   : > { %7757 = vpow2.f32 %v5305_v58  ;;  %v6836_v58 = vld [vmem:[%s9085_s6 + $0x20] sm:$0xff] }
0x27aa   : > { %7759 = vpow2.f32 %v5472_v59 }
0x27ac   : > { %v5637_v6 = vpop.xlane.xlu0 %5636 }
0x27ad   : > { %v5638_v49 = vsub.f32 %v5634_v4, %v5637_v6 }
0x27af   : > { %v5639_v7 = vmul.f32 1.442695, %v5638_v49 }
0x27b0   : > { %v5804_v60 = vpop.xlane.xlu1 %5803 }
0x27b1   : > { %v5805_v61 = vsub.f32 %v5801_v56, %v5804_v60  ;;  %v6824_v60 = vld [vmem:[%s9086_s3 + $0x1] ss:$0 sm:$0xff] }
0x27b3   : > { %v5806_v62 = vmul.f32 1.442695, %v5805_v61 }
0x27b4   : > { %v5480_v11 = vpop.permute.xlu1 %5479 }
0x27b5   : > { %7761 = vpow2.f32 %v5806_v62 }
0x27b6   : > { %v7758_v63 = vpop.eup %7757  ;;  %7763 = vpow2.f32 %v5639_v7 }
0x27b7   : > { %v7760_v20 = vpop.eup %7759  ;;  %v5307_v0 = vsel %vm1276_vm1, %v7758_v63, 0.0 }
0x27b8   : > { %5308 = vadd.xlane.f32.xlu0 %v5307_v0  ;;  %v5474_v1 = vsel %vm1276_vm1, %v7760_v20, 0.0 }
0x27b9   : > { %5475 = vadd.xlane.f32.xlu1 %v5474_v1 }
0x27c2   : > { %v7762_v2 = vpop.eup %7761 }
0x27c3   : > { %v5808_v3 = vsel %vm1276_vm1, %v7762_v2, 0.0  ;;  %v7764_v9 = vpop.eup %7763 }
0x27c4   : > { %5809 = vadd.xlane.f32.xlu1 %v5808_v3  ;;  %v5641_v55 = vsel %vm1276_vm1, %v7764_v9, 0.0 }
0x27ce   : > { %5312 = vrot.lane.b32.xlu0 %v8726_v10, %s9068_s5  ;;  %s9100_s5 = sld [smem:[#allocation27_spill]] }
0x27d5   : > { %5646 = vrot.lane.b32.xlu1 %v8726_v10, %s9072_s18  ;;  %s9105_s18 = sld [smem:[#allocation44_spill]] }
0x27db   : > { %s1158_s10 = sand.u32 1, %s9105_s18  }
0x27dc   : > { %s6658_s1 = sshll.u32 %s1158_s10, 3 }
0x27dd   : > { %s1160_s28 = scalar_lea.vmem [#allocation2], %s6658_s1 }
0x27de   : > { %s6545_s16 = sshll.u32 %s1160_s28, 4  ;;  %s6546_s16 = int_to_ptr.vmem [resolvable:$true] %s6545_s16 }
0x27ed   : > { %5642 = vadd.xlane.f32.xlu0 %v5641_v55 }
0x2803   : > { %5813 = vrot.lane.b32.xlu0 %v8726_v10, %s9075_s15  ;;  %s9104_s15 = sld [smem:[#allocation39_spill]] }
0x2841   : > { %v5309_v12 = vpop.xlane.xlu0 %5308 }
0x2842   : > { %7765 = vrcp.f32 %v5309_v12  ;;  %v5476_v53 = vpop.xlane.xlu1 %5475 }
0x2843   : > { %7767 = vrcp.f32 %v5476_v53  ;;  %v6840_v53 = vld [vmem:[%s9088_s8 + $0x1] sm:$0x1] }
0x2845   : > { %v5313_v13 = vpop.permute.xlu0 %5312 }
0x2846   : > { %7449 = vmatpush3.msra.mxu1 %v5313_v13  ;;  %v6828_v13 = vld [vmem:[%s9089_s14 + $0x1] ss:$0 sm:$0xff] }
0x2847   : > { %7458 = vmatprep.subr.mxu1 %v7895_v27 }
0x284d   : > { %v5810_v16 = vpop.xlane.xlu1 %5809 }
0x284f   : > { %v7766_v14 = vpop.eup %7765 }
0x2850   : > { %v5311_v18 = vmul.f32 %v7766_v14, %v7758_v63  ;;  %v7768_v19 = vpop.eup %7767 }
0x2851   : > { %v5478_v51 = vmul.f32 %v7768_v19, %v7760_v20  ;;  %v5647_v22 = vpop.permute.xlu1 %5646 }
0x2852   : > { %7451 = vmatmul.mubr.msk.f32.vlgmr.msra.gmra.mxu1 %vm1276_vm1, %v5311_v18  ;;  %v6829_v18 = vld [vmem:[%s9090_s24 + $0x1] ss:$0 sm:$0xff] }
0x2853   : > { %7459 = vmatpush3.msra.mxu1 %v5480_v11  ;;  %7460 = vmatprep.mubr.msk.f32.mxu1 %vm7896_vm5, %v7895_v27 }
0x2854   : > { %7468 = vmatprep.subr.mxu1 %v7895_v27 }
0x2856   : > { %7461 = vmatmul.mubr.msk.f32.vlgmr.msra.gmra.mxu1 %vm1276_vm1, %v5478_v51 }
0x2857   : > { %7469 = vmatpush3.msra.mxu1 %v5647_v22  ;;  %7470 = vmatprep.mubr.msk.f32.mxu1 %vm7896_vm5, %v7895_v27 }
0x2858   : > { %7478 = vmatprep.subr.mxu1 %v7895_v27 }
0x2876   : > { %v5643_v10 = vpop.xlane.xlu0 %5642 }
0x2877   : > { %7769 = vrcp.f32 %v5643_v10 }
0x2878   : > { %7771 = vrcp.f32 %v5810_v16 }
0x287a   : > { %v5814_v25 = vpop.permute.xlu0 %5813 }
0x2884   : > { %v7770_v23 = vpop.eup %7769 }
0x2885   : > { %v5645_v50 = vmul.f32 %v7770_v23, %v7764_v9  ;;  %v7772_v24 = vpop.eup %7771 }
0x2886   : > { %v5812_v42 = vmul.f32 %v7772_v24, %v7762_v2 }
0x2887   : > { %7471 = vmatmul.mubr.msk.f32.vlgmr.msra.gmra.mxu1 %vm1276_vm1, %v5645_v50 }
0x2888   : > { %7479 = vmatpush3.msra.mxu1 %v5814_v25  ;;  %7480 = vmatprep.mubr.msk.f32.mxu1 %vm7896_vm5, %v7895_v27 }
0x2889   : > { %7494 = vmatprep.subr.mxu1 %v7895_v27 }
0x288b   : > { %7481 = vmatmul.mubr.msk.f32.vlgmr.msra.gmra.mxu1 %vm1276_vm1, %v5812_v42 }
0x288c   : > { %7495 = vmatpush3.msra.mxu1 %v6833_v26  ;;  %7502 = vmatprep.mubr.msk.f32.mxu1 %vm7896_vm5, %v7895_v27 }
0x288d   : > { %7496 = vmatprep.subr.mxu1 %v7895_v27 }
0x288e   : > { %7497 = vmatpush3.msra.mxu1 %v6832_v28  ;;  %v6849_v28 = vld [vmem:[%s9091_s29 + $0x38] sm:$0xff] }
0x288f   : > { %7498 = vmatprep.subr.mxu1 %v7895_v27 }
0x2890   : > { %7499 = vmatpush3.msra.mxu1 %v6831_v41  ;;  %v6846_v41 = vld [vmem:[%s9091_s29 + $0x20] sm:$0xff] }
0x2891   : > { %7500 = vmatprep.subr.mxu1 %v7895_v27 }
0x2892   : > { %7501 = vmatpush3.msra.mxu1 %v6830_v29  ;;  %v6858_v29 = vld [vmem:[%s9092_s30 + $0x78] sm:$0xff] }
0x2893   : > { %7503 = vmatmul.mubr.msk.f32.vlgmr.msra.gmra.mxu1 %vm1188_vm0, %v8643_v46  ;;  %7516 = vmatprep.subr.mxu1 %v7895_v27  ;;  %v6806_v46 = vld [vmem:[%s9081_s25 + $0x28] sm:$0xff] }
0x2894   : > { %7524 = vmatprep.mubr.msk.f32.mxu1 %vm7896_vm5, %v7895_v27  ;;  %7488 = vmatpush3.msra.mxu0 %v6806_v46 }
0x2895   : > { %7489 = vmatprep.subr.mxu0 %v7895_v27  ;;  %7517 = vmatpush3.msra.mxu1 %v6849_v28 }
0x2896   : > { %7490 = vmatpush3.msra.mxu0 %v6805_v36  ;;  %7518 = vmatprep.subr.mxu1 %v7895_v27 }
0x2897   : > { %7505 = vmatprep.subr.mxu0 %v7895_v27  ;;  %7519 = vmatpush3.msra.mxu1 %v6848_v15 }
0x2898   : > { %7520 = vmatprep.subr.mxu1 %v7895_v27 }
0x2912   : > { %v5384_v32 = vpop.f32.mrf.mxu1 }
0x2914   : > { %v7452_v33 = vpop.f32.mrf.mxu1 }
0x2915   : > { %v6854_v33 = vld [vmem:[%s9092_s30 + $0x58] sm:$0xff] }
0x2916   : > { %v5551_v34 = vpop.f32.mrf.mxu1 }
0x2917   : > { %5890 = vrot.lane.b32.xlu1 %v5551_v34, %s9076_s22  ;;  %s9106_s22 = sld [smem:[#allocation41_spill]] }
0x2918   : > { %v7462_v35 = vpop.f32.mrf.mxu1 }
0x2947   : > { %v5718_v37 = vpop.f32.mrf.mxu1 }
0x2948   : > { %5894 = vrot.lane.b32.xlu0 %v5718_v37, %s9077_s7  ;;  %v6844_v37 = vld [vmem:[%s9093_s0 + $0x1] ss:$0 sm:$0xff] }
0x2949   : > { %v7472_v54 = vpop.f32.mrf.mxu1 }
0x294b   : > { %v5885_v38 = vpop.f32.mrf.mxu1 }
0x294c   : > { %5898 = vrot.lane.b32.xlu1 %v5885_v38, %s9078_s9  ;;  %v6845_v38 = vld [vmem:[%s9094_s4 + $0x1] ss:$0 sm:$0xff]  ;;  %s9101_s9 = sld [smem:[#allocation29_spill]] }
0x294d   : > { %v7482_v5 = vpop.f32.mrf.mxu1 }
0x2953   : > { %v6088_v39 = vpop.f32.mrf.mxu1 }
0x2954   : > { %v6089_v59 = vadd.f32 %v6834_v8, %v6088_v39 }
0x2955   : > { %v7504_v4 = vpop.f32.mrf.mxu1 }
0x2956   : > { %v6853_v4 = vld [vmem:[%s9092_s30 + $0x50] sm:$0xff] }
0x2989   : > { %v5891_v40 = vpop.permute.xlu1 %5890 }
0x298a   : > { %v5901_v43 = vsel %vm1276_vm1, %v5384_v32, %v5891_v40  ;;  %v6855_v32 = vld [vmem:[%s9092_s30 + $0x60] sm:$0xff]  ;;  %v6852_v40 = vld [vmem:[%s9092_s30 + $0x48] sm:$0xff] }
0x29ba   : > { %v5895_v44 = vpop.permute.xlu0 %5894 }
0x29bb   : > { %v5902_v47 = vsel %vm1362_vm2, %v5901_v43, %v5895_v44  ;;  %v6851_v44 = vld [vmem:[%s9092_s30 + $0x40] sm:$0xff] }
0x29bc   : > { %v6860_v43 = vld [vmem:[%s9100_s5 + $0x1] ss:$0 sm:$0xff]  ;;  %s8902_s5 = scalar_lea.hbm %s9108_s2, %s6873_s23 }
0x29be   : > { %v5899_v56 = vpop.permute.xlu1 %5898 }
0x29bf   : > { %v5903_v48 = vsel %vm2106_vm3, %v5902_v47, %v5899_v56 }
0x29c0   : > { %7492 = vmatmul.mubr.msk.f32.vlgmr.msra.gmra.mxu0 %vm1188_vm0, %v5903_v48 }
0x29c1   : > { %7506 = vmatpush3.msra.mxu0 %v6839_v45  ;;  %7513 = vmatprep.mubr.msk.f32.mxu0 %vm7896_vm5, %v7895_v27 }
0x29c2   : > { %7507 = vmatprep.subr.mxu0 %v7895_v27 }
0x29c3   : > { %7508 = vmatpush3.msra.mxu0 %v6838_v52  ;;  %v6862_v52 = vld [vmem:[%s9101_s9 + $0x1] ss:$0 sm:$0xff]  ;;  %s6532_s9 = scalar_lea.sflag [#allocation3], %s1158_s10 }
0x29c4   : > { %7509 = vmatprep.subr.mxu0 %v7895_v27 }
0x29c5   : > { %7510 = vmatpush3.msra.mxu0 %v6837_v57 }
0x29c6   : > { %7511 = vmatprep.subr.mxu0 %v7895_v27 }
0x29c7   : > { %7512 = vmatpush3.msra.mxu0 %v6836_v58 }
0x29c8   : > { %7514 = vmatmul.mubr.msk.f32.vlgmr.msra.gmra.mxu0 %vm1188_vm0, %v6089_v59  ;;  %7527 = vmatprep.subr.mxu0 %v7895_v27 }
0x29c9   : > { %7543 = vmatprep.mubr.msk.f32.mxu0 %vm7896_vm5, %v7895_v27  ;;  %7528 = vmatpush3.msra.mxu0 %v6858_v29 }
0x29ca   : > { %7529 = vmatprep.subr.mxu0 %v7895_v27 }
0x29cb   : > { %7530 = vmatpush3.msra.mxu0 %v6857_v30 }
0x29cc   : > { %7531 = vmatprep.subr.mxu0 %v7895_v27 }
0x29cd   : > { %7532 = vmatpush3.msra.mxu0 %v6856_v31 }
0x29ce   : > { %7533 = vmatprep.subr.mxu0 %v7895_v27 }
0x29cf   : > { %7534 = vmatpush3.msra.mxu0 %v6855_v32 }
0x29d0   : > { %7535 = vmatprep.subr.mxu0 %v7895_v27 }
0x29d1   : > { %7536 = vmatpush3.msra.mxu0 %v6854_v33 }
0x29d2   : > { %7537 = vmatprep.subr.mxu0 %v7895_v27 }
0x29d3   : > { %7538 = vmatpush3.msra.mxu0 %v6853_v4 }
0x29d4   : > { %7539 = vmatprep.subr.mxu0 %v7895_v27 }
0x29d5   : > { %7540 = vmatpush3.msra.mxu0 %v6852_v40 }
0x29d6   : > { %7541 = vmatprep.subr.mxu0 %v7895_v27 }
0x29d7   : > { %7542 = vmatpush3.msra.mxu0 %v6851_v44 }
0x2a80   : > { %v5979_v61 = vpop.f32.mrf.mxu0 }
0x2a81   : > { %v5980_v62 = vadd.f32 %v6824_v60, %v5979_v61 }
0x2a82   : > { %v7493_v63 = vpop.f32.mrf.mxu0 }
0x2a83   : > { %v5983_v20 = vadd.f32 %v5980_v62, %v8719_v21 }
0x2a85   : > { %v5988_v0 = vsel %vm1188_vm0, %v5983_v20, 0.0 }
0x2a86   : > { %5989 = vadd.xlane.f32.xlu0 %v5988_v0 }
0x2a88   : > { %v6168_v1 = vpop.f32.mrf.mxu0 }
0x2a89   : > { %v6169_v14 = vadd.f32 %v6840_v53, %v6168_v1 }
0x2a8a   : > { %v7515_v2 = vpop.f32.mrf.mxu0 }
0x2a8b   : > { %v6175_v51 = vrot.slane %v6169_v14, %v4894_v17  ;;  %v6847_v17 = vld [vmem:[%s9091_s29 + $0x28] sm:$0xff] }
0x2a8c   : > { %7521 = vmatpush3.msra.mxu1 %v6847_v17  ;;  %v6870_v17 = vld [vmem:[%s9106_s22] ss:$0 sm:$0xff] }
0x2a8d   : > { %7522 = vmatprep.subr.mxu1 %v7895_v27 }
0x2a8e   : > { %7523 = vmatpush3.msra.mxu1 %v6846_v41 }
0x2a8f   : > { %7546 = vmatprep.subr.mxu1 %v7895_v27 }
0x2b0f   : > { %v5990_v3 = vpop.xlane.xlu0 %5989 }
0x2b10   : > { %v5991_v6 = vmul.f32 0.03125, %v5990_v3 }
0x2b12   : > { %v5992_v49 = vsub.f32 %v5983_v20, %v5991_v6 }
0x2b14   : > { %v5993_v7 = vmul.f32 %v5992_v49, %v5992_v49 }
0x2b16   : > { %v5994_v9 = vsel %vm1188_vm0, %v5993_v7, 0.0 }
0x2b17   : > { %5995 = vadd.xlane.f32.xlu1 %v5994_v9  ;;  %v6867_v9 = vld [vmem:[%s9099_s27 + $0x1] ss:$0 sm:$0xff] }
0x2ba0   : > { %v5996_v55 = vpop.xlane.xlu1 %5995 }
0x2ba1   : > { %v5997_v11 = vmul.f32 0.03125, %v5996_v55 }
0x2ba3   : > { %v5998_v12 = vadd.f32 1e-05, %v5997_v11 }
0x2ba5   : > { %7773 = vrsqrt.f32 %v5998_v12 }
0x2bb2   : > { %v7774_v21 = vpop.eup %7773 }
0x2bb3   : > { %v6000_v16 = vmul.f32 %v7774_v21, %v5992_v49  ;;  %v6866_v49 = vld [vmem:[%s9098_s20 + $0x1] ss:$0 sm:$0xff] }
0x2bb5   : > { %v6007_v19 = vmul.f32 %v6828_v13, %v6000_v16 }
0x2bb7   : > { %v6014_v22 = vadd.f32 %v6829_v18, %v6007_v19  ;;  %v6449_v18 = vld [vmem:[%s9102_s13 + $0x18] sm:$0xff]  ;;  %v6448_v19 = vld [vmem:[%s9102_s13 + $0x10] sm:$0xff] }
0x2bb9   : > { %v6176_v10 = vadd.f32 %v6175_v51, %v6014_v22  ;;  %v6447_v51 = vld [vmem:[%s9102_s13 + $0x8] sm:$0xff]  ;;  %v6446_v22 = vld [vmem:[%s9102_s13] sm:$0xff] }
0x2bbb   : > { %v6181_v23 = vsel %vm1188_vm0, %v6176_v10, 0.0 }
0x2bbc   : > { %6182 = vadd.xlane.f32.xlu0 %v6181_v23 }
0x2c45   : > { %v6183_v50 = vpop.xlane.xlu0 %6182 }
0x2c46   : > { %v6184_v24 = vmul.f32 0.03125, %v6183_v50 }
0x2c48   : > { %v6185_v25 = vsub.f32 %v6176_v10, %v6184_v24 }
0x2c4a   : > { %v6186_v42 = vmul.f32 %v6185_v25, %v6185_v25 }
0x2c4c   : > { %v6187_v26 = vsel %vm1188_vm0, %v6186_v42, 0.0 }
0x2c4d   : > { %6188 = vadd.xlane.f32.xlu0 %v6187_v26  ;;  %v6869_v26 = vld [vmem:[%s9104_s15] ss:$0 sm:$0xff]  ;;  %s7898_s15 = smov [#allocation2]  }
0x2c4e   : > { %s7785_s18 = sshll.u32 %s7898_s15, 4  ;;  %s7786_s18 = int_to_ptr.vmem [resolvable:$false] %s7785_s18 }
0x2c4f   : > { %s7787_s22 = scalar_lea.vmem %s7786_s18, 256  ;;  %p7788_p0 = scmp.lt.s32.totalorder %s6546_s16, %s7786_s18 }
0x2cd6   : > { %v6189_v34 = vpop.xlane.xlu0 %6188 }
0x2cd7   : > { %v6190_v35 = vmul.f32 0.03125, %v6189_v34 }
0x2cd9   : > { %v6191_v46 = vadd.f32 1e-05, %v6190_v35 }
0x2cdb   : > { %7775 = vrsqrt.f32 %v6191_v46 }
0x2ce8   : > { %v7776_v36 = vpop.eup %7775 }
0x2ce9   : > { %v6193_v54 = vmul.f32 %v7776_v36, %v6185_v25  ;;  %v6868_v25 = vld [vmem:[%s9103_s17] ss:$0 sm:$0xff]  ;;  %s7781_s17 = scalar_lea.vmem %s6546_s16, 128 }
0x2cea   : > { %p7782_p11 = scmp.ne.s32.totalorder %s6546_s16, %s7781_s17  ;;  %p7789_p1 = scmp.lt.s32.totalorder %s7787_s22, %s7781_s17 }
0x2ceb   : > { %v6200_v5 = vmul.f32 %v6844_v37, %v6193_v54 }
0x2cec   : > { %p7783_p12 = pnand %p7782_p11, %p8137_p5  ;;  %p7790_p2 = por %p7789_p1, %p7788_p0 }
0x2ced   : > { %v6207_v39 = vadd.f32 %v6845_v38, %v6200_v5 }
0x2cee   : > { %p7784_p13 = pneg %p7783_p12 }
0x2cef   : > { %7525 = vmatmul.mubr.msk.f32.vlgmr.msra.gmra.mxu1 %vm1188_vm0, %v6207_v39 }
0x2cf0   : > { %7554 = vmatprep.mubr.msk.f32.mxu1 %vm7896_vm5, %v7895_v27  ;;  %7547 = vmatpush3.msra.mxu1 %v6449_v18  ;;  %p7791_p3 = pnand %p7790_p2, %p7784_p13 }
0x2cf1   : > { %7548 = vmatprep.subr.mxu1 %v7895_v27 }
0x2cf2   : > { %7549 = vmatpush3.msra.mxu1 %v6448_v19 }
0x2cf3   : > { %7550 = vmatprep.subr.mxu1 %v7895_v27 }
0x2cf4   : > { %7551 = vmatpush3.msra.mxu1 %v6447_v51 }
0x2cf5   : > { %7552 = vmatprep.subr.mxu1 %v7895_v27 }
0x2cf6   : > { %7553 = vmatpush3.msra.mxu1 %v6446_v22 }
0x2daf   : > { %v6301_v47 = vpop.f32.mrf.mxu1 }
0x2db0   : > { %v6302_v56 = vadd.f32 %v6860_v43, %v6301_v47 }
0x2db1   : > { %v7526_v45 = vpop.f32.mrf.mxu1 }
0x2db2   : > { %v6305_v48 = vmax.f32 %v6302_v56, 0.0 }
0x2db4   : > { %7544 = vmatmul.mubr.msk.f32.vlgmr.msra.gmra.mxu0 %vm2352_vm4, %v6305_v48 }
0x2e74   : > { %v6381_v57 = vpop.f32.mrf.mxu0 }
0x2e75   : > { %v6382_v8 = vadd.f32 %v6862_v52, %v6381_v57 }
0x2e76   : > { %v7545_v58 = vpop.f32.mrf.mxu0 }
0x2e77   : > { %v6385_v59 = vadd.f32 %v6382_v8, %v6207_v39 }
0x2e79   : > { %v6390_v60 = vsel %vm1188_vm0, %v6385_v59, 0.0 }
0x2e7a   : > { %6391 = vadd.xlane.f32.xlu1 %v6390_v60 }
0x2f03   : > { %v6392_v61 = vpop.xlane.xlu1 %6391 }
0x2f04   : > { %v6393_v62 = vmul.f32 0.03125, %v6392_v61 }
0x2f06   : > { %v6394_v63 = vsub.f32 %v6385_v59, %v6393_v62 }
0x2f08   : > { %v6395_v20 = vmul.f32 %v6394_v63, %v6394_v63 }
0x2f0a   : > { %v6396_v0 = vsel %vm1188_vm0, %v6395_v20, 0.0 }
0x2f0b   : > { %6397 = vadd.xlane.f32.xlu0 %v6396_v0 }
0x2f94   : > { %v6398_v1 = vpop.xlane.xlu0 %6397 }
0x2f95   : > { %v6399_v2 = vmul.f32 0.03125, %v6398_v1 }
0x2f97   : > { %v6400_v3 = vadd.f32 1e-05, %v6399_v2 }
0x2f99   : > { %7777 = vrsqrt.f32 %v6400_v3 }
0x2fa6   : > { %v7778_v6 = vpop.eup %7777 }
0x2fa7   : > { %v6402_v7 = vmul.f32 %v7778_v6, %v6394_v63 }
0x2fa9   : > { %v6409_v55 = vmul.f32 %v6866_v49, %v6402_v7 }
0x2fab   : > { %v6416_v11 = vadd.f32 %v6867_v9, %v6409_v55 }
0x2fad   : > { %v6419_v12 = vsel %vm1188_vm0, %v6416_v11, 0.0 }
0x2fae   : > { %6420 = vadd.xlane.f32.xlu1 %v6419_v12 }
0x3037   : > { %v6421_v53 = vpop.xlane.xlu1 %6420 }
0x3038   : > { %v6422_v21 = vmul.f32 0.03125, %v6421_v53 }
0x303a   : > { %v6423_v13 = vsub.f32 %v6416_v11, %v6422_v21 }
0x303c   : > { %v6424_v14 = vmul.f32 %v6423_v13, %v6423_v13 }
0x303e   : > { %v6425_v16 = vsel %vm1188_vm0, %v6424_v14, 0.0 }
0x303f   : > { %6426 = vadd.xlane.f32.xlu0 %v6425_v16 }
0x30c8   : > { %v6427_v10 = vpop.xlane.xlu0 %6426 }
0x30c9   : > { %v6428_v23 = vmul.f32 0.03125, %v6427_v10 }
0x30cb   : > { %v6429_v50 = vadd.f32 1e-05, %v6428_v23 }
0x30cd   : > { %7779 = vrsqrt.f32 %v6429_v50 }
0x30da   : > { %v7780_v24 = vpop.eup %7779 }
0x30db   : > { %v6431_v42 = vmul.f32 %v7780_v24, %v6423_v13 }
0x30dd   : > { %v6438_v28 = vmul.f32 %v6868_v25, %v6431_v42 }
0x30df   : > { %v6445_v15 = vadd.f32 %v6869_v26, %v6438_v28 }
0x30e1   : > { %7555 = vmatmul.mubr.msk.f32.vlgmr.msra.gmra.mxu1 %vm1188_vm0, %v6445_v15 }
0x31a1   : > { %v6526_v27 = vpop.f32.mrf.mxu1 }
0x31a2   : > { %v6527_v41 = vadd.f32 %v6870_v17, %v6526_v27 }
0x31a3   : > { %v7556_v29 = vpop.f32.mrf.mxu1 }
0x31a4   : > { %6530 = vst [vmem:[%s1160_s28] sm:$0xff] %v6527_v41 }
0x31a5   : > { %7794 = shalt.err (!%p7791_p3)
}
0x31a6   : > { %s7795_s26 = scalar_lea.hbm %s8902_s5, 128  ;;  %s7799_s10 = scalar_lea.hbm %s9108_s2, 256 }
0x31a7   : > { %p7796_p4 = scmp.ne.s32.totalorder %s8902_s5, %s7795_s26  ;;  %p7800_p9 = scmp.lt.s32.totalorder %s8902_s5, %s9108_s2 }
0x31a8   : > { %p7801_p10 = scmp.lt.s32.totalorder %s7799_s10, %s7795_s26 }
0x31a9   : > { %p7797_p7 = pnand %p7796_p4, %p8137_p5 }
0x31aa   : > { %p7802_p11 = por %p7801_p10, %p7800_p9 }
0x31ab   : > { %p7798_p8 = pneg %p7797_p7 }
0x31ad   : > { %p7803_p12 = pnand %p7802_p11, %p7798_p8 }
0x31af   : > { %7806 = shalt.err (!%p7803_p12)
}
0x31b0   : > { %7557 = dma.vmem_to_hbm [thread:$0]  (%p8137_p5), %s6546_s16, 128, %s8902_s5, %s6532_s9  }
0x31b1 PF: > { %s9110_s1 = sld [smem:[#allocation46_spill]] }
0x31b2   : > { %s9111_s23 = sld [smem:[#allocation43_spill]] }
0x31b7   : > { %p7563_p13 = scmp.ge.s32.totalorder %s9110_s1, 2 }
0x31b8   : > { %s6557_s17 = sand.u32 1, %s9111_s23  }
0x31b9   : > { %p7560_p0 = pnand %p7563_p13, %p8141_p6  ;;  %s6558_s15 = scalar_lea.sflag [#allocation3], %s6557_s17 }
0x31bb   : > { %p7561_p1 = pneg %p7560_p0 }
0x31bd   : > { %7824 = dma.done.wait (%p7561_p1), %s6558_s15, 128  }
0x31be   : > { %7826 = vsyncadd (%p7561_p1), %s6558_s15, 4294967168  ;;  %s9113_s22 = sld [smem:[#allocation48_spill]] }
0x31bf   : > { %s9114_s15 = sld [smem:[#allocation44_spill]] }
0x31c0   : > { %s9115_s16 = sld [smem:[#allocation45_spill]] }
0x31c1   : > { %s9116_s18 = sld [smem:[#allocation49_spill]] }
0x31c4   : > { %p87_p2 = scmp.ge.s32.totalorder %s9113_s22, 4  }
0x31c6   :  { %89 = sbr.rel (!%p87_p2) target bundleno = 89 (0x59), region = 278 }
0x31cb   :  { %6563 = vsyncpa [#allocation3], 1 }
0x31cc   :  { %6565 = vsyncpa [#allocation3 + $0x1], 1 }

</bundles_post_ra>
